<compile_context>
chip_gen: v7x
topology: tpu7x:2x2x1
jax: 0.10.0
libtpu: 0.0.40
codegen_flags: <defaults>
</compile_context>

<pallas_src>
import math
from functools import partial

import jax
import jax.numpy as jnp
from jax.experimental import pallas as pl
from jax.experimental.pallas import tpu as pltpu

BN_EPS = 1e-5
STRIDES = (2, 1, 2, 1, 2, 1)      # the 6 UtrResBlocks in create_1dcnn_for_emd


# ----------------------------- in-kernel helpers -----------------------------

def _dot(a_f32, w_bf16):
    """MXU matmul: bf16 operands, f32 accumulation."""
    return jnp.dot(a_f32.astype(jnp.bfloat16), w_bf16,
                   preferred_element_type=jnp.float32)


def _seq_pos(n, lc):
    """Within-sequence row index for n stacked rows of per-sequence length lc."""
    r = jax.lax.broadcasted_iota(jnp.int32, (n, 1), 0)
    return r % lc


def _shift_down(x, lc):
    """y[t] = x[t-1], zeroed at the first row of every stacked sequence."""
    return jnp.where(_seq_pos(x.shape[0], lc) == 0, 0.0, pltpu.roll(x, 1, axis=0))


def _shift_up(x, lc):
    """y[t] = x[t+1], zeroed at the last row of every stacked sequence."""
    n = x.shape[0]
    # roll by n-1 == roll by -1 (pltpu.roll requires a non-negative shift)
    return jnp.where(_seq_pos(n, lc) == lc - 1, 0.0, pltpu.roll(x, n - 1, axis=0))


def _conv3(x, w_tap0, w_tap1, w_tap2, lc):
    """Conv1d(k=3, pad=1, stride=1, no bias) on stacked sequences.

    x: (n, C) f32 with n = Bt*lc; w_tap{0,1,2}: (C, Cout) bf16 taps (k = 0, 1, 2).
    Three accumulating MXU dots on roll-shifted copies (XLU slot); the boundary
    where-mask reproduces the zero padding at every sequence edge.
    """
    y = _dot(_shift_down(x, lc), w_tap0)
    y = y + _dot(x, w_tap1)
    return y + _dot(_shift_up(x, lc), w_tap2)


# --------------------------------- kernel ------------------------------------

def _utr_kernel(bt, lseq,
                keep_ref, x_ref, wred_ref, bred_ref, w0_ref, b0_ref,
                wblk_ref, bn_s_ref, bn_t_ref, wdown_ref, bdown_ref,
                wf_ref, bf_ref, out_ref, ds_ref):
    # ---- mask pad (==1) / eos (==2) tokens, reductio_module Linear(E -> Cin) ----
    x = x_ref[...] * keep_ref[...]                                     # bf16 (bt*L, E)
    h = jnp.dot(x, wred_ref[...],
                preferred_element_type=jnp.float32) + bred_ref[...]    # (bt*L, Cin) f32

    # ---- predictor[0]: Conv1d(Cin -> M, k=3, pad=1) + bias ----
    lc = lseq                                                          # per-seq length
    h = _conv3(h, w0_ref[0], w0_ref[1], w0_ref[2], lc) + b0_ref[...]   # (bt*L, M)

    # ---- 6 UtrResBlocks: bn1 -> relu -> conv1 -> bn2 -> relu -> conv2 (+ skip) ----
    ci = bi = di = 0
    for s in STRIDES:
        if s == 2:
            n = h.shape[0]
            n2, lo = n // 2, lc // 2
            # De-interleave even/odd rows once (strided sublane reads from scratch).
            # Even rows also feed the 1x1 stride-2 downsample (identity) path.
            ds_ref[pl.ds(0, n), :] = h
            h_even = ds_ref[pl.ds(0, n2, stride=2), :]                 # h[2j]
            h_odd = ds_ref[pl.ds(1, n2, stride=2), :]                  # h[2j+1]
            a_even = jnp.maximum(h_even * bn_s_ref[bi] + bn_t_ref[bi], 0.0)
            a_odd = jnp.maximum(h_odd * bn_s_ref[bi] + bn_t_ref[bi], 0.0)
            # conv1 fused with stride 2: y[j] = a[2j-1]@w0 + a[2j]@w1 + a[2j+1]@w2
            a_m1 = jnp.where(_seq_pos(n2, lo) == 0, 0.0,
                             pltpu.roll(a_odd, 1, axis=0))             # a[2j-1]
            o = _dot(a_m1, wblk_ref[ci, 0])
            o = o + _dot(a_even, wblk_ref[ci, 1])
            o = o + _dot(a_odd, wblk_ref[ci, 2])
            # downsample path: Conv1d(k=1, stride=2, no bias) with its BN pre-folded
            iden = _dot(h_even, wdown_ref[di]) + bdown_ref[di]
            di += 1
            lc = lo
        else:
            iden = h
            a = jnp.maximum(h * bn_s_ref[bi] + bn_t_ref[bi], 0.0)
            o = _conv3(a, wblk_ref[ci, 0], wblk_ref[ci, 1], wblk_ref[ci, 2], lc)
        ci += 1
        bi += 1
        # bn2 -> relu -> conv2 (k=3, stride=1)
        o = jnp.maximum(o * bn_s_ref[bi] + bn_t_ref[bi], 0.0)
        bi += 1
        o = _conv3(o, wblk_ref[ci, 0], wblk_ref[ci, 1], wblk_ref[ci, 2], lc)
        ci += 1
        h = o + iden

    # ---- AdaptiveAvgPool1d(1) + Dropout (identity) + Linear(M -> 1), fused ----
    # mean_L(h) @ wf == mean_L(h @ wf); the 1/Lf factor is folded into wf.
    # TODO(synk): nn.Dropout is identity here (inference semantics, no RNG).
    col = _dot(h, wf_ref[...])                                         # (bt*Lf, 1) f32
    sums = [jnp.sum(col[b * lc:(b + 1) * lc, :], axis=0, keepdims=True)
            for b in range(bt)]
    out_ref[0] = jnp.concatenate(sums, axis=0) + bf_ref[...]           # one (bt, 1) store


# --------------------------------- wrapper -----------------------------------

def utr_regression_forward(ids, x, params, *, num_steps=2):
    """ids: (B, L) int32 token ids, x: (B, L, E) f32 embeddings -> (B, 1) f32.

    num_steps=2 keeps both v7x TensorCores busy; on v5e/v6e (1 TC) num_steps=1
    fuses the whole batch into a single step (per-step overhead is ~0.35 us).
    """
    B, L = ids.shape
    E = x.shape[2]
    Cin = params["wred"].shape[1]
    M = params["w0"].shape[2]
    assert L % 8 == 0, "L must be divisible by 8 (three stride-2 halvings)"
    if num_steps < 1 or B % num_steps != 0:
        num_steps = 1                              # fall back to a single fused step
    bt = B // num_steps                            # sequences folded per grid step
    lf = L // 8                                    # length after the 3 stride-2 blocks
    rows = bt * L

    # pad/eos keep-mask precomputed (exact in bf16 on {0,1}); x shipped bf16 (1/2 DMA)
    keep = jnp.logical_and(ids != 1, ids != 2).astype(jnp.bfloat16).reshape(B * L, 1)
    xs = x.astype(jnp.bfloat16).reshape(B * L, E)

    # bf16 MXU operands (f32 accumulate in-kernel); biases / BN vectors stay f32
    wred = params["wred"].astype(jnp.bfloat16)                              # (E, Cin)
    w0 = params["w0"].astype(jnp.bfloat16)                                  # (3, Cin, M)
    wblk = params["wblk"].astype(jnp.bfloat16)                              # (12, 3, M, M)
    # fold the downsample-path BatchNorm into the 1x1 conv weight (+ bias)
    wdown = (params["wdown"] * params["bn_down_scale"]).astype(jnp.bfloat16)  # (3, M, M)
    bdown = params["bn_down_shift"]                                          # (3, 1, M)
    # fold AdaptiveAvgPool1d(1)'s 1/Lf into the final linear weight
    wf = (params["wf"] / lf).astype(jnp.bfloat16)                            # (M, 1)

    def const_spec(a):
        zeros = (0,) * a.ndim
        return pl.BlockSpec(a.shape, lambda b, _z=zeros: _z)

    in_specs = [
        pl.BlockSpec((rows, 1), lambda b: (b, 0)),      # keep mask (bt seqs / step)
        pl.BlockSpec((rows, E), lambda b: (b, 0)),      # embeddings
        const_spec(wred), const_spec(params["bred"]),
        const_spec(w0), const_spec(params["b0"]),
        const_spec(wblk),
        const_spec(params["bn_scale"]), const_spec(params["bn_shift"]),
        const_spec(wdown), const_spec(bdown),
        const_spec(wf), const_spec(params["bf"]),
    ]

    out = pl.pallas_call(
        partial(_utr_kernel, bt, L),
        out_shape=jax.ShapeDtypeStruct((num_steps, bt, 1), jnp.float32),
        grid=(num_steps,),
        in_specs=in_specs,
        out_specs=pl.BlockSpec((1, bt, 1), lambda b: (b, 0, 0)),
        scratch_shapes=[pltpu.VMEM((rows, M), jnp.float32)],   # even/odd de-interleave
        compiler_params=pltpu.CompilerParams(dimension_semantics=("parallel",)),
    )(keep, xs, wred, params["bred"], w0, params["b0"], wblk,
      params["bn_scale"], params["bn_shift"], wdown, bdown, wf, params["bf"])
    return out.reshape(B, 1)


# ----------------------------- parameter init --------------------------------

def init_params(key, in_channels, main_planes, embedding_dim):
    """Parameters matching the PyTorch module's init.

    Layouts are pre-transposed for the kernel: Linear weights are (in, out),
    Conv1d weights are (kernel_tap, in, out) (torch stores (out, in, k)).
    """
    E, Cin, M = embedding_dim, in_channels, main_planes
    ks = jax.random.split(key, 5)

    # reductio_module Linear(E -> Cin): normal(std=0.001), bias 0 (classifier init)
    wred = 0.001 * jax.random.normal(ks[0], (E, Cin), jnp.float32)
    bred = jnp.zeros((1, Cin), jnp.float32)

    # Conv1d(Cin -> M, k=3): kaiming_normal fan_in (std = sqrt(2/(Cin*3))), bias 0
    w0 = math.sqrt(2.0 / (Cin * 3)) * jax.random.normal(ks[1], (3, Cin, M), jnp.float32)
    b0 = jnp.zeros((1, M), jnp.float32)

    # 6 blocks x 2 conv3 layers (no bias): std = sqrt(2/(M*3))
    wblk = math.sqrt(2.0 / (M * 3)) * jax.random.normal(ks[2], (12, 3, M, M), jnp.float32)
    # 3 downsample 1x1 convs (stride-2 blocks, no bias): std = sqrt(2/M)
    wdown = math.sqrt(2.0 / M) * jax.random.normal(ks[3], (3, M, M), jnp.float32)

    # BatchNorm1d in eval mode, init state (mean=0, var=1, gamma=1, beta=0), folded:
    #   scale = gamma / sqrt(var + eps), shift = beta - mean * scale
    # TODO(synk): for a trained checkpoint fold the actual running stats here.
    bn_scale = jnp.full((12, 1, M), 1.0 / math.sqrt(1.0 + BN_EPS), jnp.float32)
    bn_shift = jnp.zeros((12, 1, M), jnp.float32)
    bn_down_scale = jnp.full((3, 1, M), 1.0 / math.sqrt(1.0 + BN_EPS), jnp.float32)
    bn_down_shift = jnp.zeros((3, 1, M), jnp.float32)

    # final Linear(M -> 1): normal(std=0.001), bias 0
    wf = 0.001 * jax.random.normal(ks[4], (M, 1), jnp.float32)
    bf = jnp.zeros((1, 1), jnp.float32)

    return dict(wred=wred, bred=bred, w0=w0, b0=b0, wblk=wblk, wdown=wdown,
                bn_scale=bn_scale, bn_shift=bn_shift,
                bn_down_scale=bn_down_scale, bn_down_shift=bn_down_shift,
                wf=wf, bf=bf)


# ----------------------------------- main -------------------------------------

if __name__ == "__main__":
    B, L, E = 4, 16, 32                 # batch, sequence length, embedding_dim
    in_channels, main_planes = 8, 16
    dropout = 0.2                       # identity at inference

    key = jax.random.PRNGKey(0)
    k_ids, k_x, k_p = jax.random.split(key, 3)

    ids = jax.random.randint(k_ids, (B, L), 0, 5, dtype=jnp.int32)   # contains 1s / 2s
    x = jax.random.normal(k_x, (B, L, E), jnp.float32)
    params = init_params(k_p, in_channels, main_planes, E)

    out = utr_regression_forward(ids, x, params)   # grid=(2,), 2 sequences per step
    out = jax.block_until_ready(out)
    assert out.shape == (B, 1) and out.dtype == jnp.float32
    print("KERNEL_OK")
</pallas_src>

<mosaic_0001>
module attributes {stable_mosaic.version = 11 : i64} {
  func.func @_utr_kernel(%arg0: i32, %arg1: memref<32x1xbf16, #tpu.memory_space<vmem>>, %arg2: memref<32x32xbf16, #tpu.memory_space<vmem>>, %arg3: memref<32x8xbf16, #tpu.memory_space<vmem>>, %arg4: memref<1x8xf32, #tpu.memory_space<vmem>>, %arg5: memref<3x8x16xbf16, #tpu.memory_space<vmem>>, %arg6: memref<1x16xf32, #tpu.memory_space<vmem>>, %arg7: memref<12x3x16x16xbf16, #tpu.memory_space<vmem>>, %arg8: memref<12x1x16xf32, #tpu.memory_space<vmem>>, %arg9: memref<12x1x16xf32, #tpu.memory_space<vmem>>, %arg10: memref<3x16x16xbf16, #tpu.memory_space<vmem>>, %arg11: memref<3x1x16xf32, #tpu.memory_space<vmem>>, %arg12: memref<16x1xbf16, #tpu.memory_space<vmem>>, %arg13: memref<1x1xf32, #tpu.memory_space<vmem>>, %arg14: memref<1x2x1xf32, #tpu.memory_space<vmem>>, %arg15: memref<32x16xf32, #tpu.memory_space<vmem>>) attributes {dimension_semantics = [#tpu.dimension_semantics<parallel>], iteration_bounds = array<i64: 2>, scalar_prefetch = 0 : i64, scratch_operands = 1 : i64, tpu.core_type = #tpu.core_type<tc>, window_params = [{transform_indices = @transform_0, window_bounds = array<i64: 32, 1>}, {transform_indices = @transform_1, window_bounds = array<i64: 32, 32>}, {pipeline_mode = #tpu.pipeline_mode<synchronous>, transform_indices = @transform_2, window_bounds = array<i64: 32, 8>}, {pipeline_mode = #tpu.pipeline_mode<synchronous>, transform_indices = @transform_3, window_bounds = array<i64: 1, 8>}, {pipeline_mode = #tpu.pipeline_mode<synchronous>, transform_indices = @transform_4, window_bounds = array<i64: 3, 8, 16>}, {pipeline_mode = #tpu.pipeline_mode<synchronous>, transform_indices = @transform_5, window_bounds = array<i64: 1, 16>}, {pipeline_mode = #tpu.pipeline_mode<synchronous>, transform_indices = @transform_6, window_bounds = array<i64: 12, 3, 16, 16>}, {pipeline_mode = #tpu.pipeline_mode<synchronous>, transform_indices = @transform_7, window_bounds = array<i64: 12, 1, 16>}, {pipeline_mode = #tpu.pipeline_mode<synchronous>, transform_indices = @transform_8, window_bounds = array<i64: 12, 1, 16>}, {pipeline_mode = #tpu.pipeline_mode<synchronous>, transform_indices = @transform_9, window_bounds = array<i64: 3, 16, 16>}, {pipeline_mode = #tpu.pipeline_mode<synchronous>, transform_indices = @transform_10, window_bounds = array<i64: 3, 1, 16>}, {pipeline_mode = #tpu.pipeline_mode<synchronous>, transform_indices = @transform_11, window_bounds = array<i64: 16, 1>}, {pipeline_mode = #tpu.pipeline_mode<synchronous>, transform_indices = @transform_12, window_bounds = array<i64: 1, 1>}, {transform_indices = @transform_13, window_bounds = array<i64: 1, 2, 1>}]} {
    %c0 = arith.constant 0 : index
    %c0_0 = arith.constant 0 : index
    %0 = vector.load %arg2[%c0, %c0_0] : memref<32x32xbf16, #tpu.memory_space<vmem>>, vector<32x32xbf16>
    %c0_1 = arith.constant 0 : index
    %c0_2 = arith.constant 0 : index
    %1 = vector.load %arg1[%c0_1, %c0_2] : memref<32x1xbf16, #tpu.memory_space<vmem>>, vector<32x1xbf16>
    %2 = vector.broadcast %1 : vector<32x1xbf16> to vector<32x32xbf16>
    %3 = arith.mulf %0, %2 : vector<32x32xbf16>
    %c0_3 = arith.constant 0 : index
    %c0_4 = arith.constant 0 : index
    %4 = vector.load %arg3[%c0_3, %c0_4] : memref<32x8xbf16, #tpu.memory_space<vmem>>, vector<32x8xbf16>
    %cst = arith.constant dense<0.000000e+00> : vector<32x8xf32>
    %5 = tpu.matmul %3, %4, %cst {dimension_numbers = #tpu.dot_dimension_numbers<[1], [0], [0], [1], [0, 0, 1, 1], [], []>} : vector<32x32xbf16>, vector<32x8xbf16>, vector<32x8xf32> -> vector<32x8xf32>
    %c0_5 = arith.constant 0 : index
    %c0_6 = arith.constant 0 : index
    %6 = vector.load %arg4[%c0_5, %c0_6] : memref<1x8xf32, #tpu.memory_space<vmem>>, vector<1x8xf32>
    %7 = vector.broadcast %6 : vector<1x8xf32> to vector<32x8xf32>
    %8 = arith.addf %5, %7 : vector<32x8xf32>
    %c0_7 = arith.constant 0 : index
    %c0_8 = arith.constant 0 : index
    %c0_9 = arith.constant 0 : index
    %9 = vector.load %arg5[%c0_7, %c0_8, %c0_9] : memref<3x8x16xbf16, #tpu.memory_space<vmem>>, vector<1x8x16xbf16>
    %10 = vector.shape_cast %9 : vector<1x8x16xbf16> to vector<8x16xbf16>
    %c1 = arith.constant 1 : index
    %c0_10 = arith.constant 0 : index
    %c0_11 = arith.constant 0 : index
    %11 = vector.load %arg5[%c1, %c0_10, %c0_11] : memref<3x8x16xbf16, #tpu.memory_space<vmem>>, vector<1x8x16xbf16>
    %12 = vector.shape_cast %11 : vector<1x8x16xbf16> to vector<8x16xbf16>
    %c2 = arith.constant 2 : index
    %c0_12 = arith.constant 0 : index
    %c0_13 = arith.constant 0 : index
    %13 = vector.load %arg5[%c2, %c0_12, %c0_13] : memref<3x8x16xbf16, #tpu.memory_space<vmem>>, vector<1x8x16xbf16>
    %14 = vector.shape_cast %13 : vector<1x8x16xbf16> to vector<8x16xbf16>
    %15 = tpu.iota {dimensions = array<i32: 0>} : vector<32x1xi32>
    %c16_i32 = arith.constant 16 : i32
    %c0_i32 = arith.constant 0 : i32
    %16 = arith.cmpi eq, %c16_i32, %c0_i32 : i32
    %c1_i32 = arith.constant 1 : i32
    %17 = arith.select %16, %c1_i32, %c16_i32 : i32
    %18 = vector.broadcast %17 : i32 to vector<32x1xi32>
    %19 = arith.remsi %15, %18 : vector<32x1xi32>
    %c0_i32_14 = arith.constant 0 : i32
    %20 = vector.broadcast %c0_i32_14 : i32 to vector<32x1xi32>
    %21 = arith.cmpi ne, %19, %20 : vector<32x1xi32>
    %c0_i32_15 = arith.constant 0 : i32
    %22 = vector.broadcast %c0_i32_15 : i32 to vector<32x1xi32>
    %23 = arith.cmpi slt, %19, %22 : vector<32x1xi32>
    %c0_i32_16 = arith.constant 0 : i32
    %24 = arith.cmpi slt, %17, %c0_i32_16 : i32
    %25 = vector.broadcast %24 : i1 to vector<32x1xi1>
    %26 = vector.broadcast %25 : vector<32x1xi1> to vector<32x1xi1>
    %27 = arith.xori %23, %26 : vector<32x1xi1>
    %28 = arith.andi %27, %21 : vector<32x1xi1>
    %29 = vector.broadcast %17 : i32 to vector<32x1xi32>
    %30 = arith.addi %19, %29 : vector<32x1xi32>
    %31 = arith.select %28, %30, %19 : vector<32x1xi1>, vector<32x1xi32>
    %c0_i32_17 = arith.constant 0 : i32
    %32 = vector.broadcast %c0_i32_17 : i32 to vector<32x1xi32>
    %33 = arith.cmpi eq, %31, %32 : vector<32x1xi32>
    %c1_i32_18 = arith.constant 1 : i32
    %34 = tpu.dynamic_rotate %8 by %c1_i32_18 dim 0 : vector<32x8xf32>, i32 -> vector<32x8xf32>
    %cst_19 = arith.constant 0.000000e+00 : f32
    %35 = vector.shape_cast %33 : vector<32x1xi1> to vector<32x1xi1>
    %36 = vector.broadcast %35 : vector<32x1xi1> to vector<32x8xi1>
    %37 = vector.broadcast %cst_19 : f32 to vector<32x8xf32>
    %38 = arith.select %36, %37, %34 : vector<32x8xi1>, vector<32x8xf32>
    %39 = arith.truncf %38 : vector<32x8xf32> to vector<32x8xbf16>
    %cst_20 = arith.constant dense<0.000000e+00> : vector<32x16xf32>
    %40 = tpu.matmul %39, %10, %cst_20 {dimension_numbers = #tpu.dot_dimension_numbers<[1], [0], [0], [1], [0, 0, 1, 1], [], []>} : vector<32x8xbf16>, vector<8x16xbf16>, vector<32x16xf32> -> vector<32x16xf32>
    %41 = arith.truncf %8 : vector<32x8xf32> to vector<32x8xbf16>
    %cst_21 = arith.constant dense<0.000000e+00> : vector<32x16xf32>
    %42 = tpu.matmul %41, %12, %cst_21 {dimension_numbers = #tpu.dot_dimension_numbers<[1], [0], [0], [1], [0, 0, 1, 1], [], []>} : vector<32x8xbf16>, vector<8x16xbf16>, vector<32x16xf32> -> vector<32x16xf32>
    %43 = arith.addf %40, %42 : vector<32x16xf32>
    %44 = tpu.iota {dimensions = array<i32: 0>} : vector<32x1xi32>
    %c16_i32_22 = arith.constant 16 : i32
    %c0_i32_23 = arith.constant 0 : i32
    %45 = arith.cmpi eq, %c16_i32_22, %c0_i32_23 : i32
    %c1_i32_24 = arith.constant 1 : i32
    %46 = arith.select %45, %c1_i32_24, %c16_i32_22 : i32
    %47 = vector.broadcast %46 : i32 to vector<32x1xi32>
    %48 = arith.remsi %44, %47 : vector<32x1xi32>
    %c0_i32_25 = arith.constant 0 : i32
    %49 = vector.broadcast %c0_i32_25 : i32 to vector<32x1xi32>
    %50 = arith.cmpi ne, %48, %49 : vector<32x1xi32>
    %c0_i32_26 = arith.constant 0 : i32
    %51 = vector.broadcast %c0_i32_26 : i32 to vector<32x1xi32>
    %52 = arith.cmpi slt, %48, %51 : vector<32x1xi32>
    %c0_i32_27 = arith.constant 0 : i32
    %53 = arith.cmpi slt, %46, %c0_i32_27 : i32
    %54 = vector.broadcast %53 : i1 to vector<32x1xi1>
    %55 = vector.broadcast %54 : vector<32x1xi1> to vector<32x1xi1>
    %56 = arith.xori %52, %55 : vector<32x1xi1>
    %57 = arith.andi %56, %50 : vector<32x1xi1>
    %58 = vector.broadcast %46 : i32 to vector<32x1xi32>
    %59 = arith.addi %48, %58 : vector<32x1xi32>
    %60 = arith.select %57, %59, %48 : vector<32x1xi1>, vector<32x1xi32>
    %c15_i32 = arith.constant 15 : i32
    %61 = vector.broadcast %c15_i32 : i32 to vector<32x1xi32>
    %62 = arith.cmpi eq, %60, %61 : vector<32x1xi32>
    %c31_i32 = arith.constant 31 : i32
    %63 = tpu.dynamic_rotate %8 by %c31_i32 dim 0 : vector<32x8xf32>, i32 -> vector<32x8xf32>
    %cst_28 = arith.constant 0.000000e+00 : f32
    %64 = vector.shape_cast %62 : vector<32x1xi1> to vector<32x1xi1>
    %65 = vector.broadcast %64 : vector<32x1xi1> to vector<32x8xi1>
    %66 = vector.broadcast %cst_28 : f32 to vector<32x8xf32>
    %67 = arith.select %65, %66, %63 : vector<32x8xi1>, vector<32x8xf32>
    %68 = arith.truncf %67 : vector<32x8xf32> to vector<32x8xbf16>
    %cst_29 = arith.constant dense<0.000000e+00> : vector<32x16xf32>
    %69 = tpu.matmul %68, %14, %cst_29 {dimension_numbers = #tpu.dot_dimension_numbers<[1], [0], [0], [1], [0, 0, 1, 1], [], []>} : vector<32x8xbf16>, vector<8x16xbf16>, vector<32x16xf32> -> vector<32x16xf32>
    %70 = arith.addf %43, %69 : vector<32x16xf32>
    %c0_30 = arith.constant 0 : index
    %c0_31 = arith.constant 0 : index
    %71 = vector.load %arg6[%c0_30, %c0_31] : memref<1x16xf32, #tpu.memory_space<vmem>>, vector<1x16xf32>
    %72 = vector.broadcast %71 : vector<1x16xf32> to vector<32x16xf32>
    %73 = arith.addf %70, %72 : vector<32x16xf32>
    %c0_32 = arith.constant 0 : index
    %c0_33 = arith.constant 0 : index
    %74 = vector.load %arg15[%c0_32, %c0_33] : memref<32x16xf32, #tpu.memory_space<vmem>>, vector<32x16xf32>
    tpu.vector_store %arg15[%c0_32, %c0_33], %73 {strides = array<i32>} : memref<32x16xf32, #tpu.memory_space<vmem>>, vector<32x16xf32>,
    %c0_34 = arith.constant 0 : index
    %c0_35 = arith.constant 0 : index
    %75 = tpu.strided_load %arg15[%c0_34, %c0_35] {strides = array<i32: 2, 1>} : memref<32x16xf32, #tpu.memory_space<vmem>>, vector<16x16xf32>
    %c1_36 = arith.constant 1 : index
    %c0_37 = arith.constant 0 : index
    %76 = tpu.strided_load %arg15[%c1_36, %c0_37] {strides = array<i32: 2, 1>} : memref<32x16xf32, #tpu.memory_space<vmem>>, vector<16x16xf32>
    %c0_38 = arith.constant 0 : index
    %c0_39 = arith.constant 0 : index
    %c0_40 = arith.constant 0 : index
    %77 = vector.load %arg8[%c0_38, %c0_39, %c0_40] : memref<12x1x16xf32, #tpu.memory_space<vmem>>, vector<1x1x16xf32>
    %78 = vector.shape_cast %77 : vector<1x1x16xf32> to vector<1x16xf32>
    %79 = vector.broadcast %78 : vector<1x16xf32> to vector<16x16xf32>
    %80 = arith.mulf %75, %79 : vector<16x16xf32>
    %c0_41 = arith.constant 0 : index
    %c0_42 = arith.constant 0 : index
    %c0_43 = arith.constant 0 : index
    %81 = vector.load %arg9[%c0_41, %c0_42, %c0_43] : memref<12x1x16xf32, #tpu.memory_space<vmem>>, vector<1x1x16xf32>
    %82 = vector.shape_cast %81 : vector<1x1x16xf32> to vector<1x16xf32>
    %83 = vector.broadcast %82 : vector<1x16xf32> to vector<16x16xf32>
    %84 = arith.addf %80, %83 : vector<16x16xf32>
    %cst_44 = arith.constant 0.000000e+00 : f32
    %85 = vector.broadcast %cst_44 : f32 to vector<16x16xf32>
    %86 = arith.maximumf %84, %85 : vector<16x16xf32>
    %c0_45 = arith.constant 0 : index
    %c0_46 = arith.constant 0 : index
    %c0_47 = arith.constant 0 : index
    %87 = vector.load %arg8[%c0_45, %c0_46, %c0_47] : memref<12x1x16xf32, #tpu.memory_space<vmem>>, vector<1x1x16xf32>
    %88 = vector.shape_cast %87 : vector<1x1x16xf32> to vector<1x16xf32>
    %89 = vector.broadcast %88 : vector<1x16xf32> to vector<16x16xf32>
    %90 = arith.mulf %76, %89 : vector<16x16xf32>
    %c0_48 = arith.constant 0 : index
    %c0_49 = arith.constant 0 : index
    %c0_50 = arith.constant 0 : index
    %91 = vector.load %arg9[%c0_48, %c0_49, %c0_50] : memref<12x1x16xf32, #tpu.memory_space<vmem>>, vector<1x1x16xf32>
    %92 = vector.shape_cast %91 : vector<1x1x16xf32> to vector<1x16xf32>
    %93 = vector.broadcast %92 : vector<1x16xf32> to vector<16x16xf32>
    %94 = arith.addf %90, %93 : vector<16x16xf32>
    %cst_51 = arith.constant 0.000000e+00 : f32
    %95 = vector.broadcast %cst_51 : f32 to vector<16x16xf32>
    %96 = arith.maximumf %94, %95 : vector<16x16xf32>
    %97 = tpu.iota {dimensions = array<i32: 0>} : vector<16x1xi32>
    %c8_i32 = arith.constant 8 : i32
    %c0_i32_52 = arith.constant 0 : i32
    %98 = arith.cmpi eq, %c8_i32, %c0_i32_52 : i32
    %c1_i32_53 = arith.constant 1 : i32
    %99 = arith.select %98, %c1_i32_53, %c8_i32 : i32
    %100 = vector.broadcast %99 : i32 to vector<16x1xi32>
    %101 = arith.remsi %97, %100 : vector<16x1xi32>
    %c0_i32_54 = arith.constant 0 : i32
    %102 = vector.broadcast %c0_i32_54 : i32 to vector<16x1xi32>
    %103 = arith.cmpi ne, %101, %102 : vector<16x1xi32>
    %c0_i32_55 = arith.constant 0 : i32
    %104 = vector.broadcast %c0_i32_55 : i32 to vector<16x1xi32>
    %105 = arith.cmpi slt, %101, %104 : vector<16x1xi32>
    %c0_i32_56 = arith.constant 0 : i32
    %106 = arith.cmpi slt, %99, %c0_i32_56 : i32
    %107 = vector.broadcast %106 : i1 to vector<16x1xi1>
    %108 = vector.broadcast %107 : vector<16x1xi1> to vector<16x1xi1>
    %109 = arith.xori %105, %108 : vector<16x1xi1>
    %110 = arith.andi %109, %103 : vector<16x1xi1>
    %111 = vector.broadcast %99 : i32 to vector<16x1xi32>
    %112 = arith.addi %101, %111 : vector<16x1xi32>
    %113 = arith.select %110, %112, %101 : vector<16x1xi1>, vector<16x1xi32>
    %c0_i32_57 = arith.constant 0 : i32
    %114 = vector.broadcast %c0_i32_57 : i32 to vector<16x1xi32>
    %115 = arith.cmpi eq, %113, %114 : vector<16x1xi32>
    %c1_i32_58 = arith.constant 1 : i32
    %116 = tpu.dynamic_rotate %96 by %c1_i32_58 dim 0 : vector<16x16xf32>, i32 -> vector<16x16xf32>
    %cst_59 = arith.constant 0.000000e+00 : f32
    %117 = vector.shape_cast %115 : vector<16x1xi1> to vector<16x1xi1>
    %118 = vector.broadcast %117 : vector<16x1xi1> to vector<16x16xi1>
    %119 = vector.broadcast %cst_59 : f32 to vector<16x16xf32>
    %120 = arith.select %118, %119, %116 : vector<16x16xi1>, vector<16x16xf32>
    %c0_60 = arith.constant 0 : index
    %c0_61 = arith.constant 0 : index
    %c0_62 = arith.constant 0 : index
    %c0_63 = arith.constant 0 : index
    %121 = vector.load %arg7[%c0_60, %c0_61, %c0_62, %c0_63] : memref<12x3x16x16xbf16, #tpu.memory_space<vmem>>, vector<1x1x16x16xbf16>
    %122 = vector.shape_cast %121 : vector<1x1x16x16xbf16> to vector<16x16xbf16>
    %123 = arith.truncf %120 : vector<16x16xf32> to vector<16x16xbf16>
    %cst_64 = arith.constant dense<0.000000e+00> : vector<16x16xf32>
    %124 = tpu.matmul %123, %122, %cst_64 {dimension_numbers = #tpu.dot_dimension_numbers<[1], [0], [0], [1], [0, 0, 1, 1], [], []>} : vector<16x16xbf16>, vector<16x16xbf16>, vector<16x16xf32> -> vector<16x16xf32>
    %c0_65 = arith.constant 0 : index
    %c1_66 = arith.constant 1 : index
    %c0_67 = arith.constant 0 : index
    %c0_68 = arith.constant 0 : index
    %125 = vector.load %arg7[%c0_65, %c1_66, %c0_67, %c0_68] : memref<12x3x16x16xbf16, #tpu.memory_space<vmem>>, vector<1x1x16x16xbf16>
    %126 = vector.shape_cast %125 : vector<1x1x16x16xbf16> to vector<16x16xbf16>
    %127 = arith.truncf %86 : vector<16x16xf32> to vector<16x16xbf16>
    %cst_69 = arith.constant dense<0.000000e+00> : vector<16x16xf32>
    %128 = tpu.matmul %127, %126, %cst_69 {dimension_numbers = #tpu.dot_dimension_numbers<[1], [0], [0], [1], [0, 0, 1, 1], [], []>} : vector<16x16xbf16>, vector<16x16xbf16>, vector<16x16xf32> -> vector<16x16xf32>
    %129 = arith.addf %124, %128 : vector<16x16xf32>
    %c0_70 = arith.constant 0 : index
    %c2_71 = arith.constant 2 : index
    %c0_72 = arith.constant 0 : index
    %c0_73 = arith.constant 0 : index
    %130 = vector.load %arg7[%c0_70, %c2_71, %c0_72, %c0_73] : memref<12x3x16x16xbf16, #tpu.memory_space<vmem>>, vector<1x1x16x16xbf16>
    %131 = vector.shape_cast %130 : vector<1x1x16x16xbf16> to vector<16x16xbf16>
    %132 = arith.truncf %96 : vector<16x16xf32> to vector<16x16xbf16>
    %cst_74 = arith.constant dense<0.000000e+00> : vector<16x16xf32>
    %133 = tpu.matmul %132, %131, %cst_74 {dimension_numbers = #tpu.dot_dimension_numbers<[1], [0], [0], [1], [0, 0, 1, 1], [], []>} : vector<16x16xbf16>, vector<16x16xbf16>, vector<16x16xf32> -> vector<16x16xf32>
    %134 = arith.addf %129, %133 : vector<16x16xf32>
    %c0_75 = arith.constant 0 : index
    %c0_76 = arith.constant 0 : index
    %c0_77 = arith.constant 0 : index
    %135 = vector.load %arg10[%c0_75, %c0_76, %c0_77] : memref<3x16x16xbf16, #tpu.memory_space<vmem>>, vector<1x16x16xbf16>
    %136 = vector.shape_cast %135 : vector<1x16x16xbf16> to vector<16x16xbf16>
    %137 = arith.truncf %75 : vector<16x16xf32> to vector<16x16xbf16>
    %cst_78 = arith.constant dense<0.000000e+00> : vector<16x16xf32>
    %138 = tpu.matmul %137, %136, %cst_78 {dimension_numbers = #tpu.dot_dimension_numbers<[1], [0], [0], [1], [0, 0, 1, 1], [], []>} : vector<16x16xbf16>, vector<16x16xbf16>, vector<16x16xf32> -> vector<16x16xf32>
    %c0_79 = arith.constant 0 : index
    %c0_80 = arith.constant 0 : index
    %c0_81 = arith.constant 0 : index
    %139 = vector.load %arg11[%c0_79, %c0_80, %c0_81] : memref<3x1x16xf32, #tpu.memory_space<vmem>>, vector<1x1x16xf32>
    %140 = vector.shape_cast %139 : vector<1x1x16xf32> to vector<1x16xf32>
    %141 = vector.broadcast %140 : vector<1x16xf32> to vector<16x16xf32>
    %142 = arith.addf %138, %141 : vector<16x16xf32>
    %c1_82 = arith.constant 1 : index
    %c0_83 = arith.constant 0 : index
    %c0_84 = arith.constant 0 : index
    %143 = vector.load %arg8[%c1_82, %c0_83, %c0_84] : memref<12x1x16xf32, #tpu.memory_space<vmem>>, vector<1x1x16xf32>
    %144 = vector.shape_cast %143 : vector<1x1x16xf32> to vector<1x16xf32>
    %145 = vector.broadcast %144 : vector<1x16xf32> to vector<16x16xf32>
    %146 = arith.mulf %134, %145 : vector<16x16xf32>
    %c1_85 = arith.constant 1 : index
    %c0_86 = arith.constant 0 : index
    %c0_87 = arith.constant 0 : index
    %147 = vector.load %arg9[%c1_85, %c0_86, %c0_87] : memref<12x1x16xf32, #tpu.memory_space<vmem>>, vector<1x1x16xf32>
    %148 = vector.shape_cast %147 : vector<1x1x16xf32> to vector<1x16xf32>
    %149 = vector.broadcast %148 : vector<1x16xf32> to vector<16x16xf32>
    %150 = arith.addf %146, %149 : vector<16x16xf32>
    %cst_88 = arith.constant 0.000000e+00 : f32
    %151 = vector.broadcast %cst_88 : f32 to vector<16x16xf32>
    %152 = arith.maximumf %150, %151 : vector<16x16xf32>
    %c1_89 = arith.constant 1 : index
    %c0_90 = arith.constant 0 : index
    %c0_91 = arith.constant 0 : index
    %c0_92 = arith.constant 0 : index
    %153 = vector.load %arg7[%c1_89, %c0_90, %c0_91, %c0_92] : memref<12x3x16x16xbf16, #tpu.memory_space<vmem>>, vector<1x1x16x16xbf16>
    %154 = vector.shape_cast %153 : vector<1x1x16x16xbf16> to vector<16x16xbf16>
    %c1_93 = arith.constant 1 : index
    %c1_94 = arith.constant 1 : index
    %c0_95 = arith.constant 0 : index
    %c0_96 = arith.constant 0 : index
    %155 = vector.load %arg7[%c1_93, %c1_94, %c0_95, %c0_96] : memref<12x3x16x16xbf16, #tpu.memory_space<vmem>>, vector<1x1x16x16xbf16>
    %156 = vector.shape_cast %155 : vector<1x1x16x16xbf16> to vector<16x16xbf16>
    %c1_97 = arith.constant 1 : index
    %c2_98 = arith.constant 2 : index
    %c0_99 = arith.constant 0 : index
    %c0_100 = arith.constant 0 : index
    %157 = vector.load %arg7[%c1_97, %c2_98, %c0_99, %c0_100] : memref<12x3x16x16xbf16, #tpu.memory_space<vmem>>, vector<1x1x16x16xbf16>
    %158 = vector.shape_cast %157 : vector<1x1x16x16xbf16> to vector<16x16xbf16>
    %159 = tpu.iota {dimensions = array<i32: 0>} : vector<16x1xi32>
    %c8_i32_101 = arith.constant 8 : i32
    %c0_i32_102 = arith.constant 0 : i32
    %160 = arith.cmpi eq, %c8_i32_101, %c0_i32_102 : i32
    %c1_i32_103 = arith.constant 1 : i32
    %161 = arith.select %160, %c1_i32_103, %c8_i32_101 : i32
    %162 = vector.broadcast %161 : i32 to vector<16x1xi32>
    %163 = arith.remsi %159, %162 : vector<16x1xi32>
    %c0_i32_104 = arith.constant 0 : i32
    %164 = vector.broadcast %c0_i32_104 : i32 to vector<16x1xi32>
    %165 = arith.cmpi ne, %163, %164 : vector<16x1xi32>
    %c0_i32_105 = arith.constant 0 : i32
    %166 = vector.broadcast %c0_i32_105 : i32 to vector<16x1xi32>
    %167 = arith.cmpi slt, %163, %166 : vector<16x1xi32>
    %c0_i32_106 = arith.constant 0 : i32
    %168 = arith.cmpi slt, %161, %c0_i32_106 : i32
    %169 = vector.broadcast %168 : i1 to vector<16x1xi1>
    %170 = vector.broadcast %169 : vector<16x1xi1> to vector<16x1xi1>
    %171 = arith.xori %167, %170 : vector<16x1xi1>
    %172 = arith.andi %171, %165 : vector<16x1xi1>
    %173 = vector.broadcast %161 : i32 to vector<16x1xi32>
    %174 = arith.addi %163, %173 : vector<16x1xi32>
    %175 = arith.select %172, %174, %163 : vector<16x1xi1>, vector<16x1xi32>
    %c0_i32_107 = arith.constant 0 : i32
    %176 = vector.broadcast %c0_i32_107 : i32 to vector<16x1xi32>
    %177 = arith.cmpi eq, %175, %176 : vector<16x1xi32>
    %c1_i32_108 = arith.constant 1 : i32
    %178 = tpu.dynamic_rotate %152 by %c1_i32_108 dim 0 : vector<16x16xf32>, i32 -> vector<16x16xf32>
    %cst_109 = arith.constant 0.000000e+00 : f32
    %179 = vector.shape_cast %177 : vector<16x1xi1> to vector<16x1xi1>
    %180 = vector.broadcast %179 : vector<16x1xi1> to vector<16x16xi1>
    %181 = vector.broadcast %cst_109 : f32 to vector<16x16xf32>
    %182 = arith.select %180, %181, %178 : vector<16x16xi1>, vector<16x16xf32>
    %183 = arith.truncf %182 : vector<16x16xf32> to vector<16x16xbf16>
    %cst_110 = arith.constant dense<0.000000e+00> : vector<16x16xf32>
    %184 = tpu.matmul %183, %154, %cst_110 {dimension_numbers = #tpu.dot_dimension_numbers<[1], [0], [0], [1], [0, 0, 1, 1], [], []>} : vector<16x16xbf16>, vector<16x16xbf16>, vector<16x16xf32> -> vector<16x16xf32>
    %185 = arith.truncf %152 : vector<16x16xf32> to vector<16x16xbf16>
    %cst_111 = arith.constant dense<0.000000e+00> : vector<16x16xf32>
    %186 = tpu.matmul %185, %156, %cst_111 {dimension_numbers = #tpu.dot_dimension_numbers<[1], [0], [0], [1], [0, 0, 1, 1], [], []>} : vector<16x16xbf16>, vector<16x16xbf16>, vector<16x16xf32> -> vector<16x16xf32>
    %187 = arith.addf %184, %186 : vector<16x16xf32>
    %188 = tpu.iota {dimensions = array<i32: 0>} : vector<16x1xi32>
    %c8_i32_112 = arith.constant 8 : i32
    %c0_i32_113 = arith.constant 0 : i32
    %189 = arith.cmpi eq, %c8_i32_112, %c0_i32_113 : i32
    %c1_i32_114 = arith.constant 1 : i32
    %190 = arith.select %189, %c1_i32_114, %c8_i32_112 : i32
    %191 = vector.broadcast %190 : i32 to vector<16x1xi32>
    %192 = arith.remsi %188, %191 : vector<16x1xi32>
    %c0_i32_115 = arith.constant 0 : i32
    %193 = vector.broadcast %c0_i32_115 : i32 to vector<16x1xi32>
    %194 = arith.cmpi ne, %192, %193 : vector<16x1xi32>
    %c0_i32_116 = arith.constant 0 : i32
    %195 = vector.broadcast %c0_i32_116 : i32 to vector<16x1xi32>
    %196 = arith.cmpi slt, %192, %195 : vector<16x1xi32>
    %c0_i32_117 = arith.constant 0 : i32
    %197 = arith.cmpi slt, %190, %c0_i32_117 : i32
    %198 = vector.broadcast %197 : i1 to vector<16x1xi1>
    %199 = vector.broadcast %198 : vector<16x1xi1> to vector<16x1xi1>
    %200 = arith.xori %196, %199 : vector<16x1xi1>
    %201 = arith.andi %200, %194 : vector<16x1xi1>
    %202 = vector.broadcast %190 : i32 to vector<16x1xi32>
    %203 = arith.addi %192, %202 : vector<16x1xi32>
    %204 = arith.select %201, %203, %192 : vector<16x1xi1>, vector<16x1xi32>
    %c7_i32 = arith.constant 7 : i32
    %205 = vector.broadcast %c7_i32 : i32 to vector<16x1xi32>
    %206 = arith.cmpi eq, %204, %205 : vector<16x1xi32>
    %c15_i32_118 = arith.constant 15 : i32
    %207 = tpu.dynamic_rotate %152 by %c15_i32_118 dim 0 : vector<16x16xf32>, i32 -> vector<16x16xf32>
    %cst_119 = arith.constant 0.000000e+00 : f32
    %208 = vector.shape_cast %206 : vector<16x1xi1> to vector<16x1xi1>
    %209 = vector.broadcast %208 : vector<16x1xi1> to vector<16x16xi1>
    %210 = vector.broadcast %cst_119 : f32 to vector<16x16xf32>
    %211 = arith.select %209, %210, %207 : vector<16x16xi1>, vector<16x16xf32>
    %212 = arith.truncf %211 : vector<16x16xf32> to vector<16x16xbf16>
    %cst_120 = arith.constant dense<0.000000e+00> : vector<16x16xf32>
    %213 = tpu.matmul %212, %158, %cst_120 {dimension_numbers = #tpu.dot_dimension_numbers<[1], [0], [0], [1], [0, 0, 1, 1], [], []>} : vector<16x16xbf16>, vector<16x16xbf16>, vector<16x16xf32> -> vector<16x16xf32>
    %214 = arith.addf %187, %213 : vector<16x16xf32>
    %215 = arith.addf %214, %142 : vector<16x16xf32>
    %c2_121 = arith.constant 2 : index
    %c0_122 = arith.constant 0 : index
    %c0_123 = arith.constant 0 : index
    %216 = vector.load %arg8[%c2_121, %c0_122, %c0_123] : memref<12x1x16xf32, #tpu.memory_space<vmem>>, vector<1x1x16xf32>
    %217 = vector.shape_cast %216 : vector<1x1x16xf32> to vector<1x16xf32>
    %218 = vector.broadcast %217 : vector<1x16xf32> to vector<16x16xf32>
    %219 = arith.mulf %215, %218 : vector<16x16xf32>
    %c2_124 = arith.constant 2 : index
    %c0_125 = arith.constant 0 : index
    %c0_126 = arith.constant 0 : index
    %220 = vector.load %arg9[%c2_124, %c0_125, %c0_126] : memref<12x1x16xf32, #tpu.memory_space<vmem>>, vector<1x1x16xf32>
    %221 = vector.shape_cast %220 : vector<1x1x16xf32> to vector<1x16xf32>
    %222 = vector.broadcast %221 : vector<1x16xf32> to vector<16x16xf32>
    %223 = arith.addf %219, %222 : vector<16x16xf32>
    %cst_127 = arith.constant 0.000000e+00 : f32
    %224 = vector.broadcast %cst_127 : f32 to vector<16x16xf32>
    %225 = arith.maximumf %223, %224 : vector<16x16xf32>
    %c2_128 = arith.constant 2 : index
    %c0_129 = arith.constant 0 : index
    %c0_130 = arith.constant 0 : index
    %c0_131 = arith.constant 0 : index
    %226 = vector.load %arg7[%c2_128, %c0_129, %c0_130, %c0_131] : memref<12x3x16x16xbf16, #tpu.memory_space<vmem>>, vector<1x1x16x16xbf16>
    %227 = vector.shape_cast %226 : vector<1x1x16x16xbf16> to vector<16x16xbf16>
    %c2_132 = arith.constant 2 : index
    %c1_133 = arith.constant 1 : index
    %c0_134 = arith.constant 0 : index
    %c0_135 = arith.constant 0 : index
    %228 = vector.load %arg7[%c2_132, %c1_133, %c0_134, %c0_135] : memref<12x3x16x16xbf16, #tpu.memory_space<vmem>>, vector<1x1x16x16xbf16>
    %229 = vector.shape_cast %228 : vector<1x1x16x16xbf16> to vector<16x16xbf16>
    %c2_136 = arith.constant 2 : index
    %c2_137 = arith.constant 2 : index
    %c0_138 = arith.constant 0 : index
    %c0_139 = arith.constant 0 : index
    %230 = vector.load %arg7[%c2_136, %c2_137, %c0_138, %c0_139] : memref<12x3x16x16xbf16, #tpu.memory_space<vmem>>, vector<1x1x16x16xbf16>
    %231 = vector.shape_cast %230 : vector<1x1x16x16xbf16> to vector<16x16xbf16>
    %232 = tpu.iota {dimensions = array<i32: 0>} : vector<16x1xi32>
    %c8_i32_140 = arith.constant 8 : i32
    %c0_i32_141 = arith.constant 0 : i32
    %233 = arith.cmpi eq, %c8_i32_140, %c0_i32_141 : i32
    %c1_i32_142 = arith.constant 1 : i32
    %234 = arith.select %233, %c1_i32_142, %c8_i32_140 : i32
    %235 = vector.broadcast %234 : i32 to vector<16x1xi32>
    %236 = arith.remsi %232, %235 : vector<16x1xi32>
    %c0_i32_143 = arith.constant 0 : i32
    %237 = vector.broadcast %c0_i32_143 : i32 to vector<16x1xi32>
    %238 = arith.cmpi ne, %236, %237 : vector<16x1xi32>
    %c0_i32_144 = arith.constant 0 : i32
    %239 = vector.broadcast %c0_i32_144 : i32 to vector<16x1xi32>
    %240 = arith.cmpi slt, %236, %239 : vector<16x1xi32>
    %c0_i32_145 = arith.constant 0 : i32
    %241 = arith.cmpi slt, %234, %c0_i32_145 : i32
    %242 = vector.broadcast %241 : i1 to vector<16x1xi1>
    %243 = vector.broadcast %242 : vector<16x1xi1> to vector<16x1xi1>
    %244 = arith.xori %240, %243 : vector<16x1xi1>
    %245 = arith.andi %244, %238 : vector<16x1xi1>
    %246 = vector.broadcast %234 : i32 to vector<16x1xi32>
    %247 = arith.addi %236, %246 : vector<16x1xi32>
    %248 = arith.select %245, %247, %236 : vector<16x1xi1>, vector<16x1xi32>
    %c0_i32_146 = arith.constant 0 : i32
    %249 = vector.broadcast %c0_i32_146 : i32 to vector<16x1xi32>
    %250 = arith.cmpi eq, %248, %249 : vector<16x1xi32>
    %c1_i32_147 = arith.constant 1 : i32
    %251 = tpu.dynamic_rotate %225 by %c1_i32_147 dim 0 : vector<16x16xf32>, i32 -> vector<16x16xf32>
    %cst_148 = arith.constant 0.000000e+00 : f32
    %252 = vector.shape_cast %250 : vector<16x1xi1> to vector<16x1xi1>
    %253 = vector.broadcast %252 : vector<16x1xi1> to vector<16x16xi1>
    %254 = vector.broadcast %cst_148 : f32 to vector<16x16xf32>
    %255 = arith.select %253, %254, %251 : vector<16x16xi1>, vector<16x16xf32>
    %256 = arith.truncf %255 : vector<16x16xf32> to vector<16x16xbf16>
    %cst_149 = arith.constant dense<0.000000e+00> : vector<16x16xf32>
    %257 = tpu.matmul %256, %227, %cst_149 {dimension_numbers = #tpu.dot_dimension_numbers<[1], [0], [0], [1], [0, 0, 1, 1], [], []>} : vector<16x16xbf16>, vector<16x16xbf16>, vector<16x16xf32> -> vector<16x16xf32>
    %258 = arith.truncf %225 : vector<16x16xf32> to vector<16x16xbf16>
    %cst_150 = arith.constant dense<0.000000e+00> : vector<16x16xf32>
    %259 = tpu.matmul %258, %229, %cst_150 {dimension_numbers = #tpu.dot_dimension_numbers<[1], [0], [0], [1], [0, 0, 1, 1], [], []>} : vector<16x16xbf16>, vector<16x16xbf16>, vector<16x16xf32> -> vector<16x16xf32>
    %260 = arith.addf %257, %259 : vector<16x16xf32>
    %261 = tpu.iota {dimensions = array<i32: 0>} : vector<16x1xi32>
    %c8_i32_151 = arith.constant 8 : i32
    %c0_i32_152 = arith.constant 0 : i32
    %262 = arith.cmpi eq, %c8_i32_151, %c0_i32_152 : i32
    %c1_i32_153 = arith.constant 1 : i32
    %263 = arith.select %262, %c1_i32_153, %c8_i32_151 : i32
    %264 = vector.broadcast %263 : i32 to vector<16x1xi32>
    %265 = arith.remsi %261, %264 : vector<16x1xi32>
    %c0_i32_154 = arith.constant 0 : i32
    %266 = vector.broadcast %c0_i32_154 : i32 to vector<16x1xi32>
    %267 = arith.cmpi ne, %265, %266 : vector<16x1xi32>
    %c0_i32_155 = arith.constant 0 : i32
    %268 = vector.broadcast %c0_i32_155 : i32 to vector<16x1xi32>
    %269 = arith.cmpi slt, %265, %268 : vector<16x1xi32>
    %c0_i32_156 = arith.constant 0 : i32
    %270 = arith.cmpi slt, %263, %c0_i32_156 : i32
    %271 = vector.broadcast %270 : i1 to vector<16x1xi1>
    %272 = vector.broadcast %271 : vector<16x1xi1> to vector<16x1xi1>
    %273 = arith.xori %269, %272 : vector<16x1xi1>
    %274 = arith.andi %273, %267 : vector<16x1xi1>
    %275 = vector.broadcast %263 : i32 to vector<16x1xi32>
    %276 = arith.addi %265, %275 : vector<16x1xi32>
    %277 = arith.select %274, %276, %265 : vector<16x1xi1>, vector<16x1xi32>
    %c7_i32_157 = arith.constant 7 : i32
    %278 = vector.broadcast %c7_i32_157 : i32 to vector<16x1xi32>
    %279 = arith.cmpi eq, %277, %278 : vector<16x1xi32>
    %c15_i32_158 = arith.constant 15 : i32
    %280 = tpu.dynamic_rotate %225 by %c15_i32_158 dim 0 : vector<16x16xf32>, i32 -> vector<16x16xf32>
    %cst_159 = arith.constant 0.000000e+00 : f32
    %281 = vector.shape_cast %279 : vector<16x1xi1> to vector<16x1xi1>
    %282 = vector.broadcast %281 : vector<16x1xi1> to vector<16x16xi1>
    %283 = vector.broadcast %cst_159 : f32 to vector<16x16xf32>
    %284 = arith.select %282, %283, %280 : vector<16x16xi1>, vector<16x16xf32>
    %285 = arith.truncf %284 : vector<16x16xf32> to vector<16x16xbf16>
    %cst_160 = arith.constant dense<0.000000e+00> : vector<16x16xf32>
    %286 = tpu.matmul %285, %231, %cst_160 {dimension_numbers = #tpu.dot_dimension_numbers<[1], [0], [0], [1], [0, 0, 1, 1], [], []>} : vector<16x16xbf16>, vector<16x16xbf16>, vector<16x16xf32> -> vector<16x16xf32>
    %287 = arith.addf %260, %286 : vector<16x16xf32>
    %c3 = arith.constant 3 : index
    %c0_161 = arith.constant 0 : index
    %c0_162 = arith.constant 0 : index
    %288 = vector.load %arg8[%c3, %c0_161, %c0_162] : memref<12x1x16xf32, #tpu.memory_space<vmem>>, vector<1x1x16xf32>
    %289 = vector.shape_cast %288 : vector<1x1x16xf32> to vector<1x16xf32>
    %290 = vector.broadcast %289 : vector<1x16xf32> to vector<16x16xf32>
    %291 = arith.mulf %287, %290 : vector<16x16xf32>
    %c3_163 = arith.constant 3 : index
    %c0_164 = arith.constant 0 : index
    %c0_165 = arith.constant 0 : index
    %292 = vector.load %arg9[%c3_163, %c0_164, %c0_165] : memref<12x1x16xf32, #tpu.memory_space<vmem>>, vector<1x1x16xf32>
    %293 = vector.shape_cast %292 : vector<1x1x16xf32> to vector<1x16xf32>
    %294 = vector.broadcast %293 : vector<1x16xf32> to vector<16x16xf32>
    %295 = arith.addf %291, %294 : vector<16x16xf32>
    %cst_166 = arith.constant 0.000000e+00 : f32
    %296 = vector.broadcast %cst_166 : f32 to vector<16x16xf32>
    %297 = arith.maximumf %295, %296 : vector<16x16xf32>
    %c3_167 = arith.constant 3 : index
    %c0_168 = arith.constant 0 : index
    %c0_169 = arith.constant 0 : index
    %c0_170 = arith.constant 0 : index
    %298 = vector.load %arg7[%c3_167, %c0_168, %c0_169, %c0_170] : memref<12x3x16x16xbf16, #tpu.memory_space<vmem>>, vector<1x1x16x16xbf16>
    %299 = vector.shape_cast %298 : vector<1x1x16x16xbf16> to vector<16x16xbf16>
    %c3_171 = arith.constant 3 : index
    %c1_172 = arith.constant 1 : index
    %c0_173 = arith.constant 0 : index
    %c0_174 = arith.constant 0 : index
    %300 = vector.load %arg7[%c3_171, %c1_172, %c0_173, %c0_174] : memref<12x3x16x16xbf16, #tpu.memory_space<vmem>>, vector<1x1x16x16xbf16>
    %301 = vector.shape_cast %300 : vector<1x1x16x16xbf16> to vector<16x16xbf16>
    %c3_175 = arith.constant 3 : index
    %c2_176 = arith.constant 2 : index
    %c0_177 = arith.constant 0 : index
    %c0_178 = arith.constant 0 : index
    %302 = vector.load %arg7[%c3_175, %c2_176, %c0_177, %c0_178] : memref<12x3x16x16xbf16, #tpu.memory_space<vmem>>, vector<1x1x16x16xbf16>
    %303 = vector.shape_cast %302 : vector<1x1x16x16xbf16> to vector<16x16xbf16>
    %304 = tpu.iota {dimensions = array<i32: 0>} : vector<16x1xi32>
    %c8_i32_179 = arith.constant 8 : i32
    %c0_i32_180 = arith.constant 0 : i32
    %305 = arith.cmpi eq, %c8_i32_179, %c0_i32_180 : i32
    %c1_i32_181 = arith.constant 1 : i32
    %306 = arith.select %305, %c1_i32_181, %c8_i32_179 : i32
    %307 = vector.broadcast %306 : i32 to vector<16x1xi32>
    %308 = arith.remsi %304, %307 : vector<16x1xi32>
    %c0_i32_182 = arith.constant 0 : i32
    %309 = vector.broadcast %c0_i32_182 : i32 to vector<16x1xi32>
    %310 = arith.cmpi ne, %308, %309 : vector<16x1xi32>
    %c0_i32_183 = arith.constant 0 : i32
    %311 = vector.broadcast %c0_i32_183 : i32 to vector<16x1xi32>
    %312 = arith.cmpi slt, %308, %311 : vector<16x1xi32>
    %c0_i32_184 = arith.constant 0 : i32
    %313 = arith.cmpi slt, %306, %c0_i32_184 : i32
    %314 = vector.broadcast %313 : i1 to vector<16x1xi1>
    %315 = vector.broadcast %314 : vector<16x1xi1> to vector<16x1xi1>
    %316 = arith.xori %312, %315 : vector<16x1xi1>
    %317 = arith.andi %316, %310 : vector<16x1xi1>
    %318 = vector.broadcast %306 : i32 to vector<16x1xi32>
    %319 = arith.addi %308, %318 : vector<16x1xi32>
    %320 = arith.select %317, %319, %308 : vector<16x1xi1>, vector<16x1xi32>
    %c0_i32_185 = arith.constant 0 : i32
    %321 = vector.broadcast %c0_i32_185 : i32 to vector<16x1xi32>
    %322 = arith.cmpi eq, %320, %321 : vector<16x1xi32>
    %c1_i32_186 = arith.constant 1 : i32
    %323 = tpu.dynamic_rotate %297 by %c1_i32_186 dim 0 : vector<16x16xf32>, i32 -> vector<16x16xf32>
    %cst_187 = arith.constant 0.000000e+00 : f32
    %324 = vector.shape_cast %322 : vector<16x1xi1> to vector<16x1xi1>
    %325 = vector.broadcast %324 : vector<16x1xi1> to vector<16x16xi1>
    %326 = vector.broadcast %cst_187 : f32 to vector<16x16xf32>
    %327 = arith.select %325, %326, %323 : vector<16x16xi1>, vector<16x16xf32>
    %328 = arith.truncf %327 : vector<16x16xf32> to vector<16x16xbf16>
    %cst_188 = arith.constant dense<0.000000e+00> : vector<16x16xf32>
    %329 = tpu.matmul %328, %299, %cst_188 {dimension_numbers = #tpu.dot_dimension_numbers<[1], [0], [0], [1], [0, 0, 1, 1], [], []>} : vector<16x16xbf16>, vector<16x16xbf16>, vector<16x16xf32> -> vector<16x16xf32>
    %330 = arith.truncf %297 : vector<16x16xf32> to vector<16x16xbf16>
    %cst_189 = arith.constant dense<0.000000e+00> : vector<16x16xf32>
    %331 = tpu.matmul %330, %301, %cst_189 {dimension_numbers = #tpu.dot_dimension_numbers<[1], [0], [0], [1], [0, 0, 1, 1], [], []>} : vector<16x16xbf16>, vector<16x16xbf16>, vector<16x16xf32> -> vector<16x16xf32>
    %332 = arith.addf %329, %331 : vector<16x16xf32>
    %333 = tpu.iota {dimensions = array<i32: 0>} : vector<16x1xi32>
    %c8_i32_190 = arith.constant 8 : i32
    %c0_i32_191 = arith.constant 0 : i32
    %334 = arith.cmpi eq, %c8_i32_190, %c0_i32_191 : i32
    %c1_i32_192 = arith.constant 1 : i32
    %335 = arith.select %334, %c1_i32_192, %c8_i32_190 : i32
    %336 = vector.broadcast %335 : i32 to vector<16x1xi32>
    %337 = arith.remsi %333, %336 : vector<16x1xi32>
    %c0_i32_193 = arith.constant 0 : i32
    %338 = vector.broadcast %c0_i32_193 : i32 to vector<16x1xi32>
    %339 = arith.cmpi ne, %337, %338 : vector<16x1xi32>
    %c0_i32_194 = arith.constant 0 : i32
    %340 = vector.broadcast %c0_i32_194 : i32 to vector<16x1xi32>
    %341 = arith.cmpi slt, %337, %340 : vector<16x1xi32>
    %c0_i32_195 = arith.constant 0 : i32
    %342 = arith.cmpi slt, %335, %c0_i32_195 : i32
    %343 = vector.broadcast %342 : i1 to vector<16x1xi1>
    %344 = vector.broadcast %343 : vector<16x1xi1> to vector<16x1xi1>
    %345 = arith.xori %341, %344 : vector<16x1xi1>
    %346 = arith.andi %345, %339 : vector<16x1xi1>
    %347 = vector.broadcast %335 : i32 to vector<16x1xi32>
    %348 = arith.addi %337, %347 : vector<16x1xi32>
    %349 = arith.select %346, %348, %337 : vector<16x1xi1>, vector<16x1xi32>
    %c7_i32_196 = arith.constant 7 : i32
    %350 = vector.broadcast %c7_i32_196 : i32 to vector<16x1xi32>
    %351 = arith.cmpi eq, %349, %350 : vector<16x1xi32>
    %c15_i32_197 = arith.constant 15 : i32
    %352 = tpu.dynamic_rotate %297 by %c15_i32_197 dim 0 : vector<16x16xf32>, i32 -> vector<16x16xf32>
    %cst_198 = arith.constant 0.000000e+00 : f32
    %353 = vector.shape_cast %351 : vector<16x1xi1> to vector<16x1xi1>
    %354 = vector.broadcast %353 : vector<16x1xi1> to vector<16x16xi1>
    %355 = vector.broadcast %cst_198 : f32 to vector<16x16xf32>
    %356 = arith.select %354, %355, %352 : vector<16x16xi1>, vector<16x16xf32>
    %357 = arith.truncf %356 : vector<16x16xf32> to vector<16x16xbf16>
    %cst_199 = arith.constant dense<0.000000e+00> : vector<16x16xf32>
    %358 = tpu.matmul %357, %303, %cst_199 {dimension_numbers = #tpu.dot_dimension_numbers<[1], [0], [0], [1], [0, 0, 1, 1], [], []>} : vector<16x16xbf16>, vector<16x16xbf16>, vector<16x16xf32> -> vector<16x16xf32>
    %359 = arith.addf %332, %358 : vector<16x16xf32>
    %360 = arith.addf %359, %215 : vector<16x16xf32>
    %c0_200 = arith.constant 0 : index
    %c0_201 = arith.constant 0 : index
    %361 = vector.load %arg15[%c0_200, %c0_201] : memref<32x16xf32, #tpu.memory_space<vmem>>, vector<16x16xf32>
    tpu.vector_store %arg15[%c0_200, %c0_201], %360 {strides = array<i32>} : memref<32x16xf32, #tpu.memory_space<vmem>>, vector<16x16xf32>,
    %c0_202 = arith.constant 0 : index
    %c0_203 = arith.constant 0 : index
    %362 = tpu.strided_load %arg15[%c0_202, %c0_203] {strides = array<i32: 2, 1>} : memref<32x16xf32, #tpu.memory_space<vmem>>, vector<8x16xf32>
    %c1_204 = arith.constant 1 : index
    %c0_205 = arith.constant 0 : index
    %363 = tpu.strided_load %arg15[%c1_204, %c0_205] {strides = array<i32: 2, 1>} : memref<32x16xf32, #tpu.memory_space<vmem>>, vector<8x16xf32>
    %c4 = arith.constant 4 : index
    %c0_206 = arith.constant 0 : index
    %c0_207 = arith.constant 0 : index
    %364 = vector.load %arg8[%c4, %c0_206, %c0_207] : memref<12x1x16xf32, #tpu.memory_space<vmem>>, vector<1x1x16xf32>
    %365 = vector.shape_cast %364 : vector<1x1x16xf32> to vector<1x16xf32>
    %366 = vector.broadcast %365 : vector<1x16xf32> to vector<8x16xf32>
    %367 = arith.mulf %362, %366 : vector<8x16xf32>
    %c4_208 = arith.constant 4 : index
    %c0_209 = arith.constant 0 : index
    %c0_210 = arith.constant 0 : index
    %368 = vector.load %arg9[%c4_208, %c0_209, %c0_210] : memref<12x1x16xf32, #tpu.memory_space<vmem>>, vector<1x1x16xf32>
    %369 = vector.shape_cast %368 : vector<1x1x16xf32> to vector<1x16xf32>
    %370 = vector.broadcast %369 : vector<1x16xf32> to vector<8x16xf32>
    %371 = arith.addf %367, %370 : vector<8x16xf32>
    %cst_211 = arith.constant 0.000000e+00 : f32
    %372 = vector.broadcast %cst_211 : f32 to vector<8x16xf32>
    %373 = arith.maximumf %371, %372 : vector<8x16xf32>
    %c4_212 = arith.constant 4 : index
    %c0_213 = arith.constant 0 : index
    %c0_214 = arith.constant 0 : index
    %374 = vector.load %arg8[%c4_212, %c0_213, %c0_214] : memref<12x1x16xf32, #tpu.memory_space<vmem>>, vector<1x1x16xf32>
    %375 = vector.shape_cast %374 : vector<1x1x16xf32> to vector<1x16xf32>
    %376 = vector.broadcast %375 : vector<1x16xf32> to vector<8x16xf32>
    %377 = arith.mulf %363, %376 : vector<8x16xf32>
    %c4_215 = arith.constant 4 : index
    %c0_216 = arith.constant 0 : index
    %c0_217 = arith.constant 0 : index
    %378 = vector.load %arg9[%c4_215, %c0_216, %c0_217] : memref<12x1x16xf32, #tpu.memory_space<vmem>>, vector<1x1x16xf32>
    %379 = vector.shape_cast %378 : vector<1x1x16xf32> to vector<1x16xf32>
    %380 = vector.broadcast %379 : vector<1x16xf32> to vector<8x16xf32>
    %381 = arith.addf %377, %380 : vector<8x16xf32>
    %cst_218 = arith.constant 0.000000e+00 : f32
    %382 = vector.broadcast %cst_218 : f32 to vector<8x16xf32>
    %383 = arith.maximumf %381, %382 : vector<8x16xf32>
    %384 = tpu.iota {dimensions = array<i32: 0>} : vector<8x1xi32>
    %c4_i32 = arith.constant 4 : i32
    %c0_i32_219 = arith.constant 0 : i32
    %385 = arith.cmpi eq, %c4_i32, %c0_i32_219 : i32
    %c1_i32_220 = arith.constant 1 : i32
    %386 = arith.select %385, %c1_i32_220, %c4_i32 : i32
    %387 = vector.broadcast %386 : i32 to vector<8x1xi32>
    %388 = arith.remsi %384, %387 : vector<8x1xi32>
    %c0_i32_221 = arith.constant 0 : i32
    %389 = vector.broadcast %c0_i32_221 : i32 to vector<8x1xi32>
    %390 = arith.cmpi ne, %388, %389 : vector<8x1xi32>
    %c0_i32_222 = arith.constant 0 : i32
    %391 = vector.broadcast %c0_i32_222 : i32 to vector<8x1xi32>
    %392 = arith.cmpi slt, %388, %391 : vector<8x1xi32>
    %c0_i32_223 = arith.constant 0 : i32
    %393 = arith.cmpi slt, %386, %c0_i32_223 : i32
    %394 = vector.broadcast %393 : i1 to vector<8x1xi1>
    %395 = vector.broadcast %394 : vector<8x1xi1> to vector<8x1xi1>
    %396 = arith.xori %392, %395 : vector<8x1xi1>
    %397 = arith.andi %396, %390 : vector<8x1xi1>
    %398 = vector.broadcast %386 : i32 to vector<8x1xi32>
    %399 = arith.addi %388, %398 : vector<8x1xi32>
    %400 = arith.select %397, %399, %388 : vector<8x1xi1>, vector<8x1xi32>
    %c0_i32_224 = arith.constant 0 : i32
    %401 = vector.broadcast %c0_i32_224 : i32 to vector<8x1xi32>
    %402 = arith.cmpi eq, %400, %401 : vector<8x1xi32>
    %c1_i32_225 = arith.constant 1 : i32
    %403 = tpu.dynamic_rotate %383 by %c1_i32_225 dim 0 : vector<8x16xf32>, i32 -> vector<8x16xf32>
    %cst_226 = arith.constant 0.000000e+00 : f32
    %404 = vector.shape_cast %402 : vector<8x1xi1> to vector<8x1xi1>
    %405 = vector.broadcast %404 : vector<8x1xi1> to vector<8x16xi1>
    %406 = vector.broadcast %cst_226 : f32 to vector<8x16xf32>
    %407 = arith.select %405, %406, %403 : vector<8x16xi1>, vector<8x16xf32>
    %c4_227 = arith.constant 4 : index
    %c0_228 = arith.constant 0 : index
    %c0_229 = arith.constant 0 : index
    %c0_230 = arith.constant 0 : index
    %408 = vector.load %arg7[%c4_227, %c0_228, %c0_229, %c0_230] : memref<12x3x16x16xbf16, #tpu.memory_space<vmem>>, vector<1x1x16x16xbf16>
    %409 = vector.shape_cast %408 : vector<1x1x16x16xbf16> to vector<16x16xbf16>
    %410 = arith.truncf %407 : vector<8x16xf32> to vector<8x16xbf16>
    %cst_231 = arith.constant dense<0.000000e+00> : vector<8x16xf32>
    %411 = tpu.matmul %410, %409, %cst_231 {dimension_numbers = #tpu.dot_dimension_numbers<[1], [0], [0], [1], [0, 0, 1, 1], [], []>} : vector<8x16xbf16>, vector<16x16xbf16>, vector<8x16xf32> -> vector<8x16xf32>
    %c4_232 = arith.constant 4 : index
    %c1_233 = arith.constant 1 : index
    %c0_234 = arith.constant 0 : index
    %c0_235 = arith.constant 0 : index
    %412 = vector.load %arg7[%c4_232, %c1_233, %c0_234, %c0_235] : memref<12x3x16x16xbf16, #tpu.memory_space<vmem>>, vector<1x1x16x16xbf16>
    %413 = vector.shape_cast %412 : vector<1x1x16x16xbf16> to vector<16x16xbf16>
    %414 = arith.truncf %373 : vector<8x16xf32> to vector<8x16xbf16>
    %cst_236 = arith.constant dense<0.000000e+00> : vector<8x16xf32>
    %415 = tpu.matmul %414, %413, %cst_236 {dimension_numbers = #tpu.dot_dimension_numbers<[1], [0], [0], [1], [0, 0, 1, 1], [], []>} : vector<8x16xbf16>, vector<16x16xbf16>, vector<8x16xf32> -> vector<8x16xf32>
    %416 = arith.addf %411, %415 : vector<8x16xf32>
    %c4_237 = arith.constant 4 : index
    %c2_238 = arith.constant 2 : index
    %c0_239 = arith.constant 0 : index
    %c0_240 = arith.constant 0 : index
    %417 = vector.load %arg7[%c4_237, %c2_238, %c0_239, %c0_240] : memref<12x3x16x16xbf16, #tpu.memory_space<vmem>>, vector<1x1x16x16xbf16>
    %418 = vector.shape_cast %417 : vector<1x1x16x16xbf16> to vector<16x16xbf16>
    %419 = arith.truncf %383 : vector<8x16xf32> to vector<8x16xbf16>
    %cst_241 = arith.constant dense<0.000000e+00> : vector<8x16xf32>
    %420 = tpu.matmul %419, %418, %cst_241 {dimension_numbers = #tpu.dot_dimension_numbers<[1], [0], [0], [1], [0, 0, 1, 1], [], []>} : vector<8x16xbf16>, vector<16x16xbf16>, vector<8x16xf32> -> vector<8x16xf32>
    %421 = arith.addf %416, %420 : vector<8x16xf32>
    %c1_242 = arith.constant 1 : index
    %c0_243 = arith.constant 0 : index
    %c0_244 = arith.constant 0 : index
    %422 = vector.load %arg10[%c1_242, %c0_243, %c0_244] : memref<3x16x16xbf16, #tpu.memory_space<vmem>>, vector<1x16x16xbf16>
    %423 = vector.shape_cast %422 : vector<1x16x16xbf16> to vector<16x16xbf16>
    %424 = arith.truncf %362 : vector<8x16xf32> to vector<8x16xbf16>
    %cst_245 = arith.constant dense<0.000000e+00> : vector<8x16xf32>
    %425 = tpu.matmul %424, %423, %cst_245 {dimension_numbers = #tpu.dot_dimension_numbers<[1], [0], [0], [1], [0, 0, 1, 1], [], []>} : vector<8x16xbf16>, vector<16x16xbf16>, vector<8x16xf32> -> vector<8x16xf32>
    %c1_246 = arith.constant 1 : index
    %c0_247 = arith.constant 0 : index
    %c0_248 = arith.constant 0 : index
    %426 = vector.load %arg11[%c1_246, %c0_247, %c0_248] : memref<3x1x16xf32, #tpu.memory_space<vmem>>, vector<1x1x16xf32>
    %427 = vector.shape_cast %426 : vector<1x1x16xf32> to vector<1x16xf32>
    %428 = vector.broadcast %427 : vector<1x16xf32> to vector<8x16xf32>
    %429 = arith.addf %425, %428 : vector<8x16xf32>
    %c5 = arith.constant 5 : index
    %c0_249 = arith.constant 0 : index
    %c0_250 = arith.constant 0 : index
    %430 = vector.load %arg8[%c5, %c0_249, %c0_250] : memref<12x1x16xf32, #tpu.memory_space<vmem>>, vector<1x1x16xf32>
    %431 = vector.shape_cast %430 : vector<1x1x16xf32> to vector<1x16xf32>
    %432 = vector.broadcast %431 : vector<1x16xf32> to vector<8x16xf32>
    %433 = arith.mulf %421, %432 : vector<8x16xf32>
    %c5_251 = arith.constant 5 : index
    %c0_252 = arith.constant 0 : index
    %c0_253 = arith.constant 0 : index
    %434 = vector.load %arg9[%c5_251, %c0_252, %c0_253] : memref<12x1x16xf32, #tpu.memory_space<vmem>>, vector<1x1x16xf32>
    %435 = vector.shape_cast %434 : vector<1x1x16xf32> to vector<1x16xf32>
    %436 = vector.broadcast %435 : vector<1x16xf32> to vector<8x16xf32>
    %437 = arith.addf %433, %436 : vector<8x16xf32>
    %cst_254 = arith.constant 0.000000e+00 : f32
    %438 = vector.broadcast %cst_254 : f32 to vector<8x16xf32>
    %439 = arith.maximumf %437, %438 : vector<8x16xf32>
    %c5_255 = arith.constant 5 : index
    %c0_256 = arith.constant 0 : index
    %c0_257 = arith.constant 0 : index
    %c0_258 = arith.constant 0 : index
    %440 = vector.load %arg7[%c5_255, %c0_256, %c0_257, %c0_258] : memref<12x3x16x16xbf16, #tpu.memory_space<vmem>>, vector<1x1x16x16xbf16>
    %441 = vector.shape_cast %440 : vector<1x1x16x16xbf16> to vector<16x16xbf16>
    %c5_259 = arith.constant 5 : index
    %c1_260 = arith.constant 1 : index
    %c0_261 = arith.constant 0 : index
    %c0_262 = arith.constant 0 : index
    %442 = vector.load %arg7[%c5_259, %c1_260, %c0_261, %c0_262] : memref<12x3x16x16xbf16, #tpu.memory_space<vmem>>, vector<1x1x16x16xbf16>
    %443 = vector.shape_cast %442 : vector<1x1x16x16xbf16> to vector<16x16xbf16>
    %c5_263 = arith.constant 5 : index
    %c2_264 = arith.constant 2 : index
    %c0_265 = arith.constant 0 : index
    %c0_266 = arith.constant 0 : index
    %444 = vector.load %arg7[%c5_263, %c2_264, %c0_265, %c0_266] : memref<12x3x16x16xbf16, #tpu.memory_space<vmem>>, vector<1x1x16x16xbf16>
    %445 = vector.shape_cast %444 : vector<1x1x16x16xbf16> to vector<16x16xbf16>
    %446 = tpu.iota {dimensions = array<i32: 0>} : vector<8x1xi32>
    %c4_i32_267 = arith.constant 4 : i32
    %c0_i32_268 = arith.constant 0 : i32
    %447 = arith.cmpi eq, %c4_i32_267, %c0_i32_268 : i32
    %c1_i32_269 = arith.constant 1 : i32
    %448 = arith.select %447, %c1_i32_269, %c4_i32_267 : i32
    %449 = vector.broadcast %448 : i32 to vector<8x1xi32>
    %450 = arith.remsi %446, %449 : vector<8x1xi32>
    %c0_i32_270 = arith.constant 0 : i32
    %451 = vector.broadcast %c0_i32_270 : i32 to vector<8x1xi32>
    %452 = arith.cmpi ne, %450, %451 : vector<8x1xi32>
    %c0_i32_271 = arith.constant 0 : i32
    %453 = vector.broadcast %c0_i32_271 : i32 to vector<8x1xi32>
    %454 = arith.cmpi slt, %450, %453 : vector<8x1xi32>
    %c0_i32_272 = arith.constant 0 : i32
    %455 = arith.cmpi slt, %448, %c0_i32_272 : i32
    %456 = vector.broadcast %455 : i1 to vector<8x1xi1>
    %457 = vector.broadcast %456 : vector<8x1xi1> to vector<8x1xi1>
    %458 = arith.xori %454, %457 : vector<8x1xi1>
    %459 = arith.andi %458, %452 : vector<8x1xi1>
    %460 = vector.broadcast %448 : i32 to vector<8x1xi32>
    %461 = arith.addi %450, %460 : vector<8x1xi32>
    %462 = arith.select %459, %461, %450 : vector<8x1xi1>, vector<8x1xi32>
    %c0_i32_273 = arith.constant 0 : i32
    %463 = vector.broadcast %c0_i32_273 : i32 to vector<8x1xi32>
    %464 = arith.cmpi eq, %462, %463 : vector<8x1xi32>
    %c1_i32_274 = arith.constant 1 : i32
    %465 = tpu.dynamic_rotate %439 by %c1_i32_274 dim 0 : vector<8x16xf32>, i32 -> vector<8x16xf32>
    %cst_275 = arith.constant 0.000000e+00 : f32
    %466 = vector.shape_cast %464 : vector<8x1xi1> to vector<8x1xi1>
    %467 = vector.broadcast %466 : vector<8x1xi1> to vector<8x16xi1>
    %468 = vector.broadcast %cst_275 : f32 to vector<8x16xf32>
    %469 = arith.select %467, %468, %465 : vector<8x16xi1>, vector<8x16xf32>
    %470 = arith.truncf %469 : vector<8x16xf32> to vector<8x16xbf16>
    %cst_276 = arith.constant dense<0.000000e+00> : vector<8x16xf32>
    %471 = tpu.matmul %470, %441, %cst_276 {dimension_numbers = #tpu.dot_dimension_numbers<[1], [0], [0], [1], [0, 0, 1, 1], [], []>} : vector<8x16xbf16>, vector<16x16xbf16>, vector<8x16xf32> -> vector<8x16xf32>
    %472 = arith.truncf %439 : vector<8x16xf32> to vector<8x16xbf16>
    %cst_277 = arith.constant dense<0.000000e+00> : vector<8x16xf32>
    %473 = tpu.matmul %472, %443, %cst_277 {dimension_numbers = #tpu.dot_dimension_numbers<[1], [0], [0], [1], [0, 0, 1, 1], [], []>} : vector<8x16xbf16>, vector<16x16xbf16>, vector<8x16xf32> -> vector<8x16xf32>
    %474 = arith.addf %471, %473 : vector<8x16xf32>
    %475 = tpu.iota {dimensions = array<i32: 0>} : vector<8x1xi32>
    %c4_i32_278 = arith.constant 4 : i32
    %c0_i32_279 = arith.constant 0 : i32
    %476 = arith.cmpi eq, %c4_i32_278, %c0_i32_279 : i32
    %c1_i32_280 = arith.constant 1 : i32
    %477 = arith.select %476, %c1_i32_280, %c4_i32_278 : i32
    %478 = vector.broadcast %477 : i32 to vector<8x1xi32>
    %479 = arith.remsi %475, %478 : vector<8x1xi32>
    %c0_i32_281 = arith.constant 0 : i32
    %480 = vector.broadcast %c0_i32_281 : i32 to vector<8x1xi32>
    %481 = arith.cmpi ne, %479, %480 : vector<8x1xi32>
    %c0_i32_282 = arith.constant 0 : i32
    %482 = vector.broadcast %c0_i32_282 : i32 to vector<8x1xi32>
    %483 = arith.cmpi slt, %479, %482 : vector<8x1xi32>
    %c0_i32_283 = arith.constant 0 : i32
    %484 = arith.cmpi slt, %477, %c0_i32_283 : i32
    %485 = vector.broadcast %484 : i1 to vector<8x1xi1>
    %486 = vector.broadcast %485 : vector<8x1xi1> to vector<8x1xi1>
    %487 = arith.xori %483, %486 : vector<8x1xi1>
    %488 = arith.andi %487, %481 : vector<8x1xi1>
    %489 = vector.broadcast %477 : i32 to vector<8x1xi32>
    %490 = arith.addi %479, %489 : vector<8x1xi32>
    %491 = arith.select %488, %490, %479 : vector<8x1xi1>, vector<8x1xi32>
    %c3_i32 = arith.constant 3 : i32
    %492 = vector.broadcast %c3_i32 : i32 to vector<8x1xi32>
    %493 = arith.cmpi eq, %491, %492 : vector<8x1xi32>
    %c7_i32_284 = arith.constant 7 : i32
    %494 = tpu.dynamic_rotate %439 by %c7_i32_284 dim 0 : vector<8x16xf32>, i32 -> vector<8x16xf32>
    %cst_285 = arith.constant 0.000000e+00 : f32
    %495 = vector.shape_cast %493 : vector<8x1xi1> to vector<8x1xi1>
    %496 = vector.broadcast %495 : vector<8x1xi1> to vector<8x16xi1>
    %497 = vector.broadcast %cst_285 : f32 to vector<8x16xf32>
    %498 = arith.select %496, %497, %494 : vector<8x16xi1>, vector<8x16xf32>
    %499 = arith.truncf %498 : vector<8x16xf32> to vector<8x16xbf16>
    %cst_286 = arith.constant dense<0.000000e+00> : vector<8x16xf32>
    %500 = tpu.matmul %499, %445, %cst_286 {dimension_numbers = #tpu.dot_dimension_numbers<[1], [0], [0], [1], [0, 0, 1, 1], [], []>} : vector<8x16xbf16>, vector<16x16xbf16>, vector<8x16xf32> -> vector<8x16xf32>
    %501 = arith.addf %474, %500 : vector<8x16xf32>
    %502 = arith.addf %501, %429 : vector<8x16xf32>
    %c6 = arith.constant 6 : index
    %c0_287 = arith.constant 0 : index
    %c0_288 = arith.constant 0 : index
    %503 = vector.load %arg8[%c6, %c0_287, %c0_288] : memref<12x1x16xf32, #tpu.memory_space<vmem>>, vector<1x1x16xf32>
    %504 = vector.shape_cast %503 : vector<1x1x16xf32> to vector<1x16xf32>
    %505 = vector.broadcast %504 : vector<1x16xf32> to vector<8x16xf32>
    %506 = arith.mulf %502, %505 : vector<8x16xf32>
    %c6_289 = arith.constant 6 : index
    %c0_290 = arith.constant 0 : index
    %c0_291 = arith.constant 0 : index
    %507 = vector.load %arg9[%c6_289, %c0_290, %c0_291] : memref<12x1x16xf32, #tpu.memory_space<vmem>>, vector<1x1x16xf32>
    %508 = vector.shape_cast %507 : vector<1x1x16xf32> to vector<1x16xf32>
    %509 = vector.broadcast %508 : vector<1x16xf32> to vector<8x16xf32>
    %510 = arith.addf %506, %509 : vector<8x16xf32>
    %cst_292 = arith.constant 0.000000e+00 : f32
    %511 = vector.broadcast %cst_292 : f32 to vector<8x16xf32>
    %512 = arith.maximumf %510, %511 : vector<8x16xf32>
    %c6_293 = arith.constant 6 : index
    %c0_294 = arith.constant 0 : index
    %c0_295 = arith.constant 0 : index
    %c0_296 = arith.constant 0 : index
    %513 = vector.load %arg7[%c6_293, %c0_294, %c0_295, %c0_296] : memref<12x3x16x16xbf16, #tpu.memory_space<vmem>>, vector<1x1x16x16xbf16>
    %514 = vector.shape_cast %513 : vector<1x1x16x16xbf16> to vector<16x16xbf16>
    %c6_297 = arith.constant 6 : index
    %c1_298 = arith.constant 1 : index
    %c0_299 = arith.constant 0 : index
    %c0_300 = arith.constant 0 : index
    %515 = vector.load %arg7[%c6_297, %c1_298, %c0_299, %c0_300] : memref<12x3x16x16xbf16, #tpu.memory_space<vmem>>, vector<1x1x16x16xbf16>
    %516 = vector.shape_cast %515 : vector<1x1x16x16xbf16> to vector<16x16xbf16>
    %c6_301 = arith.constant 6 : index
    %c2_302 = arith.constant 2 : index
    %c0_303 = arith.constant 0 : index
    %c0_304 = arith.constant 0 : index
    %517 = vector.load %arg7[%c6_301, %c2_302, %c0_303, %c0_304] : memref<12x3x16x16xbf16, #tpu.memory_space<vmem>>, vector<1x1x16x16xbf16>
    %518 = vector.shape_cast %517 : vector<1x1x16x16xbf16> to vector<16x16xbf16>
    %519 = tpu.iota {dimensions = array<i32: 0>} : vector<8x1xi32>
    %c4_i32_305 = arith.constant 4 : i32
    %c0_i32_306 = arith.constant 0 : i32
    %520 = arith.cmpi eq, %c4_i32_305, %c0_i32_306 : i32
    %c1_i32_307 = arith.constant 1 : i32
    %521 = arith.select %520, %c1_i32_307, %c4_i32_305 : i32
    %522 = vector.broadcast %521 : i32 to vector<8x1xi32>
    %523 = arith.remsi %519, %522 : vector<8x1xi32>
    %c0_i32_308 = arith.constant 0 : i32
    %524 = vector.broadcast %c0_i32_308 : i32 to vector<8x1xi32>
    %525 = arith.cmpi ne, %523, %524 : vector<8x1xi32>
    %c0_i32_309 = arith.constant 0 : i32
    %526 = vector.broadcast %c0_i32_309 : i32 to vector<8x1xi32>
    %527 = arith.cmpi slt, %523, %526 : vector<8x1xi32>
    %c0_i32_310 = arith.constant 0 : i32
    %528 = arith.cmpi slt, %521, %c0_i32_310 : i32
    %529 = vector.broadcast %528 : i1 to vector<8x1xi1>
    %530 = vector.broadcast %529 : vector<8x1xi1> to vector<8x1xi1>
    %531 = arith.xori %527, %530 : vector<8x1xi1>
    %532 = arith.andi %531, %525 : vector<8x1xi1>
    %533 = vector.broadcast %521 : i32 to vector<8x1xi32>
    %534 = arith.addi %523, %533 : vector<8x1xi32>
    %535 = arith.select %532, %534, %523 : vector<8x1xi1>, vector<8x1xi32>
    %c0_i32_311 = arith.constant 0 : i32
    %536 = vector.broadcast %c0_i32_311 : i32 to vector<8x1xi32>
    %537 = arith.cmpi eq, %535, %536 : vector<8x1xi32>
    %c1_i32_312 = arith.constant 1 : i32
    %538 = tpu.dynamic_rotate %512 by %c1_i32_312 dim 0 : vector<8x16xf32>, i32 -> vector<8x16xf32>
    %cst_313 = arith.constant 0.000000e+00 : f32
    %539 = vector.shape_cast %537 : vector<8x1xi1> to vector<8x1xi1>
    %540 = vector.broadcast %539 : vector<8x1xi1> to vector<8x16xi1>
    %541 = vector.broadcast %cst_313 : f32 to vector<8x16xf32>
    %542 = arith.select %540, %541, %538 : vector<8x16xi1>, vector<8x16xf32>
    %543 = arith.truncf %542 : vector<8x16xf32> to vector<8x16xbf16>
    %cst_314 = arith.constant dense<0.000000e+00> : vector<8x16xf32>
    %544 = tpu.matmul %543, %514, %cst_314 {dimension_numbers = #tpu.dot_dimension_numbers<[1], [0], [0], [1], [0, 0, 1, 1], [], []>} : vector<8x16xbf16>, vector<16x16xbf16>, vector<8x16xf32> -> vector<8x16xf32>
    %545 = arith.truncf %512 : vector<8x16xf32> to vector<8x16xbf16>
    %cst_315 = arith.constant dense<0.000000e+00> : vector<8x16xf32>
    %546 = tpu.matmul %545, %516, %cst_315 {dimension_numbers = #tpu.dot_dimension_numbers<[1], [0], [0], [1], [0, 0, 1, 1], [], []>} : vector<8x16xbf16>, vector<16x16xbf16>, vector<8x16xf32> -> vector<8x16xf32>
    %547 = arith.addf %544, %546 : vector<8x16xf32>
    %548 = tpu.iota {dimensions = array<i32: 0>} : vector<8x1xi32>
    %c4_i32_316 = arith.constant 4 : i32
    %c0_i32_317 = arith.constant 0 : i32
    %549 = arith.cmpi eq, %c4_i32_316, %c0_i32_317 : i32
    %c1_i32_318 = arith.constant 1 : i32
    %550 = arith.select %549, %c1_i32_318, %c4_i32_316 : i32
    %551 = vector.broadcast %550 : i32 to vector<8x1xi32>
    %552 = arith.remsi %548, %551 : vector<8x1xi32>
    %c0_i32_319 = arith.constant 0 : i32
    %553 = vector.broadcast %c0_i32_319 : i32 to vector<8x1xi32>
    %554 = arith.cmpi ne, %552, %553 : vector<8x1xi32>
    %c0_i32_320 = arith.constant 0 : i32
    %555 = vector.broadcast %c0_i32_320 : i32 to vector<8x1xi32>
    %556 = arith.cmpi slt, %552, %555 : vector<8x1xi32>
    %c0_i32_321 = arith.constant 0 : i32
    %557 = arith.cmpi slt, %550, %c0_i32_321 : i32
    %558 = vector.broadcast %557 : i1 to vector<8x1xi1>
    %559 = vector.broadcast %558 : vector<8x1xi1> to vector<8x1xi1>
    %560 = arith.xori %556, %559 : vector<8x1xi1>
    %561 = arith.andi %560, %554 : vector<8x1xi1>
    %562 = vector.broadcast %550 : i32 to vector<8x1xi32>
    %563 = arith.addi %552, %562 : vector<8x1xi32>
    %564 = arith.select %561, %563, %552 : vector<8x1xi1>, vector<8x1xi32>
    %c3_i32_322 = arith.constant 3 : i32
    %565 = vector.broadcast %c3_i32_322 : i32 to vector<8x1xi32>
    %566 = arith.cmpi eq, %564, %565 : vector<8x1xi32>
    %c7_i32_323 = arith.constant 7 : i32
    %567 = tpu.dynamic_rotate %512 by %c7_i32_323 dim 0 : vector<8x16xf32>, i32 -> vector<8x16xf32>
    %cst_324 = arith.constant 0.000000e+00 : f32
    %568 = vector.shape_cast %566 : vector<8x1xi1> to vector<8x1xi1>
    %569 = vector.broadcast %568 : vector<8x1xi1> to vector<8x16xi1>
    %570 = vector.broadcast %cst_324 : f32 to vector<8x16xf32>
    %571 = arith.select %569, %570, %567 : vector<8x16xi1>, vector<8x16xf32>
    %572 = arith.truncf %571 : vector<8x16xf32> to vector<8x16xbf16>
    %cst_325 = arith.constant dense<0.000000e+00> : vector<8x16xf32>
    %573 = tpu.matmul %572, %518, %cst_325 {dimension_numbers = #tpu.dot_dimension_numbers<[1], [0], [0], [1], [0, 0, 1, 1], [], []>} : vector<8x16xbf16>, vector<16x16xbf16>, vector<8x16xf32> -> vector<8x16xf32>
    %574 = arith.addf %547, %573 : vector<8x16xf32>
    %c7 = arith.constant 7 : index
    %c0_326 = arith.constant 0 : index
    %c0_327 = arith.constant 0 : index
    %575 = vector.load %arg8[%c7, %c0_326, %c0_327] : memref<12x1x16xf32, #tpu.memory_space<vmem>>, vector<1x1x16xf32>
    %576 = vector.shape_cast %575 : vector<1x1x16xf32> to vector<1x16xf32>
    %577 = vector.broadcast %576 : vector<1x16xf32> to vector<8x16xf32>
    %578 = arith.mulf %574, %577 : vector<8x16xf32>
    %c7_328 = arith.constant 7 : index
    %c0_329 = arith.constant 0 : index
    %c0_330 = arith.constant 0 : index
    %579 = vector.load %arg9[%c7_328, %c0_329, %c0_330] : memref<12x1x16xf32, #tpu.memory_space<vmem>>, vector<1x1x16xf32>
    %580 = vector.shape_cast %579 : vector<1x1x16xf32> to vector<1x16xf32>
    %581 = vector.broadcast %580 : vector<1x16xf32> to vector<8x16xf32>
    %582 = arith.addf %578, %581 : vector<8x16xf32>
    %cst_331 = arith.constant 0.000000e+00 : f32
    %583 = vector.broadcast %cst_331 : f32 to vector<8x16xf32>
    %584 = arith.maximumf %582, %583 : vector<8x16xf32>
    %c7_332 = arith.constant 7 : index
    %c0_333 = arith.constant 0 : index
    %c0_334 = arith.constant 0 : index
    %c0_335 = arith.constant 0 : index
    %585 = vector.load %arg7[%c7_332, %c0_333, %c0_334, %c0_335] : memref<12x3x16x16xbf16, #tpu.memory_space<vmem>>, vector<1x1x16x16xbf16>
    %586 = vector.shape_cast %585 : vector<1x1x16x16xbf16> to vector<16x16xbf16>
    %c7_336 = arith.constant 7 : index
    %c1_337 = arith.constant 1 : index
    %c0_338 = arith.constant 0 : index
    %c0_339 = arith.constant 0 : index
    %587 = vector.load %arg7[%c7_336, %c1_337, %c0_338, %c0_339] : memref<12x3x16x16xbf16, #tpu.memory_space<vmem>>, vector<1x1x16x16xbf16>
    %588 = vector.shape_cast %587 : vector<1x1x16x16xbf16> to vector<16x16xbf16>
    %c7_340 = arith.constant 7 : index
    %c2_341 = arith.constant 2 : index
    %c0_342 = arith.constant 0 : index
    %c0_343 = arith.constant 0 : index
    %589 = vector.load %arg7[%c7_340, %c2_341, %c0_342, %c0_343] : memref<12x3x16x16xbf16, #tpu.memory_space<vmem>>, vector<1x1x16x16xbf16>
    %590 = vector.shape_cast %589 : vector<1x1x16x16xbf16> to vector<16x16xbf16>
    %591 = tpu.iota {dimensions = array<i32: 0>} : vector<8x1xi32>
    %c4_i32_344 = arith.constant 4 : i32
    %c0_i32_345 = arith.constant 0 : i32
    %592 = arith.cmpi eq, %c4_i32_344, %c0_i32_345 : i32
    %c1_i32_346 = arith.constant 1 : i32
    %593 = arith.select %592, %c1_i32_346, %c4_i32_344 : i32
    %594 = vector.broadcast %593 : i32 to vector<8x1xi32>
    %595 = arith.remsi %591, %594 : vector<8x1xi32>
    %c0_i32_347 = arith.constant 0 : i32
    %596 = vector.broadcast %c0_i32_347 : i32 to vector<8x1xi32>
    %597 = arith.cmpi ne, %595, %596 : vector<8x1xi32>
    %c0_i32_348 = arith.constant 0 : i32
    %598 = vector.broadcast %c0_i32_348 : i32 to vector<8x1xi32>
    %599 = arith.cmpi slt, %595, %598 : vector<8x1xi32>
    %c0_i32_349 = arith.constant 0 : i32
    %600 = arith.cmpi slt, %593, %c0_i32_349 : i32
    %601 = vector.broadcast %600 : i1 to vector<8x1xi1>
    %602 = vector.broadcast %601 : vector<8x1xi1> to vector<8x1xi1>
    %603 = arith.xori %599, %602 : vector<8x1xi1>
    %604 = arith.andi %603, %597 : vector<8x1xi1>
    %605 = vector.broadcast %593 : i32 to vector<8x1xi32>
    %606 = arith.addi %595, %605 : vector<8x1xi32>
    %607 = arith.select %604, %606, %595 : vector<8x1xi1>, vector<8x1xi32>
    %c0_i32_350 = arith.constant 0 : i32
    %608 = vector.broadcast %c0_i32_350 : i32 to vector<8x1xi32>
    %609 = arith.cmpi eq, %607, %608 : vector<8x1xi32>
    %c1_i32_351 = arith.constant 1 : i32
    %610 = tpu.dynamic_rotate %584 by %c1_i32_351 dim 0 : vector<8x16xf32>, i32 -> vector<8x16xf32>
    %cst_352 = arith.constant 0.000000e+00 : f32
    %611 = vector.shape_cast %609 : vector<8x1xi1> to vector<8x1xi1>
    %612 = vector.broadcast %611 : vector<8x1xi1> to vector<8x16xi1>
    %613 = vector.broadcast %cst_352 : f32 to vector<8x16xf32>
    %614 = arith.select %612, %613, %610 : vector<8x16xi1>, vector<8x16xf32>
    %615 = arith.truncf %614 : vector<8x16xf32> to vector<8x16xbf16>
    %cst_353 = arith.constant dense<0.000000e+00> : vector<8x16xf32>
    %616 = tpu.matmul %615, %586, %cst_353 {dimension_numbers = #tpu.dot_dimension_numbers<[1], [0], [0], [1], [0, 0, 1, 1], [], []>} : vector<8x16xbf16>, vector<16x16xbf16>, vector<8x16xf32> -> vector<8x16xf32>
    %617 = arith.truncf %584 : vector<8x16xf32> to vector<8x16xbf16>
    %cst_354 = arith.constant dense<0.000000e+00> : vector<8x16xf32>
    %618 = tpu.matmul %617, %588, %cst_354 {dimension_numbers = #tpu.dot_dimension_numbers<[1], [0], [0], [1], [0, 0, 1, 1], [], []>} : vector<8x16xbf16>, vector<16x16xbf16>, vector<8x16xf32> -> vector<8x16xf32>
    %619 = arith.addf %616, %618 : vector<8x16xf32>
    %620 = tpu.iota {dimensions = array<i32: 0>} : vector<8x1xi32>
    %c4_i32_355 = arith.constant 4 : i32
    %c0_i32_356 = arith.constant 0 : i32
    %621 = arith.cmpi eq, %c4_i32_355, %c0_i32_356 : i32
    %c1_i32_357 = arith.constant 1 : i32
    %622 = arith.select %621, %c1_i32_357, %c4_i32_355 : i32
    %623 = vector.broadcast %622 : i32 to vector<8x1xi32>
    %624 = arith.remsi %620, %623 : vector<8x1xi32>
    %c0_i32_358 = arith.constant 0 : i32
    %625 = vector.broadcast %c0_i32_358 : i32 to vector<8x1xi32>
    %626 = arith.cmpi ne, %624, %625 : vector<8x1xi32>
    %c0_i32_359 = arith.constant 0 : i32
    %627 = vector.broadcast %c0_i32_359 : i32 to vector<8x1xi32>
    %628 = arith.cmpi slt, %624, %627 : vector<8x1xi32>
    %c0_i32_360 = arith.constant 0 : i32
    %629 = arith.cmpi slt, %622, %c0_i32_360 : i32
    %630 = vector.broadcast %629 : i1 to vector<8x1xi1>
    %631 = vector.broadcast %630 : vector<8x1xi1> to vector<8x1xi1>
    %632 = arith.xori %628, %631 : vector<8x1xi1>
    %633 = arith.andi %632, %626 : vector<8x1xi1>
    %634 = vector.broadcast %622 : i32 to vector<8x1xi32>
    %635 = arith.addi %624, %634 : vector<8x1xi32>
    %636 = arith.select %633, %635, %624 : vector<8x1xi1>, vector<8x1xi32>
    %c3_i32_361 = arith.constant 3 : i32
    %637 = vector.broadcast %c3_i32_361 : i32 to vector<8x1xi32>
    %638 = arith.cmpi eq, %636, %637 : vector<8x1xi32>
    %c7_i32_362 = arith.constant 7 : i32
    %639 = tpu.dynamic_rotate %584 by %c7_i32_362 dim 0 : vector<8x16xf32>, i32 -> vector<8x16xf32>
    %cst_363 = arith.constant 0.000000e+00 : f32
    %640 = vector.shape_cast %638 : vector<8x1xi1> to vector<8x1xi1>
    %641 = vector.broadcast %640 : vector<8x1xi1> to vector<8x16xi1>
    %642 = vector.broadcast %cst_363 : f32 to vector<8x16xf32>
    %643 = arith.select %641, %642, %639 : vector<8x16xi1>, vector<8x16xf32>
    %644 = arith.truncf %643 : vector<8x16xf32> to vector<8x16xbf16>
    %cst_364 = arith.constant dense<0.000000e+00> : vector<8x16xf32>
    %645 = tpu.matmul %644, %590, %cst_364 {dimension_numbers = #tpu.dot_dimension_numbers<[1], [0], [0], [1], [0, 0, 1, 1], [], []>} : vector<8x16xbf16>, vector<16x16xbf16>, vector<8x16xf32> -> vector<8x16xf32>
    %646 = arith.addf %619, %645 : vector<8x16xf32>
    %647 = arith.addf %646, %502 : vector<8x16xf32>
    %c0_365 = arith.constant 0 : index
    %c0_366 = arith.constant 0 : index
    %648 = vector.load %arg15[%c0_365, %c0_366] : memref<32x16xf32, #tpu.memory_space<vmem>>, vector<8x16xf32>
    tpu.vector_store %arg15[%c0_365, %c0_366], %647 {strides = array<i32>} : memref<32x16xf32, #tpu.memory_space<vmem>>, vector<8x16xf32>,
    %c0_367 = arith.constant 0 : index
    %c0_368 = arith.constant 0 : index
    %649 = tpu.strided_load %arg15[%c0_367, %c0_368] {strides = array<i32: 2, 1>} : memref<32x16xf32, #tpu.memory_space<vmem>>, vector<4x16xf32>
    %c1_369 = arith.constant 1 : index
    %c0_370 = arith.constant 0 : index
    %650 = tpu.strided_load %arg15[%c1_369, %c0_370] {strides = array<i32: 2, 1>} : memref<32x16xf32, #tpu.memory_space<vmem>>, vector<4x16xf32>
    %c8 = arith.constant 8 : index
    %c0_371 = arith.constant 0 : index
    %c0_372 = arith.constant 0 : index
    %651 = vector.load %arg8[%c8, %c0_371, %c0_372] : memref<12x1x16xf32, #tpu.memory_space<vmem>>, vector<1x1x16xf32>
    %652 = vector.shape_cast %651 : vector<1x1x16xf32> to vector<1x16xf32>
    %653 = vector.broadcast %652 : vector<1x16xf32> to vector<4x16xf32>
    %654 = arith.mulf %649, %653 : vector<4x16xf32>
    %c8_373 = arith.constant 8 : index
    %c0_374 = arith.constant 0 : index
    %c0_375 = arith.constant 0 : index
    %655 = vector.load %arg9[%c8_373, %c0_374, %c0_375] : memref<12x1x16xf32, #tpu.memory_space<vmem>>, vector<1x1x16xf32>
    %656 = vector.shape_cast %655 : vector<1x1x16xf32> to vector<1x16xf32>
    %657 = vector.broadcast %656 : vector<1x16xf32> to vector<4x16xf32>
    %658 = arith.addf %654, %657 : vector<4x16xf32>
    %cst_376 = arith.constant 0.000000e+00 : f32
    %659 = vector.broadcast %cst_376 : f32 to vector<4x16xf32>
    %660 = arith.maximumf %658, %659 : vector<4x16xf32>
    %c8_377 = arith.constant 8 : index
    %c0_378 = arith.constant 0 : index
    %c0_379 = arith.constant 0 : index
    %661 = vector.load %arg8[%c8_377, %c0_378, %c0_379] : memref<12x1x16xf32, #tpu.memory_space<vmem>>, vector<1x1x16xf32>
    %662 = vector.shape_cast %661 : vector<1x1x16xf32> to vector<1x16xf32>
    %663 = vector.broadcast %662 : vector<1x16xf32> to vector<4x16xf32>
    %664 = arith.mulf %650, %663 : vector<4x16xf32>
    %c8_380 = arith.constant 8 : index
    %c0_381 = arith.constant 0 : index
    %c0_382 = arith.constant 0 : index
    %665 = vector.load %arg9[%c8_380, %c0_381, %c0_382] : memref<12x1x16xf32, #tpu.memory_space<vmem>>, vector<1x1x16xf32>
    %666 = vector.shape_cast %665 : vector<1x1x16xf32> to vector<1x16xf32>
    %667 = vector.broadcast %666 : vector<1x16xf32> to vector<4x16xf32>
    %668 = arith.addf %664, %667 : vector<4x16xf32>
    %cst_383 = arith.constant 0.000000e+00 : f32
    %669 = vector.broadcast %cst_383 : f32 to vector<4x16xf32>
    %670 = arith.maximumf %668, %669 : vector<4x16xf32>
    %671 = tpu.iota {dimensions = array<i32: 0>} : vector<4x1xi32>
    %c2_i32 = arith.constant 2 : i32
    %c0_i32_384 = arith.constant 0 : i32
    %672 = arith.cmpi eq, %c2_i32, %c0_i32_384 : i32
    %c1_i32_385 = arith.constant 1 : i32
    %673 = arith.select %672, %c1_i32_385, %c2_i32 : i32
    %674 = vector.broadcast %673 : i32 to vector<4x1xi32>
    %675 = arith.remsi %671, %674 : vector<4x1xi32>
    %c0_i32_386 = arith.constant 0 : i32
    %676 = vector.broadcast %c0_i32_386 : i32 to vector<4x1xi32>
    %677 = arith.cmpi ne, %675, %676 : vector<4x1xi32>
    %c0_i32_387 = arith.constant 0 : i32
    %678 = vector.broadcast %c0_i32_387 : i32 to vector<4x1xi32>
    %679 = arith.cmpi slt, %675, %678 : vector<4x1xi32>
    %c0_i32_388 = arith.constant 0 : i32
    %680 = arith.cmpi slt, %673, %c0_i32_388 : i32
    %681 = vector.broadcast %680 : i1 to vector<4x1xi1>
    %682 = vector.broadcast %681 : vector<4x1xi1> to vector<4x1xi1>
    %683 = arith.xori %679, %682 : vector<4x1xi1>
    %684 = arith.andi %683, %677 : vector<4x1xi1>
    %685 = vector.broadcast %673 : i32 to vector<4x1xi32>
    %686 = arith.addi %675, %685 : vector<4x1xi32>
    %687 = arith.select %684, %686, %675 : vector<4x1xi1>, vector<4x1xi32>
    %c0_i32_389 = arith.constant 0 : i32
    %688 = vector.broadcast %c0_i32_389 : i32 to vector<4x1xi32>
    %689 = arith.cmpi eq, %687, %688 : vector<4x1xi32>
    %c1_i32_390 = arith.constant 1 : i32
    %690 = tpu.dynamic_rotate %670 by %c1_i32_390 dim 0 : vector<4x16xf32>, i32 -> vector<4x16xf32>
    %cst_391 = arith.constant 0.000000e+00 : f32
    %691 = vector.shape_cast %689 : vector<4x1xi1> to vector<4x1xi1>
    %692 = vector.broadcast %691 : vector<4x1xi1> to vector<4x16xi1>
    %693 = vector.broadcast %cst_391 : f32 to vector<4x16xf32>
    %694 = arith.select %692, %693, %690 : vector<4x16xi1>, vector<4x16xf32>
    %c8_392 = arith.constant 8 : index
    %c0_393 = arith.constant 0 : index
    %c0_394 = arith.constant 0 : index
    %c0_395 = arith.constant 0 : index
    %695 = vector.load %arg7[%c8_392, %c0_393, %c0_394, %c0_395] : memref<12x3x16x16xbf16, #tpu.memory_space<vmem>>, vector<1x1x16x16xbf16>
    %696 = vector.shape_cast %695 : vector<1x1x16x16xbf16> to vector<16x16xbf16>
    %697 = arith.truncf %694 : vector<4x16xf32> to vector<4x16xbf16>
    %cst_396 = arith.constant dense<0.000000e+00> : vector<4x16xf32>
    %698 = tpu.matmul %697, %696, %cst_396 {dimension_numbers = #tpu.dot_dimension_numbers<[1], [0], [0], [1], [0, 0, 1, 1], [], []>} : vector<4x16xbf16>, vector<16x16xbf16>, vector<4x16xf32> -> vector<4x16xf32>
    %c8_397 = arith.constant 8 : index
    %c1_398 = arith.constant 1 : index
    %c0_399 = arith.constant 0 : index
    %c0_400 = arith.constant 0 : index
    %699 = vector.load %arg7[%c8_397, %c1_398, %c0_399, %c0_400] : memref<12x3x16x16xbf16, #tpu.memory_space<vmem>>, vector<1x1x16x16xbf16>
    %700 = vector.shape_cast %699 : vector<1x1x16x16xbf16> to vector<16x16xbf16>
    %701 = arith.truncf %660 : vector<4x16xf32> to vector<4x16xbf16>
    %cst_401 = arith.constant dense<0.000000e+00> : vector<4x16xf32>
    %702 = tpu.matmul %701, %700, %cst_401 {dimension_numbers = #tpu.dot_dimension_numbers<[1], [0], [0], [1], [0, 0, 1, 1], [], []>} : vector<4x16xbf16>, vector<16x16xbf16>, vector<4x16xf32> -> vector<4x16xf32>
    %703 = arith.addf %698, %702 : vector<4x16xf32>
    %c8_402 = arith.constant 8 : index
    %c2_403 = arith.constant 2 : index
    %c0_404 = arith.constant 0 : index
    %c0_405 = arith.constant 0 : index
    %704 = vector.load %arg7[%c8_402, %c2_403, %c0_404, %c0_405] : memref<12x3x16x16xbf16, #tpu.memory_space<vmem>>, vector<1x1x16x16xbf16>
    %705 = vector.shape_cast %704 : vector<1x1x16x16xbf16> to vector<16x16xbf16>
    %706 = arith.truncf %670 : vector<4x16xf32> to vector<4x16xbf16>
    %cst_406 = arith.constant dense<0.000000e+00> : vector<4x16xf32>
    %707 = tpu.matmul %706, %705, %cst_406 {dimension_numbers = #tpu.dot_dimension_numbers<[1], [0], [0], [1], [0, 0, 1, 1], [], []>} : vector<4x16xbf16>, vector<16x16xbf16>, vector<4x16xf32> -> vector<4x16xf32>
    %708 = arith.addf %703, %707 : vector<4x16xf32>
    %c2_407 = arith.constant 2 : index
    %c0_408 = arith.constant 0 : index
    %c0_409 = arith.constant 0 : index
    %709 = vector.load %arg10[%c2_407, %c0_408, %c0_409] : memref<3x16x16xbf16, #tpu.memory_space<vmem>>, vector<1x16x16xbf16>
    %710 = vector.shape_cast %709 : vector<1x16x16xbf16> to vector<16x16xbf16>
    %711 = arith.truncf %649 : vector<4x16xf32> to vector<4x16xbf16>
    %cst_410 = arith.constant dense<0.000000e+00> : vector<4x16xf32>
    %712 = tpu.matmul %711, %710, %cst_410 {dimension_numbers = #tpu.dot_dimension_numbers<[1], [0], [0], [1], [0, 0, 1, 1], [], []>} : vector<4x16xbf16>, vector<16x16xbf16>, vector<4x16xf32> -> vector<4x16xf32>
    %c2_411 = arith.constant 2 : index
    %c0_412 = arith.constant 0 : index
    %c0_413 = arith.constant 0 : index
    %713 = vector.load %arg11[%c2_411, %c0_412, %c0_413] : memref<3x1x16xf32, #tpu.memory_space<vmem>>, vector<1x1x16xf32>
    %714 = vector.shape_cast %713 : vector<1x1x16xf32> to vector<1x16xf32>
    %715 = vector.broadcast %714 : vector<1x16xf32> to vector<4x16xf32>
    %716 = arith.addf %712, %715 : vector<4x16xf32>
    %c9 = arith.constant 9 : index
    %c0_414 = arith.constant 0 : index
    %c0_415 = arith.constant 0 : index
    %717 = vector.load %arg8[%c9, %c0_414, %c0_415] : memref<12x1x16xf32, #tpu.memory_space<vmem>>, vector<1x1x16xf32>
    %718 = vector.shape_cast %717 : vector<1x1x16xf32> to vector<1x16xf32>
    %719 = vector.broadcast %718 : vector<1x16xf32> to vector<4x16xf32>
    %720 = arith.mulf %708, %719 : vector<4x16xf32>
    %c9_416 = arith.constant 9 : index
    %c0_417 = arith.constant 0 : index
    %c0_418 = arith.constant 0 : index
    %721 = vector.load %arg9[%c9_416, %c0_417, %c0_418] : memref<12x1x16xf32, #tpu.memory_space<vmem>>, vector<1x1x16xf32>
    %722 = vector.shape_cast %721 : vector<1x1x16xf32> to vector<1x16xf32>
    %723 = vector.broadcast %722 : vector<1x16xf32> to vector<4x16xf32>
    %724 = arith.addf %720, %723 : vector<4x16xf32>
    %cst_419 = arith.constant 0.000000e+00 : f32
    %725 = vector.broadcast %cst_419 : f32 to vector<4x16xf32>
    %726 = arith.maximumf %724, %725 : vector<4x16xf32>
    %c9_420 = arith.constant 9 : index
    %c0_421 = arith.constant 0 : index
    %c0_422 = arith.constant 0 : index
    %c0_423 = arith.constant 0 : index
    %727 = vector.load %arg7[%c9_420, %c0_421, %c0_422, %c0_423] : memref<12x3x16x16xbf16, #tpu.memory_space<vmem>>, vector<1x1x16x16xbf16>
    %728 = vector.shape_cast %727 : vector<1x1x16x16xbf16> to vector<16x16xbf16>
    %c9_424 = arith.constant 9 : index
    %c1_425 = arith.constant 1 : index
    %c0_426 = arith.constant 0 : index
    %c0_427 = arith.constant 0 : index
    %729 = vector.load %arg7[%c9_424, %c1_425, %c0_426, %c0_427] : memref<12x3x16x16xbf16, #tpu.memory_space<vmem>>, vector<1x1x16x16xbf16>
    %730 = vector.shape_cast %729 : vector<1x1x16x16xbf16> to vector<16x16xbf16>
    %c9_428 = arith.constant 9 : index
    %c2_429 = arith.constant 2 : index
    %c0_430 = arith.constant 0 : index
    %c0_431 = arith.constant 0 : index
    %731 = vector.load %arg7[%c9_428, %c2_429, %c0_430, %c0_431] : memref<12x3x16x16xbf16, #tpu.memory_space<vmem>>, vector<1x1x16x16xbf16>
    %732 = vector.shape_cast %731 : vector<1x1x16x16xbf16> to vector<16x16xbf16>
    %733 = tpu.iota {dimensions = array<i32: 0>} : vector<4x1xi32>
    %c2_i32_432 = arith.constant 2 : i32
    %c0_i32_433 = arith.constant 0 : i32
    %734 = arith.cmpi eq, %c2_i32_432, %c0_i32_433 : i32
    %c1_i32_434 = arith.constant 1 : i32
    %735 = arith.select %734, %c1_i32_434, %c2_i32_432 : i32
    %736 = vector.broadcast %735 : i32 to vector<4x1xi32>
    %737 = arith.remsi %733, %736 : vector<4x1xi32>
    %c0_i32_435 = arith.constant 0 : i32
    %738 = vector.broadcast %c0_i32_435 : i32 to vector<4x1xi32>
    %739 = arith.cmpi ne, %737, %738 : vector<4x1xi32>
    %c0_i32_436 = arith.constant 0 : i32
    %740 = vector.broadcast %c0_i32_436 : i32 to vector<4x1xi32>
    %741 = arith.cmpi slt, %737, %740 : vector<4x1xi32>
    %c0_i32_437 = arith.constant 0 : i32
    %742 = arith.cmpi slt, %735, %c0_i32_437 : i32
    %743 = vector.broadcast %742 : i1 to vector<4x1xi1>
    %744 = vector.broadcast %743 : vector<4x1xi1> to vector<4x1xi1>
    %745 = arith.xori %741, %744 : vector<4x1xi1>
    %746 = arith.andi %745, %739 : vector<4x1xi1>
    %747 = vector.broadcast %735 : i32 to vector<4x1xi32>
    %748 = arith.addi %737, %747 : vector<4x1xi32>
    %749 = arith.select %746, %748, %737 : vector<4x1xi1>, vector<4x1xi32>
    %c0_i32_438 = arith.constant 0 : i32
    %750 = vector.broadcast %c0_i32_438 : i32 to vector<4x1xi32>
    %751 = arith.cmpi eq, %749, %750 : vector<4x1xi32>
    %c1_i32_439 = arith.constant 1 : i32
    %752 = tpu.dynamic_rotate %726 by %c1_i32_439 dim 0 : vector<4x16xf32>, i32 -> vector<4x16xf32>
    %cst_440 = arith.constant 0.000000e+00 : f32
    %753 = vector.shape_cast %751 : vector<4x1xi1> to vector<4x1xi1>
    %754 = vector.broadcast %753 : vector<4x1xi1> to vector<4x16xi1>
    %755 = vector.broadcast %cst_440 : f32 to vector<4x16xf32>
    %756 = arith.select %754, %755, %752 : vector<4x16xi1>, vector<4x16xf32>
    %757 = arith.truncf %756 : vector<4x16xf32> to vector<4x16xbf16>
    %cst_441 = arith.constant dense<0.000000e+00> : vector<4x16xf32>
    %758 = tpu.matmul %757, %728, %cst_441 {dimension_numbers = #tpu.dot_dimension_numbers<[1], [0], [0], [1], [0, 0, 1, 1], [], []>} : vector<4x16xbf16>, vector<16x16xbf16>, vector<4x16xf32> -> vector<4x16xf32>
    %759 = arith.truncf %726 : vector<4x16xf32> to vector<4x16xbf16>
    %cst_442 = arith.constant dense<0.000000e+00> : vector<4x16xf32>
    %760 = tpu.matmul %759, %730, %cst_442 {dimension_numbers = #tpu.dot_dimension_numbers<[1], [0], [0], [1], [0, 0, 1, 1], [], []>} : vector<4x16xbf16>, vector<16x16xbf16>, vector<4x16xf32> -> vector<4x16xf32>
    %761 = arith.addf %758, %760 : vector<4x16xf32>
    %762 = tpu.iota {dimensions = array<i32: 0>} : vector<4x1xi32>
    %c2_i32_443 = arith.constant 2 : i32
    %c0_i32_444 = arith.constant 0 : i32
    %763 = arith.cmpi eq, %c2_i32_443, %c0_i32_444 : i32
    %c1_i32_445 = arith.constant 1 : i32
    %764 = arith.select %763, %c1_i32_445, %c2_i32_443 : i32
    %765 = vector.broadcast %764 : i32 to vector<4x1xi32>
    %766 = arith.remsi %762, %765 : vector<4x1xi32>
    %c0_i32_446 = arith.constant 0 : i32
    %767 = vector.broadcast %c0_i32_446 : i32 to vector<4x1xi32>
    %768 = arith.cmpi ne, %766, %767 : vector<4x1xi32>
    %c0_i32_447 = arith.constant 0 : i32
    %769 = vector.broadcast %c0_i32_447 : i32 to vector<4x1xi32>
    %770 = arith.cmpi slt, %766, %769 : vector<4x1xi32>
    %c0_i32_448 = arith.constant 0 : i32
    %771 = arith.cmpi slt, %764, %c0_i32_448 : i32
    %772 = vector.broadcast %771 : i1 to vector<4x1xi1>
    %773 = vector.broadcast %772 : vector<4x1xi1> to vector<4x1xi1>
    %774 = arith.xori %770, %773 : vector<4x1xi1>
    %775 = arith.andi %774, %768 : vector<4x1xi1>
    %776 = vector.broadcast %764 : i32 to vector<4x1xi32>
    %777 = arith.addi %766, %776 : vector<4x1xi32>
    %778 = arith.select %775, %777, %766 : vector<4x1xi1>, vector<4x1xi32>
    %c1_i32_449 = arith.constant 1 : i32
    %779 = vector.broadcast %c1_i32_449 : i32 to vector<4x1xi32>
    %780 = arith.cmpi eq, %778, %779 : vector<4x1xi32>
    %c3_i32_450 = arith.constant 3 : i32
    %781 = tpu.dynamic_rotate %726 by %c3_i32_450 dim 0 : vector<4x16xf32>, i32 -> vector<4x16xf32>
    %cst_451 = arith.constant 0.000000e+00 : f32
    %782 = vector.shape_cast %780 : vector<4x1xi1> to vector<4x1xi1>
    %783 = vector.broadcast %782 : vector<4x1xi1> to vector<4x16xi1>
    %784 = vector.broadcast %cst_451 : f32 to vector<4x16xf32>
    %785 = arith.select %783, %784, %781 : vector<4x16xi1>, vector<4x16xf32>
    %786 = arith.truncf %785 : vector<4x16xf32> to vector<4x16xbf16>
    %cst_452 = arith.constant dense<0.000000e+00> : vector<4x16xf32>
    %787 = tpu.matmul %786, %732, %cst_452 {dimension_numbers = #tpu.dot_dimension_numbers<[1], [0], [0], [1], [0, 0, 1, 1], [], []>} : vector<4x16xbf16>, vector<16x16xbf16>, vector<4x16xf32> -> vector<4x16xf32>
    %788 = arith.addf %761, %787 : vector<4x16xf32>
    %789 = arith.addf %788, %716 : vector<4x16xf32>
    %c10 = arith.constant 10 : index
    %c0_453 = arith.constant 0 : index
    %c0_454 = arith.constant 0 : index
    %790 = vector.load %arg8[%c10, %c0_453, %c0_454] : memref<12x1x16xf32, #tpu.memory_space<vmem>>, vector<1x1x16xf32>
    %791 = vector.shape_cast %790 : vector<1x1x16xf32> to vector<1x16xf32>
    %792 = vector.broadcast %791 : vector<1x16xf32> to vector<4x16xf32>
    %793 = arith.mulf %789, %792 : vector<4x16xf32>
    %c10_455 = arith.constant 10 : index
    %c0_456 = arith.constant 0 : index
    %c0_457 = arith.constant 0 : index
    %794 = vector.load %arg9[%c10_455, %c0_456, %c0_457] : memref<12x1x16xf32, #tpu.memory_space<vmem>>, vector<1x1x16xf32>
    %795 = vector.shape_cast %794 : vector<1x1x16xf32> to vector<1x16xf32>
    %796 = vector.broadcast %795 : vector<1x16xf32> to vector<4x16xf32>
    %797 = arith.addf %793, %796 : vector<4x16xf32>
    %cst_458 = arith.constant 0.000000e+00 : f32
    %798 = vector.broadcast %cst_458 : f32 to vector<4x16xf32>
    %799 = arith.maximumf %797, %798 : vector<4x16xf32>
    %c10_459 = arith.constant 10 : index
    %c0_460 = arith.constant 0 : index
    %c0_461 = arith.constant 0 : index
    %c0_462 = arith.constant 0 : index
    %800 = vector.load %arg7[%c10_459, %c0_460, %c0_461, %c0_462] : memref<12x3x16x16xbf16, #tpu.memory_space<vmem>>, vector<1x1x16x16xbf16>
    %801 = vector.shape_cast %800 : vector<1x1x16x16xbf16> to vector<16x16xbf16>
    %c10_463 = arith.constant 10 : index
    %c1_464 = arith.constant 1 : index
    %c0_465 = arith.constant 0 : index
    %c0_466 = arith.constant 0 : index
    %802 = vector.load %arg7[%c10_463, %c1_464, %c0_465, %c0_466] : memref<12x3x16x16xbf16, #tpu.memory_space<vmem>>, vector<1x1x16x16xbf16>
    %803 = vector.shape_cast %802 : vector<1x1x16x16xbf16> to vector<16x16xbf16>
    %c10_467 = arith.constant 10 : index
    %c2_468 = arith.constant 2 : index
    %c0_469 = arith.constant 0 : index
    %c0_470 = arith.constant 0 : index
    %804 = vector.load %arg7[%c10_467, %c2_468, %c0_469, %c0_470] : memref<12x3x16x16xbf16, #tpu.memory_space<vmem>>, vector<1x1x16x16xbf16>
    %805 = vector.shape_cast %804 : vector<1x1x16x16xbf16> to vector<16x16xbf16>
    %806 = tpu.iota {dimensions = array<i32: 0>} : vector<4x1xi32>
    %c2_i32_471 = arith.constant 2 : i32
    %c0_i32_472 = arith.constant 0 : i32
    %807 = arith.cmpi eq, %c2_i32_471, %c0_i32_472 : i32
    %c1_i32_473 = arith.constant 1 : i32
    %808 = arith.select %807, %c1_i32_473, %c2_i32_471 : i32
    %809 = vector.broadcast %808 : i32 to vector<4x1xi32>
    %810 = arith.remsi %806, %809 : vector<4x1xi32>
    %c0_i32_474 = arith.constant 0 : i32
    %811 = vector.broadcast %c0_i32_474 : i32 to vector<4x1xi32>
    %812 = arith.cmpi ne, %810, %811 : vector<4x1xi32>
    %c0_i32_475 = arith.constant 0 : i32
    %813 = vector.broadcast %c0_i32_475 : i32 to vector<4x1xi32>
    %814 = arith.cmpi slt, %810, %813 : vector<4x1xi32>
    %c0_i32_476 = arith.constant 0 : i32
    %815 = arith.cmpi slt, %808, %c0_i32_476 : i32
    %816 = vector.broadcast %815 : i1 to vector<4x1xi1>
    %817 = vector.broadcast %816 : vector<4x1xi1> to vector<4x1xi1>
    %818 = arith.xori %814, %817 : vector<4x1xi1>
    %819 = arith.andi %818, %812 : vector<4x1xi1>
    %820 = vector.broadcast %808 : i32 to vector<4x1xi32>
    %821 = arith.addi %810, %820 : vector<4x1xi32>
    %822 = arith.select %819, %821, %810 : vector<4x1xi1>, vector<4x1xi32>
    %c0_i32_477 = arith.constant 0 : i32
    %823 = vector.broadcast %c0_i32_477 : i32 to vector<4x1xi32>
    %824 = arith.cmpi eq, %822, %823 : vector<4x1xi32>
    %c1_i32_478 = arith.constant 1 : i32
    %825 = tpu.dynamic_rotate %799 by %c1_i32_478 dim 0 : vector<4x16xf32>, i32 -> vector<4x16xf32>
    %cst_479 = arith.constant 0.000000e+00 : f32
    %826 = vector.shape_cast %824 : vector<4x1xi1> to vector<4x1xi1>
    %827 = vector.broadcast %826 : vector<4x1xi1> to vector<4x16xi1>
    %828 = vector.broadcast %cst_479 : f32 to vector<4x16xf32>
    %829 = arith.select %827, %828, %825 : vector<4x16xi1>, vector<4x16xf32>
    %830 = arith.truncf %829 : vector<4x16xf32> to vector<4x16xbf16>
    %cst_480 = arith.constant dense<0.000000e+00> : vector<4x16xf32>
    %831 = tpu.matmul %830, %801, %cst_480 {dimension_numbers = #tpu.dot_dimension_numbers<[1], [0], [0], [1], [0, 0, 1, 1], [], []>} : vector<4x16xbf16>, vector<16x16xbf16>, vector<4x16xf32> -> vector<4x16xf32>
    %832 = arith.truncf %799 : vector<4x16xf32> to vector<4x16xbf16>
    %cst_481 = arith.constant dense<0.000000e+00> : vector<4x16xf32>
    %833 = tpu.matmul %832, %803, %cst_481 {dimension_numbers = #tpu.dot_dimension_numbers<[1], [0], [0], [1], [0, 0, 1, 1], [], []>} : vector<4x16xbf16>, vector<16x16xbf16>, vector<4x16xf32> -> vector<4x16xf32>
    %834 = arith.addf %831, %833 : vector<4x16xf32>
    %835 = tpu.iota {dimensions = array<i32: 0>} : vector<4x1xi32>
    %c2_i32_482 = arith.constant 2 : i32
    %c0_i32_483 = arith.constant 0 : i32
    %836 = arith.cmpi eq, %c2_i32_482, %c0_i32_483 : i32
    %c1_i32_484 = arith.constant 1 : i32
    %837 = arith.select %836, %c1_i32_484, %c2_i32_482 : i32
    %838 = vector.broadcast %837 : i32 to vector<4x1xi32>
    %839 = arith.remsi %835, %838 : vector<4x1xi32>
    %c0_i32_485 = arith.constant 0 : i32
    %840 = vector.broadcast %c0_i32_485 : i32 to vector<4x1xi32>
    %841 = arith.cmpi ne, %839, %840 : vector<4x1xi32>
    %c0_i32_486 = arith.constant 0 : i32
    %842 = vector.broadcast %c0_i32_486 : i32 to vector<4x1xi32>
    %843 = arith.cmpi slt, %839, %842 : vector<4x1xi32>
    %c0_i32_487 = arith.constant 0 : i32
    %844 = arith.cmpi slt, %837, %c0_i32_487 : i32
    %845 = vector.broadcast %844 : i1 to vector<4x1xi1>
    %846 = vector.broadcast %845 : vector<4x1xi1> to vector<4x1xi1>
    %847 = arith.xori %843, %846 : vector<4x1xi1>
    %848 = arith.andi %847, %841 : vector<4x1xi1>
    %849 = vector.broadcast %837 : i32 to vector<4x1xi32>
    %850 = arith.addi %839, %849 : vector<4x1xi32>
    %851 = arith.select %848, %850, %839 : vector<4x1xi1>, vector<4x1xi32>
    %c1_i32_488 = arith.constant 1 : i32
    %852 = vector.broadcast %c1_i32_488 : i32 to vector<4x1xi32>
    %853 = arith.cmpi eq, %851, %852 : vector<4x1xi32>
    %c3_i32_489 = arith.constant 3 : i32
    %854 = tpu.dynamic_rotate %799 by %c3_i32_489 dim 0 : vector<4x16xf32>, i32 -> vector<4x16xf32>
    %cst_490 = arith.constant 0.000000e+00 : f32
    %855 = vector.shape_cast %853 : vector<4x1xi1> to vector<4x1xi1>
    %856 = vector.broadcast %855 : vector<4x1xi1> to vector<4x16xi1>
    %857 = vector.broadcast %cst_490 : f32 to vector<4x16xf32>
    %858 = arith.select %856, %857, %854 : vector<4x16xi1>, vector<4x16xf32>
    %859 = arith.truncf %858 : vector<4x16xf32> to vector<4x16xbf16>
    %cst_491 = arith.constant dense<0.000000e+00> : vector<4x16xf32>
    %860 = tpu.matmul %859, %805, %cst_491 {dimension_numbers = #tpu.dot_dimension_numbers<[1], [0], [0], [1], [0, 0, 1, 1], [], []>} : vector<4x16xbf16>, vector<16x16xbf16>, vector<4x16xf32> -> vector<4x16xf32>
    %861 = arith.addf %834, %860 : vector<4x16xf32>
    %c11 = arith.constant 11 : index
    %c0_492 = arith.constant 0 : index
    %c0_493 = arith.constant 0 : index
    %862 = vector.load %arg8[%c11, %c0_492, %c0_493] : memref<12x1x16xf32, #tpu.memory_space<vmem>>, vector<1x1x16xf32>
    %863 = vector.shape_cast %862 : vector<1x1x16xf32> to vector<1x16xf32>
    %864 = vector.broadcast %863 : vector<1x16xf32> to vector<4x16xf32>
    %865 = arith.mulf %861, %864 : vector<4x16xf32>
    %c11_494 = arith.constant 11 : index
    %c0_495 = arith.constant 0 : index
    %c0_496 = arith.constant 0 : index
    %866 = vector.load %arg9[%c11_494, %c0_495, %c0_496] : memref<12x1x16xf32, #tpu.memory_space<vmem>>, vector<1x1x16xf32>
    %867 = vector.shape_cast %866 : vector<1x1x16xf32> to vector<1x16xf32>
    %868 = vector.broadcast %867 : vector<1x16xf32> to vector<4x16xf32>
    %869 = arith.addf %865, %868 : vector<4x16xf32>
    %cst_497 = arith.constant 0.000000e+00 : f32
    %870 = vector.broadcast %cst_497 : f32 to vector<4x16xf32>
    %871 = arith.maximumf %869, %870 : vector<4x16xf32>
    %c11_498 = arith.constant 11 : index
    %c0_499 = arith.constant 0 : index
    %c0_500 = arith.constant 0 : index
    %c0_501 = arith.constant 0 : index
    %872 = vector.load %arg7[%c11_498, %c0_499, %c0_500, %c0_501] : memref<12x3x16x16xbf16, #tpu.memory_space<vmem>>, vector<1x1x16x16xbf16>
    %873 = vector.shape_cast %872 : vector<1x1x16x16xbf16> to vector<16x16xbf16>
    %c11_502 = arith.constant 11 : index
    %c1_503 = arith.constant 1 : index
    %c0_504 = arith.constant 0 : index
    %c0_505 = arith.constant 0 : index
    %874 = vector.load %arg7[%c11_502, %c1_503, %c0_504, %c0_505] : memref<12x3x16x16xbf16, #tpu.memory_space<vmem>>, vector<1x1x16x16xbf16>
    %875 = vector.shape_cast %874 : vector<1x1x16x16xbf16> to vector<16x16xbf16>
    %c11_506 = arith.constant 11 : index
    %c2_507 = arith.constant 2 : index
    %c0_508 = arith.constant 0 : index
    %c0_509 = arith.constant 0 : index
    %876 = vector.load %arg7[%c11_506, %c2_507, %c0_508, %c0_509] : memref<12x3x16x16xbf16, #tpu.memory_space<vmem>>, vector<1x1x16x16xbf16>
    %877 = vector.shape_cast %876 : vector<1x1x16x16xbf16> to vector<16x16xbf16>
    %878 = tpu.iota {dimensions = array<i32: 0>} : vector<4x1xi32>
    %c2_i32_510 = arith.constant 2 : i32
    %c0_i32_511 = arith.constant 0 : i32
    %879 = arith.cmpi eq, %c2_i32_510, %c0_i32_511 : i32
    %c1_i32_512 = arith.constant 1 : i32
    %880 = arith.select %879, %c1_i32_512, %c2_i32_510 : i32
    %881 = vector.broadcast %880 : i32 to vector<4x1xi32>
    %882 = arith.remsi %878, %881 : vector<4x1xi32>
    %c0_i32_513 = arith.constant 0 : i32
    %883 = vector.broadcast %c0_i32_513 : i32 to vector<4x1xi32>
    %884 = arith.cmpi ne, %882, %883 : vector<4x1xi32>
    %c0_i32_514 = arith.constant 0 : i32
    %885 = vector.broadcast %c0_i32_514 : i32 to vector<4x1xi32>
    %886 = arith.cmpi slt, %882, %885 : vector<4x1xi32>
    %c0_i32_515 = arith.constant 0 : i32
    %887 = arith.cmpi slt, %880, %c0_i32_515 : i32
    %888 = vector.broadcast %887 : i1 to vector<4x1xi1>
    %889 = vector.broadcast %888 : vector<4x1xi1> to vector<4x1xi1>
    %890 = arith.xori %886, %889 : vector<4x1xi1>
    %891 = arith.andi %890, %884 : vector<4x1xi1>
    %892 = vector.broadcast %880 : i32 to vector<4x1xi32>
    %893 = arith.addi %882, %892 : vector<4x1xi32>
    %894 = arith.select %891, %893, %882 : vector<4x1xi1>, vector<4x1xi32>
    %c0_i32_516 = arith.constant 0 : i32
    %895 = vector.broadcast %c0_i32_516 : i32 to vector<4x1xi32>
    %896 = arith.cmpi eq, %894, %895 : vector<4x1xi32>
    %c1_i32_517 = arith.constant 1 : i32
    %897 = tpu.dynamic_rotate %871 by %c1_i32_517 dim 0 : vector<4x16xf32>, i32 -> vector<4x16xf32>
    %cst_518 = arith.constant 0.000000e+00 : f32
    %898 = vector.shape_cast %896 : vector<4x1xi1> to vector<4x1xi1>
    %899 = vector.broadcast %898 : vector<4x1xi1> to vector<4x16xi1>
    %900 = vector.broadcast %cst_518 : f32 to vector<4x16xf32>
    %901 = arith.select %899, %900, %897 : vector<4x16xi1>, vector<4x16xf32>
    %902 = arith.truncf %901 : vector<4x16xf32> to vector<4x16xbf16>
    %cst_519 = arith.constant dense<0.000000e+00> : vector<4x16xf32>
    %903 = tpu.matmul %902, %873, %cst_519 {dimension_numbers = #tpu.dot_dimension_numbers<[1], [0], [0], [1], [0, 0, 1, 1], [], []>} : vector<4x16xbf16>, vector<16x16xbf16>, vector<4x16xf32> -> vector<4x16xf32>
    %904 = arith.truncf %871 : vector<4x16xf32> to vector<4x16xbf16>
    %cst_520 = arith.constant dense<0.000000e+00> : vector<4x16xf32>
    %905 = tpu.matmul %904, %875, %cst_520 {dimension_numbers = #tpu.dot_dimension_numbers<[1], [0], [0], [1], [0, 0, 1, 1], [], []>} : vector<4x16xbf16>, vector<16x16xbf16>, vector<4x16xf32> -> vector<4x16xf32>
    %906 = arith.addf %903, %905 : vector<4x16xf32>
    %907 = tpu.iota {dimensions = array<i32: 0>} : vector<4x1xi32>
    %c2_i32_521 = arith.constant 2 : i32
    %c0_i32_522 = arith.constant 0 : i32
    %908 = arith.cmpi eq, %c2_i32_521, %c0_i32_522 : i32
    %c1_i32_523 = arith.constant 1 : i32
    %909 = arith.select %908, %c1_i32_523, %c2_i32_521 : i32
    %910 = vector.broadcast %909 : i32 to vector<4x1xi32>
    %911 = arith.remsi %907, %910 : vector<4x1xi32>
    %c0_i32_524 = arith.constant 0 : i32
    %912 = vector.broadcast %c0_i32_524 : i32 to vector<4x1xi32>
    %913 = arith.cmpi ne, %911, %912 : vector<4x1xi32>
    %c0_i32_525 = arith.constant 0 : i32
    %914 = vector.broadcast %c0_i32_525 : i32 to vector<4x1xi32>
    %915 = arith.cmpi slt, %911, %914 : vector<4x1xi32>
    %c0_i32_526 = arith.constant 0 : i32
    %916 = arith.cmpi slt, %909, %c0_i32_526 : i32
    %917 = vector.broadcast %916 : i1 to vector<4x1xi1>
    %918 = vector.broadcast %917 : vector<4x1xi1> to vector<4x1xi1>
    %919 = arith.xori %915, %918 : vector<4x1xi1>
    %920 = arith.andi %919, %913 : vector<4x1xi1>
    %921 = vector.broadcast %909 : i32 to vector<4x1xi32>
    %922 = arith.addi %911, %921 : vector<4x1xi32>
    %923 = arith.select %920, %922, %911 : vector<4x1xi1>, vector<4x1xi32>
    %c1_i32_527 = arith.constant 1 : i32
    %924 = vector.broadcast %c1_i32_527 : i32 to vector<4x1xi32>
    %925 = arith.cmpi eq, %923, %924 : vector<4x1xi32>
    %c3_i32_528 = arith.constant 3 : i32
    %926 = tpu.dynamic_rotate %871 by %c3_i32_528 dim 0 : vector<4x16xf32>, i32 -> vector<4x16xf32>
    %cst_529 = arith.constant 0.000000e+00 : f32
    %927 = vector.shape_cast %925 : vector<4x1xi1> to vector<4x1xi1>
    %928 = vector.broadcast %927 : vector<4x1xi1> to vector<4x16xi1>
    %929 = vector.broadcast %cst_529 : f32 to vector<4x16xf32>
    %930 = arith.select %928, %929, %926 : vector<4x16xi1>, vector<4x16xf32>
    %931 = arith.truncf %930 : vector<4x16xf32> to vector<4x16xbf16>
    %cst_530 = arith.constant dense<0.000000e+00> : vector<4x16xf32>
    %932 = tpu.matmul %931, %877, %cst_530 {dimension_numbers = #tpu.dot_dimension_numbers<[1], [0], [0], [1], [0, 0, 1, 1], [], []>} : vector<4x16xbf16>, vector<16x16xbf16>, vector<4x16xf32> -> vector<4x16xf32>
    %933 = arith.addf %906, %932 : vector<4x16xf32>
    %934 = arith.addf %933, %789 : vector<4x16xf32>
    %c0_531 = arith.constant 0 : index
    %c0_532 = arith.constant 0 : index
    %935 = vector.load %arg12[%c0_531, %c0_532] : memref<16x1xbf16, #tpu.memory_space<vmem>>, vector<16x1xbf16>
    %936 = arith.truncf %934 : vector<4x16xf32> to vector<4x16xbf16>
    %cst_533 = arith.constant dense<0.000000e+00> : vector<4x1xf32>
    %937 = tpu.matmul %936, %935, %cst_533 {dimension_numbers = #tpu.dot_dimension_numbers<[1], [0], [0], [1], [0, 0, 1, 1], [], []>} : vector<4x16xbf16>, vector<16x1xbf16>, vector<4x1xf32> -> vector<4x1xf32>
    %938 = vector.extract_strided_slice %937 {offsets = [0, 0], sizes = [2, 1], strides = [1, 1]} : vector<4x1xf32> to vector<2x1xf32>
    %cst_534 = arith.constant dense<0.000000e+00> : vector<1xf32>
    %939 = vector.multi_reduction <add>, %938, %cst_534 [0] : vector<2x1xf32> to vector<1xf32>
    %940 = vector.shape_cast %939 : vector<1xf32> to vector<1x1xf32>
    %941 = vector.extract_strided_slice %937 {offsets = [2, 0], sizes = [2, 1], strides = [1, 1]} : vector<4x1xf32> to vector<2x1xf32>
    %cst_535 = arith.constant dense<0.000000e+00> : vector<1xf32>
    %942 = vector.multi_reduction <add>, %941, %cst_535 [0] : vector<2x1xf32> to vector<1xf32>
    %943 = vector.shape_cast %942 : vector<1xf32> to vector<1x1xf32>
    %944 = tpu.concatenate %940, %943 in 0 : vector<1x1xf32>, vector<1x1xf32> -> vector<2x1xf32>
    %c0_536 = arith.constant 0 : index
    %c0_537 = arith.constant 0 : index
    %945 = vector.load %arg13[%c0_536, %c0_537] : memref<1x1xf32, #tpu.memory_space<vmem>>, vector<1x1xf32>
    %946 = vector.broadcast %945 : vector<1x1xf32> to vector<2x1xf32>
    %947 = arith.addf %944, %946 : vector<2x1xf32>
    %c0_538 = arith.constant 0 : index
    %c0_539 = arith.constant 0 : index
    %c0_540 = arith.constant 0 : index
    %948 = vector.load %arg14[%c0_538, %c0_539, %c0_540] : memref<1x2x1xf32, #tpu.memory_space<vmem>>, vector<1x2x1xf32>
    %949 = vector.shape_cast %948 : vector<1x2x1xf32> to vector<2x1xf32>
    %950 = vector.shape_cast %947 : vector<2x1xf32> to vector<1x2x1xf32>
    tpu.vector_store %arg14[%c0_538, %c0_539, %c0_540], %950 {strides = array<i32>} : memref<1x2x1xf32, #tpu.memory_space<vmem>>, vector<1x2x1xf32>,
    return
  }
  func.func @transform_0(%arg0: i32) -> (i32, i32) {
    %c0_i32 = arith.constant 0 : i32
    %c0_i32_0 = arith.constant 0 : i32
    return %arg0, %c0_i32 : i32, i32
  }
  func.func @transform_1(%arg0: i32) -> (i32, i32) {
    %c0_i32 = arith.constant 0 : i32
    %c0_i32_0 = arith.constant 0 : i32
    return %arg0, %c0_i32 : i32, i32
  }
  func.func @transform_2(%arg0: i32) -> (i32, i32) {
    %c0_i32 = arith.constant 0 : i32
    %c0_i32_0 = arith.constant 0 : i32
    %c0_i32_1 = arith.constant 0 : i32
    return %c0_i32, %c0_i32_0 : i32, i32
  }
  func.func @transform_3(%arg0: i32) -> (i32, i32) {
    %c0_i32 = arith.constant 0 : i32
    %c0_i32_0 = arith.constant 0 : i32
    %c0_i32_1 = arith.constant 0 : i32
    return %c0_i32, %c0_i32_0 : i32, i32
  }
  func.func @transform_4(%arg0: i32) -> (i32, i32, i32) {
    %c0_i32 = arith.constant 0 : i32
    %c0_i32_0 = arith.constant 0 : i32
    %c0_i32_1 = arith.constant 0 : i32
    %c0_i32_2 = arith.constant 0 : i32
    return %c0_i32, %c0_i32_0, %c0_i32_1 : i32, i32, i32
  }
  func.func @transform_5(%arg0: i32) -> (i32, i32) {
    %c0_i32 = arith.constant 0 : i32
    %c0_i32_0 = arith.constant 0 : i32
    %c0_i32_1 = arith.constant 0 : i32
    return %c0_i32, %c0_i32_0 : i32, i32
  }
  func.func @transform_6(%arg0: i32) -> (i32, i32, i32, i32) {
    %c0_i32 = arith.constant 0 : i32
    %c0_i32_0 = arith.constant 0 : i32
    %c0_i32_1 = arith.constant 0 : i32
    %c0_i32_2 = arith.constant 0 : i32
    %c0_i32_3 = arith.constant 0 : i32
    return %c0_i32, %c0_i32_0, %c0_i32_1, %c0_i32_2 : i32, i32, i32, i32
  }
  func.func @transform_7(%arg0: i32) -> (i32, i32, i32) {
    %c0_i32 = arith.constant 0 : i32
    %c0_i32_0 = arith.constant 0 : i32
    %c0_i32_1 = arith.constant 0 : i32
    %c0_i32_2 = arith.constant 0 : i32
    return %c0_i32, %c0_i32_0, %c0_i32_1 : i32, i32, i32
  }
  func.func @transform_8(%arg0: i32) -> (i32, i32, i32) {
    %c0_i32 = arith.constant 0 : i32
    %c0_i32_0 = arith.constant 0 : i32
    %c0_i32_1 = arith.constant 0 : i32
    %c0_i32_2 = arith.constant 0 : i32
    return %c0_i32, %c0_i32_0, %c0_i32_1 : i32, i32, i32
  }
  func.func @transform_9(%arg0: i32) -> (i32, i32, i32) {
    %c0_i32 = arith.constant 0 : i32
    %c0_i32_0 = arith.constant 0 : i32
    %c0_i32_1 = arith.constant 0 : i32
    %c0_i32_2 = arith.constant 0 : i32
    return %c0_i32, %c0_i32_0, %c0_i32_1 : i32, i32, i32
  }
  func.func @transform_10(%arg0: i32) -> (i32, i32, i32) {
    %c0_i32 = arith.constant 0 : i32
    %c0_i32_0 = arith.constant 0 : i32
    %c0_i32_1 = arith.constant 0 : i32
    %c0_i32_2 = arith.constant 0 : i32
    return %c0_i32, %c0_i32_0, %c0_i32_1 : i32, i32, i32
  }
  func.func @transform_11(%arg0: i32) -> (i32, i32) {
    %c0_i32 = arith.constant 0 : i32
    %c0_i32_0 = arith.constant 0 : i32
    %c0_i32_1 = arith.constant 0 : i32
    return %c0_i32, %c0_i32_0 : i32, i32
  }
  func.func @transform_12(%arg0: i32) -> (i32, i32) {
    %c0_i32 = arith.constant 0 : i32
    %c0_i32_0 = arith.constant 0 : i32
    %c0_i32_1 = arith.constant 0 : i32
    return %c0_i32, %c0_i32_0 : i32, i32
  }
  func.func @transform_13(%arg0: i32) -> (i32, i32, i32) {
    %c0_i32 = arith.constant 0 : i32
    %c0_i32_0 = arith.constant 0 : i32
    %c0_i32_1 = arith.constant 0 : i32
    return %arg0, %c0_i32, %c0_i32_0 : i32, i32, i32
  }
}

</mosaic_0001>

<bundles_post_ra>
// kernel: tpu_custom_call.1
= control target key start
LH: loop header
LB: loop body
LE: loop exit
PB: predicated region body
PF: predicated region fallthrough
CT: control target
= control target key end

     0   :  { %s5022_s0 = inlined_call_operand.vmem [shape: bf16[64,1], index: 0, kind: input, shape index: {}]   ;;  %s5023_s1 = inlined_call_operand.vmem [shape: bf16[64,32], index: 1, kind: input, shape index: {}]   ;;  %s5024_s2 = inlined_call_operand.vmem [shape: bf16[32,8], index: 2, kind: input, shape index: {}]   ;;  %s5025_s3 = inlined_call_operand.vmem [shape: f32[1,8], index: 3, kind: input, shape index: {}]   ;;  %s5026_s4 = inlined_call_operand.vmem [shape: bf16[3,8,16], index: 4, kind: input, shape index: {}]   ;;  %s5027_s5 = inlined_call_operand.vmem [shape: f32[1,16], index: 5, kind: input, shape index: {}]   ;;  %s5028_s6 = inlined_call_operand.hbm [shape: bf16[12,3,16,16], index: 6, kind: input, shape index: {}]   ;;  %s5029_s7 = inlined_call_operand.vmem [shape: f32[12,1,16], index: 7, kind: input, shape index: {}]   ;;  %s5030_s8 = inlined_call_operand.vmem [shape: f32[12,1,16], index: 8, kind: input, shape index: {}]   ;;  %s5031_s9 = inlined_call_operand.vmem [shape: bf16[3,16,16], index: 9, kind: input, shape index: {}]   ;;  %s5032_s10 = inlined_call_operand.vmem [shape: f32[3,1,16], index: 10, kind: input, shape index: {}]   ;;  %s5033_s11 = inlined_call_operand.vmem [shape: bf16[16,1], index: 11, kind: input, shape index: {}]   ;;  %s5034_s12 = inlined_call_operand.<no memory space> [shape: f32[1,1], index: 12, kind: input, shape index: {}]   ;;  %s5035_s13 = inlined_call_operand.vmem [shape: f32[2,2,1], index: 13, kind: output, shape index: {}]  }
   0x1   :  { %v18_v0 = vstv %s5034_s12 }
   0x2   :  { %19 = vst [vmem:[#allocation3] sm:$0x1] %v18_v0 }
   0x3   :  { %20 = vsyncpa [#allocation5], 0  ;;  %s4470_s27 = smov 0  }
   0x4 LB: > { %s4476_s28 = sadd.s32 4294967295, %s4388_s27   ;;  %p3659_p0 = scmp.ge.s32.totalorder %s4388_s27, 1  ;;  %s4388_s27 = sphi %s4470_s27, %s26_s27  }
   0x5   : > { %p340_p1 = scmp.lt.s32.totalorder %s4388_s27, 3  ;;  %s4390_s29 = smov [#allocation4]  }
   0x6   : > { %s364_s12 = sshll.u32 %s4390_s29, 4  ;;  %p5036_p3 = scmp.eq.s32.totalorder %s4476_s28, 0  ;;  %s365_s12 = int_to_ptr.vmem [resolvable:$true] %s364_s12 }
   0x7   : > { %p4480_p2 = pnand %p3659_p0, %p340_p1  ;;  %s4350_s17 = scalar_lea.hbm %s5028_s6, 4608 }
   0x8   : > { %p4351_p6 = scmp.ne.s32.totalorder %s5028_s6, %s4350_s17  ;;  %p4357_p10 = scmp.lt.u32.totalorder %s4350_s17, %s5028_s6 }
   0x9   : > { %s5038_s30 = scalar_select %p4480_p2, 1, 0 }
   0xa   : > { %p4285_p4 = pneg %p4480_p2 }
   0xc   : > { %p4489_p5 = pnand %p5036_p3, %p4285_p4 }
   0xe   : > { %p4352_p7 = pneg %p4489_p5 }
  0x10   : > { %p4353_p8 = pnand %p4352_p7, %p4351_p6 }
  0x12   : > { %p4354_p9 = pneg %p4353_p8 }
  0x14   : > { %p4359_p11 = pnand %p4357_p10, %p4354_p9 }
  0x16   : > { %4362 = shalt.err (!%p4359_p11)
}
  0x17   : > { %s4363_s22 = scalar_lea.vmem %s365_s12, 4608  ;;  %p4371_p1 = scmp.lt.s32.totalorder %s365_s12, %s365_s12 }
  0x18   : > { %p4364_p12 = scmp.ne.s32.totalorder %s365_s12, %s4363_s22  ;;  %p4372_p4 = scmp.lt.s32.totalorder %s4363_s22, %s4363_s22 }
  0x1a   : > { %p4366_p13 = pnand %p4364_p12, %p4352_p7  ;;  %p4373_p3 = por %p4372_p4, %p4371_p1 }
  0x1c   : > { %p4367_p0 = pneg %p4366_p13 }
  0x1e   : > { %p4374_p2 = pnand %p4373_p3, %p4367_p0 }
  0x20   : > { %4377 = shalt.err (!%p4374_p2)
}
  0x21   : > { %s4391_s23 = smov 64   ;;  %s4392_s24 = smov 4  }
  0x22   : > { %4288 = dma.hbm_to_vmem [thread:$0]  (!%p4489_p5), %s5028_s6, 4608, %s365_s12, [#allocation5], %s4391_s23, %s4391_s23, %s4392_s24  }
  0x23   : > { %p5040_p6 = scmp.ne.s32.totalorder %s5038_s30, 0 }
  0x24   : > { %p5041_p8 = scmp.eq.s32.totalorder (!%p5040_p6), %s4476_s28, 0 }
  0x25   : > { %416 = sbr.rel (%p5040_p6) target bundleno = 3820 (0xeec), region = 72 }
  0x2c   : > { %4383 = dma.done.wait (%p5041_p8), [#allocation5], 4608   ;;  %p5042_p7 = pmov %p5041_p8 }
  0x2d   : > { %s3664_s29 = sshll.u32 %s4476_s28, 2  ;;  %v4393_v1 = vmov 0   ;;  %v4308_v6 = vld [vmem:[%s5024_s2] sm:$0xff]   ;;  %v4309_v7 = vld [vmem:[%s5024_s2 + $0x8] sm:$0xff]   ;;  %v4394_v8 = vmov 839922192   ;;  %v497_v10 = vlaneseq }
  0x2e   : > { %4385 = vsyncadd (%p5042_p7), [#allocation5], 4294962688  ;;  %4307 = vset.pattern.permute.xlu1 %v4393_v1  ;;  %4306 = vset.pattern.permute.xlu0 %v4393_v1  ;;  %p465_p2 = scmp.lt.s32.totalorder %s3664_s29, 7  ;;  %v495_v9 = vunpack.c.l.s4 %v4394_v8  ;;  %vm574_vm0 = vcmask 261120   ;;  %v3676_v32 = vld [vmem:[%s5026_s4 + $0x4] sm:$0xf] }
  0x2f   : > { %3916 = vmatprep.subr.bf16.mxu0 %v4308_v6  ;;  %v4525_v12 = vshrl.u32 %v497_v10, 7  ;;  %vm724_vm1 = vcmask 1043456   ;;  %v630_v34 = vld [vmem:[%s5026_s4] sm:$0xf]  ;;  %vm717_vm5 = vcmask 64512   ;;  %vm4396_vm9 = vmmov 0  }
  0x30   : > { %s5068_s29 = smov (!%p465_p2, %s3664_s29), 7  ;;  %3917 = vmatpush3.bf16.msra.mxu0 %v4308_v6  ;;  %v496_v11 = vunpack.c.0.s8 %v495_v9  ;;  %4278 = vmatprep.subr.msk.bf16.mxu1 %vm724_vm1, %v3676_v32  ;;  %v726_v33 = vsel %vm724_vm1, %v3676_v32, 0  ;;  %v3669_v38 = vld [vmem:[%s5025_s3] ss:$0 sm:$0xff]  ;;  %v784_v1 = vsel %vm724_vm1, %v630_v34, 0  ;;  %vm935_vm10 = vcmask 130048  }
  0x31   : > { %s3665_s14 = sshll.u32 %s5068_s29, 2  ;;  %3918 = vmatprep.subr.bf16.mxu0 %v4309_v7  ;;  %3925 = vmatpush3.bf16.msra.mxu1 %v726_v33  ;;  %v639_v35 = vadd.s32 24, %v4525_v12  ;;  %v638_v36 = vadd.s32 16, %v4525_v12  ;;  %v4543_v37 = vadd.s32 8, %v4525_v12  ;;  %v644_v41 = vand.u32 15, %v4525_v12  ;;  %p476_p3 = scmp.lt.s32.totalorder %s4476_s28, 1 }
  0x32   : > { %s468_s12 = scalar_lea.vmem %s5022_s0, %s3665_s14  ;;  %v499_v13 = vsub.s32 %v496_v11, %v4525_v12  ;;  %s474_s22 = scalar_lea.vmem %s5023_s1, %s3665_s14  ;;  %4279 = vmatprep.subr.msk.bf16.mxu1 %vm724_vm1, %v630_v34  ;;  %vm696_vm2 = vcmp.lt.s32.totalorder %v4525_v12, 1  ;;  %vm843_vm4 = vcmp.lt.s32.totalorder %v4525_v12, 7  ;;  %v3677_v10 = vld [vmem:[%s5026_s4 + $0x8] sm:$0xf]  ;;  %v3685_v33 = vld [vmem:[%s5029_s7] ss:$0 sm:$0xff] }
  0x33   : > { %v487_v2 = vld [vmem:[%s468_s12 + $0x8] sm:$0xf]  ;;  %v485_v3 = vld [vmem:[%s468_s12] sm:$0xf]  ;;  %v488_v4 = vld [vmem:[%s468_s12 + $0xc] sm:$0xf] }
  0x34   : > { %515 = vperm.xlu1 %4307, %v487_v2   ;;  %491 = vperm.xlu0 %4306, %v485_v3   ;;  %v486_v5 = vld [vmem:[%s468_s12 + $0x4] sm:$0xf]  ;;  %v483_v16 = vld [vmem:[%s474_s22 + $0x8] sm:$0xf]  ;;  %v481_v19 = vld [vmem:[%s474_s22] sm:$0xf] }
  0x35   : > { %3919 = vmatpush3.bf16.msra.mxu0 %v4309_v7  ;;  %v484_v21 = vld [vmem:[%s474_s22 + $0xc] sm:$0xf]  ;;  %v482_v23 = vld [vmem:[%s474_s22 + $0x4] sm:$0xf]  ;;  %v665_v39 = vand.u32 15, %v639_v35  ;;  %v658_v40 = vand.u32 15, %v638_v36 }
  0x36   : > { %v651_v42 = vand.u32 15, %v4543_v37  ;;  %vm4560_vm7 = vcmp.eq.s32.totalorder %v644_v41, 0  ;;  %v3686_v36 = vld [vmem:[%s5030_s8] ss:$0 sm:$0xff]  ;;  %s5070_s28 = smov (!%p476_p3, %s4476_s28), 1 }
  0x37   : > { %vm4551_vm3 = vcmp.eq.s32.totalorder %v665_v39, 15  ;;  %vm4556_vm6 = vcmp.eq.s32.totalorder %v658_v40, 0  ;;  %s3668_s12 = sshll.u32 %s5070_s28, 1 }
  0x38   : > { %527 = vperm.xlu1 %4307, %v488_v4   ;;  %503 = vperm.xlu0 %4306, %v486_v5   ;;  %vm4564_vm8 = vcmp.eq.s32.totalorder %v651_v42, 15  ;;  %v4314_v42 = vld [vmem:[#allocation4 + $0x20] sm:$0xff]   ;;  %s479_s18 = scalar_lea.vmem %s5035_s13, %s3668_s12 }
  0xb3   : > { %v516_v14 = vpop.permute.xlu1 %515  ;;  %v492_v15 = vpop.permute.xlu0 %491 }
  0xb4   : > { %v524_v17 = vrot.slane %v516_v14, %v499_v13  ;;  %v500_v18 = vrot.slane %v492_v15, %v499_v13 }
  0xb6   : > { %v539_v26 = vmul.bf16 %v524_v17, %v483_v16  ;;  %v537_v27 = vmul.bf16 %v500_v18, %v481_v19 }
  0xb7   : > { %v528_v20 = vpop.permute.xlu1 %527  ;;  %v504_v22 = vpop.permute.xlu0 %503 }
  0xb8   : > { %v536_v24 = vrot.slane %v528_v20, %v499_v13  ;;  %v512_v25 = vrot.slane %v504_v22, %v499_v13  ;;  %v869_v20 = vsel %vm724_vm1, %v3677_v10, 0  ;;  %v4311_v22 = vld [vmem:[#allocation4 + $0x8] sm:$0xff]  }
  0xba   : > { %v540_v28 = vmul.bf16 %v536_v24, %v484_v21  ;;  %v538_v29 = vmul.bf16 %v512_v25, %v482_v23  ;;  %v4310_v21 = vld [vmem:[%s5031_s9] sm:$0xff]   ;;  %v4395_v23 = vmov 0.0  }
  0xbb   : > { %3942 = vmatprep.subr.bf16.mxu0 %v4395_v23  ;;  %v3684_v24 = vld [vmem:[%s5027_s5] ss:$0 sm:$0xff] }
  0xbc   : > { %v3671_v30 = vcombine.low %v539_v26, %v540_v28  ;;  %v3670_v31 = vcombine.low %v537_v27, %v538_v29 }
  0xbe   : > { %3920 = vmatprep.mubr.msk.bf16.mxu0 %vm574_vm0, %v3670_v31 }
  0xbf   : > { %3921 = vmatmul.mubr.msk.bf16.vlgmr.msra.gmra.mrb[0].mxu0 %vm574_vm0, %v3671_v30 }
  0xc0   : > { %3943 = vmatpush3.bf16.msra.mxu0 %v4311_v22  ;;  %3944 = vmatprep.mubr.msk.bf16.mxu0 %vm4396_vm9, %v4395_v23 }
  0xc1   : > { %3948 = vmatprep.subr.bf16.mxu0 %v4395_v23 }
 0x192   : > { %v3922_v43 = vpop.f32.mrb[0].mxu0 }
 0x193   : > { %v624_v44 = vadd.f32 %v3922_v43, %v3669_v38  ;;  %v615_v45 = vpop.f32.mrb[1].mxu0 }
 0x194   : > { %v616_v46 = vadd.f32 %v3669_v38, %v615_v45  ;;  %v3923_v47 = vpop.f32.mrb[2].mxu0 }
 0x195   : > { %v627_v49 = vadd.f32 %v3923_v47, %v3669_v38  ;;  %v618_v50 = vpop.f32.mrb[3].mxu0  ;;  %v694_v54 = vrot.slane %v624_v44, 7  ;;  %v841_v58 = vrot.slane %v624_v44, 1 }
 0x196   : > { %v692_v55 = vrot.slane %v616_v46, 7  ;;  %v839_v56 = vrot.slane %v616_v46, 1  ;;  %v619_v57 = vadd.f32 %v3669_v38, %v618_v50 }
 0x197   : > { %v695_v59 = vrot.slane %v627_v49, 7  ;;  %v716_v60 = vpack.c.bf16 %v627_v49, %v624_v44  ;;  %v842_v61 = vrot.slane %v627_v49, 1 }
 0x198   : > { %v693_v62 = vrot.slane %v619_v57, 7  ;;  %v840_v63 = vrot.slane %v619_v57, 1  ;;  %v715_v0 = vpack.c.bf16 %v619_v57, %v616_v46  ;;  %v977_v57 = vand.u32 7, %v4525_v12 }
 0x199   : > { %v697_v2 = vsel %vm696_vm2, %v694_v54, %v695_v59  ;;  %v844_v3 = vsel %vm843_vm4, %v841_v58, %v842_v61  ;;  %v847_v4 = vsel %vm843_vm4, %v842_v61, %v839_v56  ;;  %v700_v5 = vsel %vm696_vm2, %v695_v59, %v692_v55  ;;  %v4324_v61 = vld [vmem:[#allocation4 + $0x68] sm:$0xff]  }
 0x19a   : > { %v859_v6 = vsel %vm4551_vm3, 0.0, %v847_v4  ;;  %v698_v7 = vsel %vm696_vm2, %v693_v62, %v694_v54  ;;  %3926 = vmatprep.mubr.msk.bf16.mxu1 %vm717_vm5, %v715_v0  ;;  %v699_v8 = vsel %vm696_vm2, %v692_v55, %v693_v62  ;;  %v709_v9 = vsel %vm4560_vm7, 0.0, %v700_v5  ;;  %v4312_v54 = vld [vmem:[#allocation4] sm:$0xff]  }
 0x19b   : > { %v861_v11 = vpack.c.bf16 %v859_v6, %v844_v3  ;;  %v711_v13 = vsel %vm4556_vm6, 0.0, %v698_v7  ;;  %3927 = vmatmul.mubr.msk.bf16.vlgmr.msra.gmra.mrb[0].mxu1 %vm717_vm5, %v716_v60  ;;  %v713_v14 = vpack.c.bf16 %v699_v8, %v709_v9  ;;  %v845_v15 = vsel %vm843_vm4, %v840_v63, %v841_v58  ;;  %v3697_v4 = vld [vmem:[%s5029_s7 + $0x1] ss:$0 sm:$0xff]  ;;  %v4323_v60 = vld [vmem:[%s5031_s9 + $0x8] sm:$0xff]  }
 0x19c   : > { %v714_v16 = vpack.c.bf16 %v697_v2, %v711_v13  ;;  %3931 = vmatpush3.bf16.msra.mxu1 %v784_v1  ;;  %v846_v17 = vsel %vm843_vm4, %v839_v56, %v840_v63  ;;  %v857_v18 = vsel %vm4564_vm8, 0.0, %v845_v15  ;;  %v984_v56 = vand.u32 7, %v4543_v37  ;;  %v4313_v1 = vld [vmem:[#allocation4 + $0x10] sm:$0xff]   ;;  %v3699_v6 = vld [vmem:[%s5030_s8 + $0x1] ss:$0 sm:$0xff] }
 0x19d   : > { %3932 = vmatprep.mubr.msk.bf16.mxu1 %vm717_vm5, %v713_v14  ;;  %4280 = vmatprep.subr.msk.bf16.mxu1 %vm724_vm1, %v3677_v10  ;;  %v860_v19 = vpack.c.bf16 %v857_v18, %v846_v17  ;;  %vm4642_vm12 = vcmp.eq.s32.totalorder %v977_v57, 0  ;;  %v4315_v18 = vld [vmem:[#allocation4 + $0x18] sm:$0xff]   ;;  %vm4667_vm13 = vcmp.eq.s32.totalorder %v977_v57, 7  ;;  %vm2692_vm1 = vcmask 1047556  }
 0x19e   : > { %vm4638_vm11 = vcmp.eq.s32.totalorder %v984_v56, 0  ;;  %vm4671_vm14 = vcmp.eq.s32.totalorder %v984_v56, 7 }
 0x1a7   : > { %3933 = vmatmul.mubr.msk.bf16.vlgmr.msra.gmra.mrb[0].mxu1 %vm717_vm5, %v714_v16 }
 0x1a8   : > { %3937 = vmatpush3.bf16.msra.mxu1 %v869_v20  ;;  %3938 = vmatprep.mubr.msk.bf16.mxu1 %vm717_vm5, %v860_v19 }
 0x1a9   : > { %3960 = vmatprep.subr.bf16.mxu1 %v4395_v23 }
 0x1b3   : > { %3939 = vmatmul.mubr.msk.bf16.vlgmr.msra.gmra.mrb[0].mxu1 %vm717_vm5, %v861_v11  ;;  %vm3569_vm5 = vcmask 1040384  }
 0x1b4   : > { %3961 = vmatpush3.bf16.msra.mxu1 %v4310_v21  ;;  %3962 = vmatprep.mubr.msk.bf16.mxu1 %vm4396_vm9, %v4395_v23 }
 0x1b5   : > { %3966 = vmatprep.subr.bf16.mxu1 %v4395_v23 }
 0x286   : > { %v3940_v25 = vpop.f32.mrb[0].mxu1 }
 0x287   : > { %v933_v26 = vadd.f32 %v3940_v25, %v3684_v24  ;;  %v905_v27 = vpop.f32.mrb[1].mxu1 }
 0x288   : > { %v931_v28 = vadd.f32 %v3684_v24, %v905_v27  ;;  %v3941_v29 = vpop.f32.mrb[2].mxu1 }
 0x289   : > { %938 = vst.msk [vmem:[#allocation2 + $0x10] sm:$0xff] %vm935_vm10, %v933_v26  ;;  %v934_v30 = vadd.f32 %v3941_v29, %v3684_v24  ;;  %v908_v31 = vpop.f32.mrb[3].mxu1 }
 0x28a   : > { %936 = vst.msk [vmem:[#allocation2] sm:$0xff] %vm935_vm10, %v931_v28  ;;  %v932_v32 = vadd.f32 %v3684_v24, %v908_v31 }
 0x28b   : > { %939 = vst.msk [vmem:[#allocation2 + $0x18] sm:$0xff] %vm935_vm10, %v934_v30 }
 0x28c   : > { %937 = vst.msk [vmem:[#allocation2 + $0x8] sm:$0xff] %vm935_vm10, %v932_v32 }
 0x292   : > { %v942_v34 = vld [vmem:[#allocation2 + $0x10] ss:$2 sm:$0xff]  ;;  %v946_v35 = vld [vmem:[#allocation2 + $0x11] ss:$2 sm:$0xff] }
 0x293   : > { %v940_v38 = vld [vmem:[#allocation2] ss:$2 sm:$0xff]  ;;  %v944_v39 = vld [vmem:[#allocation2 + $0x1] ss:$2 sm:$0xff]  ;;  %v955_v40 = vmul.f32 %v3685_v33, %v942_v34  ;;  %v968_v41 = vmul.f32 %v3685_v33, %v946_v35 }
 0x294   : > { %v967_v43 = vmul.f32 %v3685_v33, %v944_v39  ;;  %v1174_v44 = vpack.c.bf16 %v942_v34, %v940_v38  ;;  %v954_v45 = vmul.f32 %v3685_v33, %v940_v38  ;;  %v4317_v38 = vld [vmem:[#allocation4 + $0x38] sm:$0xff]  }
 0x295   : > { %v964_v46 = vadd.f32 %v3686_v36, %v955_v40  ;;  %v970_v47 = vadd.f32 %v3686_v36, %v968_v41  ;;  %v3693_v39 = vld [vmem:[%s5032_s10] ss:$0 sm:$0xff]  ;;  %v3707_v41 = vld [vmem:[%s5029_s7 + $0x2] ss:$0 sm:$0xff] }
 0x296   : > { %3963 = vmatmul.mubr.msk.bf16.vlgmr.msra.gmra.mrb[4].mxu1 %vm935_vm10, %v1174_v44  ;;  %v963_v48 = vadd.f32 %v3686_v36, %v954_v45  ;;  %v969_v49 = vadd.f32 %v3686_v36, %v967_v43  ;;  %v4316_v36 = vld [vmem:[#allocation4 + $0x28] sm:$0xff]   ;;  %v3709_v44 = vld [vmem:[%s5030_s8 + $0x2] ss:$0 sm:$0xff] }
 0x297   : > { %v966_v50 = vmax.f32 %v964_v46, 0.0  ;;  %3967 = vmatpush3.bf16.msra.mxu1 %v4314_v42  ;;  %3968 = vmatprep.mubr.msk.bf16.mxu1 %vm4396_vm9, %v4395_v23  ;;  %v972_v53 = vmax.f32 %v970_v47, 0.0 }
 0x298   : > { %v965_v51 = vmax.f32 %v963_v48, 0.0  ;;  %v971_v52 = vmax.f32 %v969_v49, 0.0  ;;  %3972 = vmatprep.subr.bf16.mxu1 %v4395_v23 }
 0x299   : > { %v1000_v59 = vrot.slane %v972_v53, 7 }
 0x29a   : > { %v1015_v55 = vpack.c.bf16 %v966_v50, %v965_v51  ;;  %v999_v58 = vrot.slane %v971_v52, 7  ;;  %v1119_v3 = vpack.c.bf16 %v972_v53, %v971_v52 }
 0x29c   : > { %3945 = vmatmul.mubr.msk.bf16.vlgmr.msra.gmra.mrb[4].mxu0 %vm935_vm10, %v1015_v55  ;;  %v1001_v37 = vsel %vm696_vm2, %v999_v58, %v1000_v59  ;;  %v1002_v62 = vsel %vm696_vm2, %v1000_v59, %v999_v58 }
 0x29d   : > { %3949 = vmatpush3.bf16.msra.mxu0 %v4312_v54  ;;  %3950 = vmatprep.mubr.msk.bf16.mxu0 %vm4396_vm9, %v4395_v23  ;;  %v1007_v63 = vsel %vm4642_vm12, 0.0, %v1002_v62  ;;  %v1008_v0 = vsel %vm4638_vm11, 0.0, %v1001_v37  ;;  %v4318_v54 = vld [vmem:[#allocation4 + $0x30] sm:$0xff]  }
 0x29e   : > { %3954 = vmatprep.subr.bf16.mxu0 %v4395_v23  ;;  %v1011_v2 = vpack.c.bf16 %v1008_v0, %v1007_v63  ;;  %v4319_v63 = vld [vmem:[#allocation4 + $0x40] sm:$0xff]  }
 0x2a8   : > { %3951 = vmatmul.mubr.msk.bf16.vlgmr.msra.gmra.mrb[4].mxu0 %vm935_vm10, %v1011_v2 }
 0x2a9   : > { %3955 = vmatpush3.bf16.msra.mxu0 %v4313_v1  ;;  %3956 = vmatprep.mubr.msk.bf16.mxu0 %vm4396_vm9, %v4395_v23 }
 0x2aa   : > { %3984 = vmatprep.subr.bf16.mxu0 %v4395_v23 }
 0x2b4   : > { %3957 = vmatmul.mubr.msk.bf16.vlgmr.msra.gmra.mrb[4].mxu0 %vm935_vm10, %v1119_v3 }
 0x2b5   : > { %3986 = vmatprep.mubr.msk.bf16.mxu0 %vm4396_vm9, %v4395_v23  ;;  %3985 = vmatpush3.bf16.msra.mxu0 %v4317_v38 }
 0x2b6   : > { %3990 = vmatprep.subr.bf16.mxu0 %v4395_v23 }
 0x387   : > { %v1163_v5 = vpop.f32.mrb[4].mxu0 }
 0x388   : > { %v1240_v7 = vmul.f32 %v3697_v4, %v1163_v5  ;;  %v3958_v8 = vpop.f32.mrb[5].mxu0 }
 0x389   : > { %v1166_v9 = vpop.f32.mrb[6].mxu0  ;;  %v4320_v8 = vld [vmem:[#allocation4 + $0x50] sm:$0xff]  }
 0x38a   : > { %v1250_v10 = vadd.f32 %v3699_v6, %v1240_v7  ;;  %v1241_v11 = vmul.f32 %v3697_v4, %v1166_v9  ;;  %v3959_v13 = vpop.f32.mrb[7].mxu0  ;;  %v4321_v9 = vld [vmem:[#allocation4 + $0x48] sm:$0xff]  }
 0x38b   : > { %v3719_v13 = vld [vmem:[%s5030_s8 + $0x3] ss:$0 sm:$0xff] }
 0x38c   : > { %v1252_v14 = vmax.f32 %v1250_v10, 0.0  ;;  %v1251_v15 = vadd.f32 %v3699_v6, %v1241_v11  ;;  %v3717_v10 = vld [vmem:[%s5029_s7 + $0x3] ss:$0 sm:$0xff] }
 0x38e   : > { %v1253_v16 = vmax.f32 %v1251_v15, 0.0  ;;  %v1263_v17 = vrot.slane %v1252_v14, 7  ;;  %v1373_v21 = vrot.slane %v1252_v14, 1 }
 0x390   : > { %v1264_v22 = vrot.slane %v1253_v16, 7  ;;  %v1270_v24 = vpack.c.bf16 %v1253_v16, %v1252_v14  ;;  %v1374_v25 = vrot.slane %v1253_v16, 1 }
 0x392   : > { %v1265_v26 = vsel %vm696_vm2, %v1263_v17, %v1264_v22  ;;  %v1266_v27 = vsel %vm696_vm2, %v1264_v22, %v1263_v17  ;;  %v1375_v28 = vsel %vm843_vm4, %v1373_v21, %v1374_v25  ;;  %v1376_v29 = vsel %vm843_vm4, %v1374_v25, %v1373_v21  ;;  %3969 = vmatmul.mubr.msk.bf16.vlgmr.msra.gmra.mrb[4].mxu1 %vm935_vm10, %v1270_v24 }
 0x393   : > { %3973 = vmatpush3.bf16.msra.mxu1 %v4315_v18  ;;  %3974 = vmatprep.mubr.msk.bf16.mxu1 %vm4396_vm9, %v4395_v23  ;;  %v1267_v30 = vsel %vm4642_vm12, 0.0, %v1266_v27  ;;  %v1268_v31 = vsel %vm4638_vm11, 0.0, %v1265_v26  ;;  %v1381_v32 = vsel %vm4667_vm13, 0.0, %v1375_v28  ;;  %v1382_v33 = vsel %vm4671_vm14, 0.0, %v1376_v29  ;;  %v4322_v27 = vld [vmem:[#allocation4 + $0x58] sm:$0xff]  }
 0x394   : > { %3978 = vmatprep.subr.bf16.mxu1 %v4395_v23  ;;  %v1269_v34 = vpack.c.bf16 %v1268_v31, %v1267_v30  ;;  %v1383_v35 = vpack.c.bf16 %v1382_v33, %v1381_v32 }
 0x39e   : > { %3975 = vmatmul.mubr.msk.bf16.vlgmr.msra.gmra.mrb[4].mxu1 %vm935_vm10, %v1269_v34 }
 0x39f   : > { %3979 = vmatpush3.bf16.msra.mxu1 %v4316_v36  ;;  %3980 = vmatprep.mubr.msk.bf16.mxu1 %vm4396_vm9, %v4395_v23 }
 0x3a0   : > { %4002 = vmatprep.subr.bf16.mxu1 %v4395_v23 }
 0x3aa   : > { %3981 = vmatmul.mubr.msk.bf16.vlgmr.msra.gmra.mrb[4].mxu1 %vm935_vm10, %v1383_v35 }
 0x3ab   : > { %4004 = vmatprep.mubr.msk.bf16.mxu1 %vm4396_vm9, %v4395_v23  ;;  %4003 = vmatpush3.bf16.msra.mxu1 %v4320_v8 }
 0x3ac   : > { %4014 = vmatprep.subr.bf16.mxu1 %v4395_v23 }
 0x47d   : > { %v1427_v40 = vpop.f32.mrb[4].mxu1 }
 0x47e   : > { %v4709_v42 = vadd.f32 %v3693_v39, %v1427_v40  ;;  %v3982_v43 = vpop.f32.mrb[5].mxu1 }
 0x47f   : > { %v1430_v45 = vpop.f32.mrb[6].mxu1 }
 0x480   : > { %v1446_v46 = vmul.f32 %v4709_v42, %v3707_v41  ;;  %v4715_v47 = vadd.f32 %v3693_v39, %v1430_v45  ;;  %v3983_v48 = vpop.f32.mrb[7].mxu1 }
 0x482   : > { %v1456_v49 = vadd.f32 %v3709_v44, %v1446_v46  ;;  %v1447_v50 = vmul.f32 %v4715_v47, %v3707_v41 }
 0x484   : > { %v1457_v51 = vadd.f32 %v3709_v44, %v1447_v50  ;;  %v1458_v52 = vmax.f32 %v1456_v49, 0.0 }
 0x486   : > { %v1459_v53 = vmax.f32 %v1457_v51, 0.0  ;;  %v1469_v57 = vrot.slane %v1458_v52, 7  ;;  %v1577_v2 = vrot.slane %v1458_v52, 1 }
 0x488   : > { %v1476_v55 = vpack.c.bf16 %v1459_v53, %v1458_v52  ;;  %v1470_v56 = vrot.slane %v1459_v53, 7  ;;  %v1578_v1 = vrot.slane %v1459_v53, 1 }
 0x48a   : > { %3987 = vmatmul.mubr.msk.bf16.vlgmr.msra.gmra.mrb[8].mxu0 %vm935_vm10, %v1476_v55  ;;  %v1471_v58 = vsel %vm696_vm2, %v1469_v57, %v1470_v56  ;;  %v1472_v59 = vsel %vm696_vm2, %v1470_v56, %v1469_v57  ;;  %v1579_v3 = vsel %vm843_vm4, %v1577_v2, %v1578_v1  ;;  %v1580_v4 = vsel %vm843_vm4, %v1578_v1, %v1577_v2  ;;  %v4327_v2 = vld [vmem:[#allocation4 + $0x80] sm:$0xff]  }
 0x48b   : > { %3991 = vmatpush3.bf16.msra.mxu0 %v4318_v54  ;;  %3992 = vmatprep.mubr.msk.bf16.mxu0 %vm4396_vm9, %v4395_v23  ;;  %v1473_v37 = vsel %vm4642_vm12, 0.0, %v1472_v59  ;;  %v1474_v62 = vsel %vm4638_vm11, 0.0, %v1471_v58  ;;  %v1581_v5 = vsel %vm4667_vm13, 0.0, %v1579_v3  ;;  %v1582_v6 = vsel %vm4671_vm14, 0.0, %v1580_v4 }
 0x48c   : > { %3996 = vmatprep.subr.bf16.mxu0 %v4395_v23  ;;  %v1475_v0 = vpack.c.bf16 %v1474_v62, %v1473_v37  ;;  %v1583_v7 = vpack.c.bf16 %v1582_v6, %v1581_v5  ;;  %v3727_v62 = vld [vmem:[%s5029_s7 + $0x4] ss:$0 sm:$0xff] }
 0x496   : > { %3993 = vmatmul.mubr.msk.bf16.vlgmr.msra.gmra.mrb[8].mxu0 %vm935_vm10, %v1475_v0 }
 0x497   : > { %3997 = vmatpush3.bf16.msra.mxu0 %v4319_v63  ;;  %3998 = vmatprep.mubr.msk.bf16.mxu0 %vm4396_vm9, %v4395_v23  ;;  %v3729_v63 = vld [vmem:[%s5030_s8 + $0x4] ss:$0 sm:$0xff] }
 0x498   : > { %4008 = vmatprep.subr.bf16.mxu0 %v4395_v23 }
 0x4a2   : > { %3999 = vmatmul.mubr.msk.bf16.vlgmr.msra.gmra.mrb[8].mxu0 %vm935_vm10, %v1583_v7  ;;  %v4325_v7 = vld [vmem:[#allocation4 + $0x60] sm:$0xff]  }
 0x4a3   : > { %4010 = vmatprep.mubr.msk.bf16.mxu0 %vm4396_vm9, %v4395_v23  ;;  %4009 = vmatpush3.bf16.msra.mxu0 %v4321_v9 }
 0x4a4   : > { %4020 = vmatprep.subr.bf16.mxu0 %v4395_v23 }
 0x575   : > { %v1627_v11 = vpop.f32.mrb[8].mxu0 }
 0x576   : > { %v1644_v14 = vmul.f32 %v3717_v10, %v1627_v11  ;;  %v4000_v15 = vpop.f32.mrb[9].mxu0 }
 0x577   : > { %v1630_v16 = vpop.f32.mrb[10].mxu0  ;;  %v4326_v15 = vld [vmem:[#allocation4 + $0x70] sm:$0xff]  }
 0x578   : > { %v1654_v17 = vadd.f32 %v3719_v13, %v1644_v14  ;;  %v1645_v18 = vmul.f32 %v3717_v10, %v1630_v16  ;;  %v4001_v21 = vpop.f32.mrb[11].mxu0  ;;  %v1866_v10 = vand.u32 3, %v4525_v12 }
 0x57a   : > { %v1656_v22 = vmax.f32 %v1654_v17, 0.0  ;;  %v1655_v24 = vadd.f32 %v3719_v13, %v1645_v18  ;;  %vm4803_vm15 = vcmp.eq.s32.totalorder %v1866_v10, 0  ;;  %v3743_v18 = vld [vmem:[%s5029_s7 + $0x5] ss:$0 sm:$0xff]  ;;  %vm4832_vm0 = vcmp.eq.s32.totalorder %v1866_v10, 3 }
 0x57c   : > { %v1657_v25 = vmax.f32 %v1655_v24, 0.0  ;;  %v1667_v26 = vrot.slane %v1656_v22, 7  ;;  %v1775_v28 = vrot.slane %v1656_v22, 1 }
 0x57e   : > { %v1668_v29 = vrot.slane %v1657_v25, 7  ;;  %v1674_v30 = vpack.c.bf16 %v1657_v25, %v1656_v22  ;;  %v1776_v31 = vrot.slane %v1657_v25, 1  ;;  %v3745_v22 = vld [vmem:[%s5030_s8 + $0x5] ss:$0 sm:$0xff] }
 0x580   : > { %v1669_v32 = vsel %vm696_vm2, %v1667_v26, %v1668_v29  ;;  %v1670_v33 = vsel %vm696_vm2, %v1668_v29, %v1667_v26  ;;  %v1777_v34 = vsel %vm843_vm4, %v1775_v28, %v1776_v31  ;;  %v1778_v35 = vsel %vm843_vm4, %v1776_v31, %v1775_v28  ;;  %4005 = vmatmul.mubr.msk.bf16.vlgmr.msra.gmra.mrb[8].mxu1 %vm935_vm10, %v1674_v30  ;;  %v4328_v30 = vld [vmem:[#allocation4 + $0x78] sm:$0xff]  }
 0x581   : > { %4015 = vmatpush3.bf16.msra.mxu1 %v4322_v27  ;;  %v1671_v36 = vsel %vm4642_vm12, 0.0, %v1670_v33  ;;  %v1672_v38 = vsel %vm4638_vm11, 0.0, %v1669_v32  ;;  %4016 = vmatprep.mubr.msk.bf16.mxu1 %vm4396_vm9, %v4395_v23  ;;  %v1779_v39 = vsel %vm4667_vm13, 0.0, %v1777_v34  ;;  %v1780_v40 = vsel %vm4671_vm14, 0.0, %v1778_v35  ;;  %v4329_v34 = vld [vmem:[#allocation4 + $0x88] sm:$0xff]  }
 0x582   : > { %v1673_v41 = vpack.c.bf16 %v1672_v38, %v1671_v36  ;;  %v1781_v43 = vpack.c.bf16 %v1780_v40, %v1779_v39  ;;  %4038 = vmatprep.subr.bf16.mxu1 %v4395_v23  ;;  %v4340_v38 = vld [vmem:[#allocation4 + $0xe0] sm:$0xff]   ;;  %vm3551_vm4 = vcmask 1024  }
 0x584   : > { %4011 = vmatmul.mubr.msk.bf16.vlgmr.msra.gmra.mrb[12].mxu0 %vm935_vm10, %v1673_v41  ;;  %v4330_v41 = vld [vmem:[#allocation4 + $0x98] sm:$0xff]  }
 0x585   : > { %4022 = vmatprep.mubr.msk.bf16.mxu0 %vm4396_vm9, %v4395_v23  ;;  %4021 = vmatpush3.bf16.msra.mxu0 %v4324_v61  ;;  %v3753_v61 = vld [vmem:[%s5029_s7 + $0x6] ss:$0 sm:$0xff] }
 0x586   : > { %4026 = vmatprep.subr.bf16.mxu0 %v4395_v23 }
 0x588   : > { %4017 = vmatmul.mubr.msk.bf16.vlgmr.msra.gmra.mrb[12].mxu1 %vm935_vm10, %v1781_v43  ;;  %v3739_v43 = vld [vmem:[%s5032_s10 + $0x1] ss:$0 sm:$0xff] }
 0x589   : > { %4040 = vmatprep.mubr.msk.bf16.mxu1 %vm4396_vm9, %v4395_v23  ;;  %4039 = vmatpush3.bf16.msra.mxu1 %v4323_v60 }
 0x58a   : > { %4044 = vmatprep.subr.bf16.mxu1 %v4395_v23 }
 0x653   : > { %v1718_v19 = vpop.f32.mrb[8].mxu1 }
 0x654   : > { %v4006_v20 = vpop.f32.mrb[9].mxu1 }
 0x655   : > { %v1721_v44 = vpop.f32.mrb[10].mxu1 }
 0x656   : > { %v4007_v45 = vpop.f32.mrb[11].mxu1 }
 0x657   : > { %v1768_v46 = vpop.f32.mrb[12].mxu0 }
 0x658   : > { %v1769_v48 = vadd.f32 %v1768_v46, %v1718_v19  ;;  %v4012_v49 = vpop.f32.mrb[13].mxu0 }
 0x659   : > { %v1771_v50 = vpop.f32.mrb[14].mxu0 }
 0x65a   : > { %v1772_v51 = vadd.f32 %v1771_v50, %v1721_v44  ;;  %v4013_v52 = vpop.f32.mrb[15].mxu0  ;;  %v3755_v44 = vld [vmem:[%s5030_s8 + $0x6] ss:$0 sm:$0xff] }
 0x65b   : > { %v1825_v53 = vpop.f32.mrb[12].mxu1 }
 0x65c   : > { %v1832_v54 = vadd.f32 %v1825_v53, %v1769_v48  ;;  %v4018_v55 = vpop.f32.mrb[13].mxu1 }
 0x65d   : > { %v1828_v56 = vpop.f32.mrb[14].mxu1  ;;  %v4332_v55 = vld [vmem:[#allocation4 + $0xa0] sm:$0xff]  }
 0x65e   : > { %v1834_v57 = vadd.f32 %v4709_v42, %v1832_v54  ;;  %v1833_v58 = vadd.f32 %v1828_v56, %v1772_v51  ;;  %v4019_v59 = vpop.f32.mrb[15].mxu1  ;;  %v4331_v51 = vld [vmem:[#allocation4 + $0x90] sm:$0xff]  }
 0x660   : > { %1836 = vst.msk [vmem:[#allocation2] sm:$0xff] %vm935_vm10, %v1834_v57  ;;  %v1835_v37 = vadd.f32 %v4715_v47, %v1833_v58 }
 0x662   : > { %1837 = vst.msk [vmem:[#allocation2 + $0x8] sm:$0xff] %vm935_vm10, %v1835_v37  ;;  %v4333_v37 = vld [vmem:[#allocation4 + $0xb0] sm:$0xff]  }
 0x669   : > { %v1838_v0 = vld [vmem:[#allocation2] ss:$2 sm:$0xff]  ;;  %v1839_v1 = vld [vmem:[#allocation2 + $0x1] ss:$2 sm:$0xff] }
 0x66a   : > { %v2042_v42 = vpack.c.bf16 %v1838_v0, %v1838_v0  ;;  %v1848_v3 = vmul.f32 %v3727_v62, %v1838_v0  ;;  %v1859_v4 = vmul.f32 %v3727_v62, %v1839_v1  ;;  %v4335_v62 = vld [vmem:[#allocation4 + $0xb8] sm:$0xff]   ;;  %v3765_v1 = vld [vmem:[%s5030_s8 + $0x7] ss:$0 sm:$0xff] }
 0x66c   : > { %4041 = vmatmul.mubr.msk.bf16.vlgmr.msra.gmra.mrb[16].mxu1 %vm935_vm10, %v2042_v42  ;;  %v1857_v5 = vadd.f32 %v3729_v63, %v1848_v3  ;;  %v1860_v47 = vadd.f32 %v3729_v63, %v1859_v4  ;;  %v3763_v63 = vld [vmem:[%s5029_s7 + $0x7] ss:$0 sm:$0xff] }
 0x66d   : > { %4045 = vmatpush3.bf16.msra.mxu1 %v4327_v2  ;;  %4046 = vmatprep.mubr.msk.bf16.mxu1 %vm4396_vm9, %v4395_v23 }
 0x66e   : > { %v1858_v6 = vmax.f32 %v1857_v5, 0.0  ;;  %4050 = vmatprep.subr.bf16.mxu1 %v4395_v23  ;;  %v1861_v9 = vmax.f32 %v1860_v47, 0.0 }
 0x670   : > { %v1886_v8 = vpack.c.bf16 %v1858_v6, %v1858_v6  ;;  %v1875_v11 = vrot.slane %v1861_v9, 7  ;;  %v1988_v17 = vpack.c.bf16 %v1861_v9, %v1861_v9  ;;  %v4334_v6 = vld [vmem:[#allocation4 + $0xa8] sm:$0xff]  }
 0x672   : > { %4023 = vmatmul.mubr.msk.bf16.vlgmr.msra.gmra.mrb[16].mxu0 %vm935_vm10, %v1886_v8  ;;  %v1878_v14 = vsel %vm4803_vm15, 0.0, %v1875_v11 }
 0x673   : > { %4027 = vmatpush3.bf16.msra.mxu0 %v4325_v7  ;;  %4028 = vmatprep.mubr.msk.bf16.mxu0 %vm4396_vm9, %v4395_v23  ;;  %v1882_v16 = vpack.c.bf16 %v1878_v14, %v1878_v14 }
 0x674   : > { %4032 = vmatprep.subr.bf16.mxu0 %v4395_v23 }
 0x67e   : > { %4029 = vmatmul.mubr.msk.bf16.vlgmr.msra.gmra.mrb[16].mxu0 %vm935_vm10, %v1882_v16  ;;  %v4336_v16 = vld [vmem:[%s5031_s9 + $0x10] sm:$0xff]  }
 0x67f   : > { %4033 = vmatpush3.bf16.msra.mxu0 %v4326_v15  ;;  %4034 = vmatprep.mubr.msk.bf16.mxu0 %vm4396_vm9, %v4395_v23 }
 0x680   : > { %4062 = vmatprep.subr.bf16.mxu0 %v4395_v23 }
 0x68a   : > { %4035 = vmatmul.mubr.msk.bf16.vlgmr.msra.gmra.mrb[16].mxu0 %vm935_vm10, %v1988_v17  ;;  %v4337_v17 = vld [vmem:[#allocation4 + $0xc8] sm:$0xff]  }
 0x68b   : > { %4064 = vmatprep.mubr.msk.bf16.mxu0 %vm4396_vm9, %v4395_v23  ;;  %4063 = vmatpush3.bf16.msra.mxu0 %v4330_v41 }
 0x68c   : > { %4068 = vmatprep.subr.bf16.mxu0 %v4395_v23 }
 0x75d   : > { %v2032_v21 = vpop.f32.mrb[16].mxu0 }
 0x75e   : > { %v2108_v24 = vmul.f32 %v3743_v18, %v2032_v21  ;;  %v4036_v25 = vpop.f32.mrb[17].mxu0 }
 0x75f   : > { %v2035_v26 = vpop.f32.mrb[18].mxu0 }
 0x760   : > { %v2117_v27 = vadd.f32 %v3745_v22, %v2108_v24  ;;  %v4037_v28 = vpop.f32.mrb[19].mxu0 }
 0x762   : > { %v2118_v29 = vmax.f32 %v2117_v27, 0.0 }
 0x764   : > { %v2131_v31 = vpack.c.bf16 %v2118_v29, %v2118_v29  ;;  %v2128_v32 = vrot.slane %v2118_v29, 7  ;;  %v2231_v36 = vrot.slane %v2118_v29, 1 }
 0x766   : > { %4047 = vmatmul.mubr.msk.bf16.vlgmr.msra.gmra.mrb[16].mxu1 %vm935_vm10, %v2131_v31  ;;  %v2129_v33 = vsel %vm4803_vm15, 0.0, %v2128_v32  ;;  %v2234_v39 = vsel %vm4832_vm0, 0.0, %v2231_v36  ;;  %v3775_v36 = vld [vmem:[%s5030_s8 + $0x8] ss:$0 sm:$0xff] }
 0x767   : > { %4051 = vmatpush3.bf16.msra.mxu1 %v4328_v30  ;;  %4052 = vmatprep.mubr.msk.bf16.mxu1 %vm4396_vm9, %v4395_v23  ;;  %v2130_v35 = vpack.c.bf16 %v2129_v33, %v2129_v33  ;;  %v2235_v40 = vpack.c.bf16 %v2234_v39, %v2234_v39 }
 0x768   : > { %4056 = vmatprep.subr.bf16.mxu1 %v4395_v23 }
 0x772   : > { %4053 = vmatmul.mubr.msk.bf16.vlgmr.msra.gmra.mrb[16].mxu1 %vm935_vm10, %v2130_v35  ;;  %v3773_v35 = vld [vmem:[%s5029_s7 + $0x8] ss:$0 sm:$0xff] }
 0x773   : > { %4057 = vmatpush3.bf16.msra.mxu1 %v4329_v34  ;;  %4058 = vmatprep.mubr.msk.bf16.mxu1 %vm4396_vm9, %v4395_v23 }
 0x774   : > { %4080 = vmatprep.subr.bf16.mxu1 %v4395_v23 }
 0x77e   : > { %4059 = vmatmul.mubr.msk.bf16.vlgmr.msra.gmra.mrb[16].mxu1 %vm935_vm10, %v2235_v40 }
 0x77f   : > { %4082 = vmatprep.mubr.msk.bf16.mxu1 %vm4396_vm9, %v4395_v23  ;;  %4081 = vmatpush3.bf16.msra.mxu1 %v4333_v37  ;;  %v3791_v37 = vld [vmem:[%s5030_s8 + $0x9] ss:$0 sm:$0xff] }
 0x780   : > { %4086 = vmatprep.subr.bf16.mxu1 %v4395_v23 }
 0x851   : > { %v2279_v60 = vpop.f32.mrb[16].mxu1 }
 0x852   : > { %v4848_v19 = vadd.f32 %v3739_v43, %v2279_v60  ;;  %v4060_v20 = vpop.f32.mrb[17].mxu1 }
 0x853   : > { %v2282_v45 = vpop.f32.mrb[18].mxu1 }
 0x854   : > { %v2295_v46 = vmul.f32 %v4848_v19, %v3753_v61  ;;  %v4061_v48 = vpop.f32.mrb[19].mxu1  ;;  %v4338_v45 = vld [vmem:[#allocation4 + $0xc0] sm:$0xff]  }
 0x856   : > { %v2304_v49 = vadd.f32 %v3755_v44, %v2295_v46 }
 0x858   : > { %v2305_v50 = vmax.f32 %v2304_v49, 0.0  ;;  %v2683_v49 = vand.u32 1, %v4525_v12  ;;  %v4339_v12 = vld [vmem:[#allocation4 + $0xd0] sm:$0xff]  }
 0x85a   : > { %v2318_v52 = vpack.c.bf16 %v2305_v50, %v2305_v50  ;;  %v2315_v53 = vrot.slane %v2305_v50, 7  ;;  %v2417_v57 = vrot.slane %v2305_v50, 1  ;;  %vm4915_vm2 = vcmp.eq.s32.totalorder %v2683_v49, 0 }
 0x85b   : > { %vm4946_vm3 = vcmp.eq.s32.totalorder %v2683_v49, 1 }
 0x85c   : > { %4065 = vmatmul.mubr.msk.bf16.vlgmr.msra.gmra.mrb[20].mxu0 %vm935_vm10, %v2318_v52  ;;  %v2316_v54 = vsel %vm4803_vm15, 0.0, %v2315_v53  ;;  %v2418_v58 = vsel %vm4832_vm0, 0.0, %v2417_v57 }
 0x85d   : > { %4069 = vmatpush3.bf16.msra.mxu0 %v4331_v51  ;;  %4070 = vmatprep.mubr.msk.bf16.mxu0 %vm4396_vm9, %v4395_v23  ;;  %v2317_v56 = vpack.c.bf16 %v2316_v54, %v2316_v54  ;;  %v2419_v59 = vpack.c.bf16 %v2418_v58, %v2418_v58  ;;  %v3789_v58 = vld [vmem:[%s5029_s7 + $0x9] ss:$0 sm:$0xff] }
 0x85e   : > { %4074 = vmatprep.subr.bf16.mxu0 %v4395_v23 }
 0x868   : > { %4071 = vmatmul.mubr.msk.bf16.vlgmr.msra.gmra.mrb[20].mxu0 %vm935_vm10, %v2317_v56 }
 0x869   : > { %4075 = vmatpush3.bf16.msra.mxu0 %v4332_v55  ;;  %4076 = vmatprep.mubr.msk.bf16.mxu0 %vm4396_vm9, %v4395_v23 }
 0x86a   : > { %4092 = vmatprep.subr.bf16.mxu0 %v4395_v23 }
 0x874   : > { %4077 = vmatmul.mubr.msk.bf16.vlgmr.msra.gmra.mrb[20].mxu0 %vm935_vm10, %v2419_v59 }
 0x875   : > { %4094 = vmatprep.mubr.msk.bf16.mxu0 %vm4396_vm9, %v4395_v23  ;;  %4093 = vmatpush3.bf16.msra.mxu0 %v4335_v62 }
 0x876   : > { %4116 = vmatprep.subr.bf16.mxu0 %v4395_v23 }
 0x947   : > { %v2463_v0 = vpop.f32.mrb[20].mxu0 }
 0x948   : > { %v2478_v2 = vmul.f32 %v3763_v63, %v2463_v0  ;;  %v4078_v42 = vpop.f32.mrb[21].mxu0 }
 0x949   : > { %v2466_v3 = vpop.f32.mrb[22].mxu0 }
 0x94a   : > { %v2487_v4 = vadd.f32 %v3765_v1, %v2478_v2  ;;  %v4079_v5 = vpop.f32.mrb[23].mxu0  ;;  %v4341_v3 = vld [vmem:[#allocation4 + $0xd8] sm:$0xff]  }
 0x94c   : > { %v2488_v47 = vmax.f32 %v2487_v4, 0.0 }
 0x94e   : > { %v2501_v7 = vpack.c.bf16 %v2488_v47, %v2488_v47  ;;  %v2600_v8 = vrot.slane %v2488_v47, 1  ;;  %v2498_v9 = vrot.slane %v2488_v47, 7 }
 0x950   : > { %v2601_v10 = vsel %vm4832_vm0, 0.0, %v2600_v8  ;;  %4083 = vmatmul.mubr.msk.bf16.vlgmr.msra.gmra.mrb[20].mxu1 %vm935_vm10, %v2501_v7  ;;  %v2499_v14 = vsel %vm4803_vm15, 0.0, %v2498_v9 }
 0x951   : > { %v2602_v11 = vpack.c.bf16 %v2601_v10, %v2601_v10  ;;  %4087 = vmatpush3.bf16.msra.mxu1 %v4334_v6  ;;  %4088 = vmatprep.mubr.msk.bf16.mxu1 %vm4396_vm9, %v4395_v23  ;;  %v2500_v15 = vpack.c.bf16 %v2499_v14, %v2499_v14  ;;  %v4342_v10 = vld [vmem:[#allocation4 + $0xe8] sm:$0xff]  }
 0x952   : > { %4098 = vmatprep.subr.bf16.mxu1 %v4395_v23 }
 0x953   : > { %4095 = vmatmul.mubr.msk.bf16.vlgmr.msra.gmra.mrb[24].mxu0 %vm935_vm10, %v2602_v11 }
 0x954   : > { %4118 = vmatprep.mubr.msk.bf16.mxu0 %vm4396_vm9, %v4395_v23  ;;  %4117 = vmatpush3.bf16.msra.mxu0 %v4336_v16 }
 0x955   : > { %4122 = vmatprep.subr.bf16.mxu0 %v4395_v23 }
 0x958   : > { %4089 = vmatmul.mubr.msk.bf16.vlgmr.msra.gmra.mrb[24].mxu1 %vm935_vm10, %v2500_v15 }
 0x959   : > { %4100 = vmatprep.mubr.msk.bf16.mxu1 %vm4396_vm9, %v4395_v23  ;;  %4099 = vmatpush3.bf16.msra.mxu1 %v4337_v17 }
 0x95a   : > { %4104 = vmatprep.subr.bf16.mxu1 %v4395_v23 }
 0xa23   : > { %v2545_v13 = vpop.f32.mrb[20].mxu1 }
 0xa24   : > { %v4084_v18 = vpop.f32.mrb[21].mxu1 }
 0xa25   : > { %v2548_v21 = vpop.f32.mrb[22].mxu1  ;;  %v3785_v18 = vld [vmem:[%s5032_s10 + $0x2] ss:$0 sm:$0xff] }
 0xa26   : > { %v4085_v22 = vpop.f32.mrb[23].mxu1  ;;  %v2646_v24 = vpop.f32.mrb[24].mxu0 }
 0xa27   : > { %v4096_v25 = vpop.f32.mrb[25].mxu0  ;;  %v3799_v22 = vld [vmem:[%s5029_s7 + $0xa] ss:$0 sm:$0xff] }
 0xa28   : > { %v2649_v26 = vpop.f32.mrb[26].mxu0 }
 0xa29   : > { %v4097_v27 = vpop.f32.mrb[27].mxu0  ;;  %v3801_v26 = vld [vmem:[%s5030_s8 + $0xa] ss:$0 sm:$0xff] }
 0xa2b   : > { %v2594_v28 = vpop.f32.mrb[24].mxu1 }
 0xa2c   : > { %v2595_v29 = vadd.f32 %v2594_v28, %v2545_v13  ;;  %v4090_v30 = vpop.f32.mrb[25].mxu1  ;;  %v4343_v13 = vld [vmem:[#allocation4 + $0xf8] sm:$0xff]  }
 0xa2d   : > { %v2597_v31 = vpop.f32.mrb[26].mxu1 }
 0xa2e   : > { %v2652_v32 = vadd.f32 %v2646_v24, %v2595_v29  ;;  %v4091_v33 = vpop.f32.mrb[27].mxu1 }
 0xa30   : > { %v2653_v34 = vadd.f32 %v4848_v19, %v2652_v32  ;;  %v4344_v32 = vld [vmem:[#allocation4 + $0xf0] sm:$0xff]  }
 0xa32   : > { %2654 = vst.msk [vmem:[#allocation2] sm:$0xff] %vm935_vm10, %v2653_v34 }
 0xa39   : > { %v2655_v39 = vld [vmem:[#allocation2] ss:$2 sm:$0xf]  ;;  %v2656_v40 = vld [vmem:[#allocation2 + $0x1] ss:$2 sm:$0xf] }
 0xa3a   : > { %v2665_v41 = vmul.f32 %v3773_v35, %v2655_v39  ;;  %v2676_v43 = vmul.f32 %v3773_v35, %v2656_v40  ;;  %v2866_v60 = vpack.c.bf16 %v2655_v39, %v2655_v39 }
 0xa3c   : > { %4119 = vmatmul.mubr.msk.bf16.vlgmr.msra.gmra.mrb[28].mxu0 %vm935_vm10, %v2866_v60  ;;  %v2674_v61 = vadd.f32 %v3775_v36, %v2665_v41  ;;  %v2677_v19 = vadd.f32 %v3775_v36, %v2676_v43  ;;  %v4345_v41 = vld [vmem:[#allocation4 + $0x100] sm:$0xff]  }
 0xa3d   : > { %4123 = vmatpush3.bf16.msra.mxu0 %v4340_v38  ;;  %4124 = vmatprep.mubr.msk.bf16.mxu0 %vm4396_vm9, %v4395_v23 }
 0xa3e   : > { %v2675_v20 = vmax.f32 %v2674_v61, 0.0  ;;  %v2678_v44 = vmax.f32 %v2677_v19, 0.0  ;;  %4128 = vmatprep.subr.bf16.mxu0 %v4395_v23 }
 0xa40   : > { %v2693_v46 = vrot.slane %v2678_v44, 4  ;;  %v2710_v48 = vpack.c.bf16 %v2675_v20, %v2675_v20  ;;  %v2812_v57 = vpack.c.bf16 %v2678_v44, %v2678_v44  ;;  %v4346_v20 = vld [vmem:[#allocation4 + $0x110] sm:$0xff]  }
 0xa42   : > { %4101 = vmatmul.mubr.msk.bf16.vlgmr.msra.gmra.mrb[28].mxu1 %vm935_vm10, %v2710_v48  ;;  %v2694_v50 = vsel %vm2692_vm1, %v2693_v46, %v2678_v44  ;;  %v3811_v48 = vld [vmem:[%s5030_s8 + $0xb] ss:$0 sm:$0xff] }
 0xa43   : > { %4105 = vmatpush3.bf16.msra.mxu1 %v4338_v45  ;;  %4106 = vmatprep.mubr.msk.bf16.mxu1 %vm4396_vm9, %v4395_v23  ;;  %v2695_v51 = vrot.slane %v2694_v50, 4  ;;  %v3809_v45 = vld [vmem:[%s5029_s7 + $0xb] ss:$0 sm:$0xff] }
 0xa44   : > { %4110 = vmatprep.subr.bf16.mxu1 %v4395_v23 }
 0xa45   : > { %v2696_v52 = vsel %vm2692_vm1, %v2695_v51, %v2678_v44  ;;  %v4348_v44 = vld [vmem:[#allocation4 + $0x118] sm:$0xff]  }
 0xa46   : > { %v2700_v54 = vrot.slane %v2696_v52, 3 }
 0xa48   : > { %v2702_v55 = vsel %vm4915_vm2, 0.0, %v2700_v54 }
 0xa49   : > { %v2706_v56 = vpack.c.bf16 %v2702_v55, %v2702_v55 }
 0xa4e   : > { %4107 = vmatmul.mubr.msk.bf16.vlgmr.msra.gmra.mrb[28].mxu1 %vm935_vm10, %v2706_v56 }
 0xa4f   : > { %4111 = vmatpush3.bf16.msra.mxu1 %v4339_v12  ;;  %4112 = vmatprep.mubr.msk.bf16.mxu1 %vm4396_vm9, %v4395_v23  ;;  %v4347_v12 = vld [vmem:[#allocation4 + $0x108] sm:$0xff]  }
 0xa50   : > { %4140 = vmatprep.subr.bf16.mxu1 %v4395_v23 }
 0xa5a   : > { %4113 = vmatmul.mubr.msk.bf16.vlgmr.msra.gmra.mrb[28].mxu1 %vm935_vm10, %v2812_v57 }
 0xa5b   : > { %4142 = vmatprep.mubr.msk.bf16.mxu1 %vm4396_vm9, %v4395_v23  ;;  %4141 = vmatpush3.bf16.msra.mxu1 %v4343_v13 }
 0xa5c   : > { %4146 = vmatprep.subr.bf16.mxu1 %v4395_v23 }
 0xb2d   : > { %v2856_v59 = vpop.f32.mrb[28].mxu1 }
 0xb2e   : > { %v2932_v62 = vmul.f32 %v3789_v58, %v2856_v59  ;;  %v4114_v63 = vpop.f32.mrb[29].mxu1 }
 0xb2f   : > { %v2859_v0 = vpop.f32.mrb[30].mxu1 }
 0xb30   : > { %v2941_v1 = vadd.f32 %v3791_v37, %v2932_v62  ;;  %v4115_v2 = vpop.f32.mrb[31].mxu1 }
 0xb32   : > { %v2942_v42 = vmax.f32 %v2941_v1, 0.0 }
 0xb34   : > { %v2952_v4 = vrot.slane %v2942_v42, 4  ;;  %v2961_v5 = vpack.c.bf16 %v2942_v42, %v2942_v42 }
 0xb36   : > { %v2953_v47 = vsel %vm2692_vm1, %v2952_v4, %v2942_v42  ;;  %4125 = vmatmul.mubr.msk.bf16.vlgmr.msra.gmra.mrb[28].mxu0 %vm935_vm10, %v2961_v5 }
 0xb37   : > { %v2954_v6 = vrot.slane %v2953_v47, 4  ;;  %4129 = vmatpush3.bf16.msra.mxu0 %v4341_v3  ;;  %4130 = vmatprep.mubr.msk.bf16.mxu0 %vm4396_vm9, %v4395_v23  ;;  %v4349_v3 = vld [vmem:[%s5033_s11] sm:$0xff]  }
 0xb38   : > { %4134 = vmatprep.subr.bf16.mxu0 %v4395_v23 }
 0xb39   : > { %v2955_v7 = vsel %vm2692_vm1, %v2954_v6, %v2942_v42 }
 0xb3a   : > { %v2957_v8 = vrot.slane %v2955_v7, 3  ;;  %v3063_v14 = vrot.slane %v2955_v7, 1 }
 0xb3c   : > { %v2959_v9 = vsel %vm4915_vm2, 0.0, %v2957_v8  ;;  %v3065_v16 = vsel %vm4946_vm3, 0.0, %v3063_v14 }
 0xb3d   : > { %v2960_v11 = vpack.c.bf16 %v2959_v9, %v2959_v9  ;;  %v3066_v17 = vpack.c.bf16 %v3065_v16, %v3065_v16 }
 0xb42   : > { %4131 = vmatmul.mubr.msk.bf16.vlgmr.msra.gmra.mrb[28].mxu0 %vm935_vm10, %v2960_v11 }
 0xb43   : > { %4135 = vmatpush3.bf16.msra.mxu0 %v4342_v10  ;;  %4136 = vmatprep.mubr.msk.bf16.mxu0 %vm4396_vm9, %v4395_v23 }
 0xb44   : > { %4158 = vmatprep.subr.bf16.mxu0 %v4395_v23 }
 0xb4e   : > { %4137 = vmatmul.mubr.msk.bf16.vlgmr.msra.gmra.mrb[28].mxu0 %vm935_vm10, %v3066_v17 }
 0xb4f   : > { %4160 = vmatprep.mubr.msk.bf16.mxu0 %vm4396_vm9, %v4395_v23  ;;  %4159 = vmatpush3.bf16.msra.mxu0 %v4346_v20 }
 0xb50   : > { %4164 = vmatprep.subr.bf16.mxu0 %v4395_v23 }
 0xc21   : > { %v3110_v21 = vpop.f32.mrb[28].mxu0 }
 0xc22   : > { %v4962_v24 = vadd.f32 %v3785_v18, %v3110_v21  ;;  %v4138_v25 = vpop.f32.mrb[29].mxu0 }
 0xc23   : > { %v3113_v27 = vpop.f32.mrb[30].mxu0 }
 0xc24   : > { %v3126_v28 = vmul.f32 %v4962_v24, %v3799_v22  ;;  %v4139_v29 = vpop.f32.mrb[31].mxu0 }
 0xc26   : > { %v3135_v30 = vadd.f32 %v3801_v26, %v3126_v28 }
 0xc28   : > { %v3136_v31 = vmax.f32 %v3135_v30, 0.0 }
 0xc2a   : > { %v3146_v33 = vrot.slane %v3136_v31, 4  ;;  %v3155_v34 = vpack.c.bf16 %v3136_v31, %v3136_v31 }
 0xc2c   : > { %v3147_v35 = vsel %vm2692_vm1, %v3146_v33, %v3136_v31  ;;  %4143 = vmatmul.mubr.msk.bf16.vlgmr.msra.gmra.mrb[32].mxu1 %vm935_vm10, %v3155_v34 }
 0xc2d   : > { %v3148_v36 = vrot.slane %v3147_v35, 4  ;;  %4147 = vmatpush3.bf16.msra.mxu1 %v4344_v32  ;;  %4148 = vmatprep.mubr.msk.bf16.mxu1 %vm4396_vm9, %v4395_v23 }
 0xc2e   : > { %4152 = vmatprep.subr.bf16.mxu1 %v4395_v23 }
 0xc2f   : > { %v3149_v38 = vsel %vm2692_vm1, %v3148_v36, %v3136_v31 }
 0xc30   : > { %v3151_v39 = vrot.slane %v3149_v38, 3  ;;  %v3254_v60 = vrot.slane %v3149_v38, 1 }
 0xc32   : > { %v3153_v40 = vsel %vm4915_vm2, 0.0, %v3151_v39  ;;  %v3256_v61 = vsel %vm4946_vm3, 0.0, %v3254_v60 }
 0xc33   : > { %v3154_v43 = vpack.c.bf16 %v3153_v40, %v3153_v40  ;;  %v3257_v19 = vpack.c.bf16 %v3256_v61, %v3256_v61 }
 0xc38   : > { %4149 = vmatmul.mubr.msk.bf16.vlgmr.msra.gmra.mrb[32].mxu1 %vm935_vm10, %v3154_v43 }
 0xc39   : > { %4153 = vmatpush3.bf16.msra.mxu1 %v4345_v41  ;;  %4154 = vmatprep.mubr.msk.bf16.mxu1 %vm4396_vm9, %v4395_v23  ;;  %v3820_v41 = vld [vmem:[#allocation3] ss:$0 sm:$0xff] }
 0xc3a   : > { %4170 = vmatprep.subr.bf16.mxu1 %v4395_v23 }
 0xc44   : > { %4155 = vmatmul.mubr.msk.bf16.vlgmr.msra.gmra.mrb[32].mxu1 %vm935_vm10, %v3257_v19 }
 0xc45   : > { %4172 = vmatprep.mubr.msk.bf16.mxu1 %vm4396_vm9, %v4395_v23  ;;  %4171 = vmatpush3.bf16.msra.mxu1 %v4348_v44 }
 0xd17   : > { %v3301_v46 = vpop.f32.mrb[32].mxu1 }
 0xd18   : > { %v3316_v49 = vmul.f32 %v3809_v45, %v3301_v46  ;;  %v4156_v50 = vpop.f32.mrb[33].mxu1 }
 0xd19   : > { %v3304_v51 = vpop.f32.mrb[34].mxu1 }
 0xd1a   : > { %v3325_v52 = vadd.f32 %v3811_v48, %v3316_v49  ;;  %v4157_v54 = vpop.f32.mrb[35].mxu1 }
 0xd1c   : > { %v3326_v55 = vmax.f32 %v3325_v52, 0.0 }
 0xd1e   : > { %v3336_v56 = vrot.slane %v3326_v55, 4  ;;  %v3345_v57 = vpack.c.bf16 %v3326_v55, %v3326_v55 }
 0xd20   : > { %v3337_v58 = vsel %vm2692_vm1, %v3336_v56, %v3326_v55  ;;  %4161 = vmatmul.mubr.msk.bf16.vlgmr.msra.gmra.mrb[32].mxu0 %vm935_vm10, %v3345_v57 }
 0xd21   : > { %v3338_v59 = vrot.slane %v3337_v58, 4  ;;  %4165 = vmatpush3.bf16.msra.mxu0 %v4347_v12  ;;  %4166 = vmatprep.mubr.msk.bf16.mxu0 %vm4396_vm9, %v4395_v23 }
 0xd22   : > { %4176 = vmatprep.subr.bf16.mxu0 %v4395_v23 }
 0xd23   : > { %v3339_v37 = vsel %vm2692_vm1, %v3338_v59, %v3326_v55 }
 0xd24   : > { %v3341_v62 = vrot.slane %v3339_v37, 3  ;;  %v3444_v63 = vrot.slane %v3339_v37, 1 }
 0xd26   : > { %v3343_v0 = vsel %vm4915_vm2, 0.0, %v3341_v62  ;;  %v3446_v1 = vsel %vm4946_vm3, 0.0, %v3444_v63 }
 0xd27   : > { %v3344_v2 = vpack.c.bf16 %v3343_v0, %v3343_v0  ;;  %v3447_v42 = vpack.c.bf16 %v3446_v1, %v3446_v1 }
 0xd29   : > { %4167 = vmatmul.mubr.msk.bf16.vlgmr.msra.gmra.mrb[36].mxu0 %vm935_vm10, %v3344_v2  ;;  %4173 = vmatmul.mubr.msk.bf16.vlgmr.msra.gmra.mrb[36].mxu1 %vm935_vm10, %v3447_v42 }
 0xd2a   : > { %4178 = vmatprep.mubr.msk.bf16.mxu0 %vm4396_vm9, %v4395_v23  ;;  %4177 = vmatpush3.bf16.msra.mxu0 %v4349_v3 }
 0xdf3   : > { %v3389_v4 = vpop.f32.mrb[32].mxu0 }
 0xdf4   : > { %v4162_v53 = vpop.f32.mrb[33].mxu0 }
 0xdf5   : > { %v3392_v5 = vpop.f32.mrb[34].mxu0 }
 0xdf6   : > { %v4163_v47 = vpop.f32.mrb[35].mxu0 }
 0xdfc   : > { %v3438_v6 = vpop.f32.mrb[36].mxu0  ;;  %v3491_v7 = vpop.f32.mrb[36].mxu1 }
 0xdfd   : > { %v3439_v8 = vadd.f32 %v3438_v6, %v3389_v4  ;;  %v4168_v9 = vpop.f32.mrb[37].mxu0  ;;  %v4174_v10 = vpop.f32.mrb[37].mxu1 }
 0xdfe   : > { %v3441_v11 = vpop.f32.mrb[38].mxu0  ;;  %v3494_v14 = vpop.f32.mrb[38].mxu1 }
 0xdff   : > { %v3497_v15 = vadd.f32 %v3491_v7, %v3439_v8  ;;  %v4169_v16 = vpop.f32.mrb[39].mxu0  ;;  %v4175_v23 = vpop.f32.mrb[39].mxu1 }
 0xe01   : > { %v3498_v17 = vadd.f32 %v4962_v24, %v3497_v15 }
 0xe03   : > { %v3501_v13 = vpack.c.bf16 %v3498_v17, %v3498_v17 }
 0xe05   : > { %4179 = vmatmul.mubr.msk.bf16.vlgmr.msra.gmra.mrb[40].mxu0 %vm935_vm10, %v3501_v13 }
 0xed8   : > { %v3545_v18 = vpop.f32.mrb[40].mxu0 }
 0xed9   : > { %v3552_v21 = vsel %vm3551_vm4, %v3545_v18, 0.0  ;;  %v3560_v22 = vrot.slane %v3545_v18, 2  ;;  %v4180_v25 = vpop.f32.mrb[41].mxu0 }
 0xeda   : > { %v3553_v26 = vrot.slane %v3552_v21, 4  ;;  %v3548_v27 = vpop.f32.mrb[42].mxu0 }
 0xedb   : > { %v3562_v28 = vsel %vm3551_vm4, %v3560_v22, 0.0  ;;  %v4181_v29 = vpop.f32.mrb[43].mxu0 }
 0xedc   : > { %v3554_v30 = vadd.f32 %v3553_v26, %v3552_v21  ;;  %v3563_v31 = vrot.slane %v3562_v28, 4 }
 0xede   : > { %v3555_v32 = vrot.slane %v3554_v30, 2  ;;  %v3564_v24 = vadd.f32 %v3563_v31, %v3562_v28 }
 0xee0   : > { %v3556_v33 = vadd.f32 %v3555_v32, %v3554_v30  ;;  %v3565_v34 = vrot.slane %v3564_v24, 2 }
 0xee2   : > { %v3557_v35 = vrot.slane %v3556_v33, 1  ;;  %v3566_v36 = vadd.f32 %v3565_v34, %v3564_v24 }
 0xee4   : > { %v3567_v38 = vrot.slane %v3566_v36, 1  ;;  %v3558_v39 = vadd.f32 %v3557_v35, %v3556_v33 }
 0xee6   : > { %v3568_v40 = vadd.f32 %v3567_v38, %v3566_v36 }
 0xee8   : > { %v3570_v43 = vsel %vm3569_vm5, %v3558_v39, %v3568_v40 }
 0xee9   : > { %v3578_v60 = vadd.f32 %v3820_v41, %v3570_v43 }
 0xeeb   : > { %3579 = vst.msk [vmem:[%s479_s18] sm:$0x3] %vm3551_vm4, %v3578_v60 }
 0xeec PF: > { %s26_s27 = sadd.s32 1, %s4388_s27  }
 0xeed   : > { %p23_p5 = scmp.ge.s32.totalorder %s26_s27, 4  }
 0xeef   :  { %25 = sbr.rel (!%p23_p5) target bundleno = 4 (0x4), region = 176 }
 0xef6   :  { %3599 = vsyncpa [#allocation5], 1 }
 0xef7   :  { %3601 = vsyncpa [#allocation5 + $0x1], 1 }

</bundles_post_ra>
